<compile_context>
chip_gen: v7x
topology: tpu7x:2x2x1
jax: 0.10.0
libtpu: 0.0.40
codegen_flags: <defaults>
</compile_context>

<pallas_src>
import jax
import jax.numpy as jnp
from jax.experimental import pallas as pl
from jax.experimental.pallas import tpu as pltpu

LN_EPS = 1e-5                     # torch.nn.LayerNorm default eps
MXU_DTYPE = jnp.bfloat16          # matmul operand dtype (accumulate in f32)


# --------------------------- roll-convention probe ----------------------------

_ROLL_SIGN = None


def _detect_roll_sign():
    """Probe pltpu.roll on a sublane (axis-0) bf16 rotate.

    Returns +1 if it matches jnp.roll semantics, -1 if the rotation direction
    is reversed, 0 if the rotate is unavailable (=> pad+slice fallback)."""
    try:
        def probe(x_ref, o_ref):
            o_ref[...] = pltpu.roll(x_ref[...], 3, 0)

        x = jnp.arange(16 * 128, dtype=jnp.float32).reshape(16, 128)
        xb = x.astype(jnp.bfloat16)
        y = pl.pallas_call(
            probe, out_shape=jax.ShapeDtypeStruct((16, 128), jnp.bfloat16))(xb)
        y = jax.block_until_ready(y).astype(jnp.float32)
        xf = xb.astype(jnp.float32)
        if bool(jnp.array_equal(y, jnp.roll(xf, 3, axis=0))):
            return 1
        if bool(jnp.array_equal(y, jnp.roll(xf, -3, axis=0))):
            return -1
    except Exception:
        pass
    return 0


def _roll_sign():
    global _ROLL_SIGN
    if _ROLL_SIGN is None:
        _ROLL_SIGN = _detect_roll_sign()
    return _ROLL_SIGN


# ------------------------------ fused kernel ---------------------------------

def _build_fused_kernel(*, L, Lp, halo, p_init, n_blocks, glu, n_hidden,
                        vec_widths, roll_sign):
    """Kernel running the whole Deep1D_incept forward on one
    (batch_block*Lp, C) row slab held in VMEM."""
    C3 = 3 * n_hidden

    def kernel(x_ref, vec_ref, hb_ref, *refs):
        o_ref = refs[-1]
        w_refs = refs[:-1]
        R = x_ref.shape[0]

        # Rows inside [halo, halo+L) of each padded batch element are "real";
        # the rest stay zero so they act as Conv1d zero padding for the next conv.
        ridx = jax.lax.broadcasted_iota(jnp.int32, (R, 1), 0) % Lp
        interior = ((ridx >= halo) & (ridx < halo + L)).astype(jnp.float32)

        def vec(i):                       # (1, width_i) f32 row of the table
            return vec_ref[i:i + 1, 0:vec_widths[i]]

        def conv(x, w_ref, pad):
            # im2col: concat the (2*pad+1) shifted row views on the lane axis,
            # then one MXU matmul against the tap-packed weight.
            if pad == 0:
                xc = x.astype(MXU_DTYPE)
            elif roll_sign != 0:
                # bf16 BEFORE the concat; shifts done with XLU row-rotates.
                # Wrapped rows only land in halo rows (pad <= halo) and are
                # zeroed by the `interior` mask applied after every layer.
                xb = x.astype(MXU_DTYPE)
                views = []
                for k in range(2 * pad + 1):
                    if k == pad:
                        views.append(xb)
                    else:
                        views.append(
                            pltpu.roll(xb, (roll_sign * (pad - k)) % R, axis=0))
                xc = jnp.concatenate(views, axis=1)
            else:
                # fallback: previously-validated zero-pad + slice im2col
                z = jnp.zeros((pad, x.shape[1]), jnp.float32)
                xp = jnp.concatenate([z, x.astype(jnp.float32), z], axis=0)
                xc = jnp.concatenate(
                    [xp[k:k + R, :] for k in range(2 * pad + 1)],
                    axis=1).astype(MXU_DTYPE)
            return jnp.dot(xc, w_ref[...], preferred_element_type=jnp.float32)

        def layernorm(y, g, b):
            # single pass: var = E[y^2] - E[y]^2 (both reductions on the XLU)
            mu = jnp.mean(y, axis=-1, keepdims=True)
            m2 = jnp.mean(y * y, axis=-1, keepdims=True)
            var = jnp.maximum(m2 - mu * mu, 0.0)
            return (y - mu) * jax.lax.rsqrt(var + LN_EPS) * g + b

        # init_features convs -> concat -> norm0 -> act0 (ReLU)
        h = conv(x_ref[...], w_refs[0], p_init) + vec(0)
        h = jnp.maximum(layernorm(h, vec(1), vec(2)), 0.0) * interior

        # inception blocks: k = 1/3/5 branches packed into one k=5 matmul each
        for j in range(n_blocks):
            y = conv(h, w_refs[1 + j], 2) + vec(3 + 3 * j)
            if glu:
                y = y[:, :C3] * jax.nn.sigmoid(y[:, C3:])    # per-branch F.glu(dim=1)
            else:
                y = jnp.maximum(y, 0.0)
            h = layernorm(y, vec(4 + 3 * j), vec(5 + 3 * j)) * interior
            # TODO(synk): F.dropout omitted — identity at eval / drop_rate=0.

        # act_final (ReLU) + regression Linear, emitted TRANSPOSED so the
        # output store is lane-dense (rows on the 128-lane axis, not n_out=3).
        xr = jnp.maximum(h, 0.0).astype(MXU_DTYPE)            # (R, 3H)
        head_t = jax.lax.dot_general(                          # (n_out, R)
            w_refs[-1][...], xr,
            dimension_numbers=(((1,), (1,)), ((), ())),
            preferred_element_type=jnp.float32)
        o_ref[0] = (head_t + hb_ref[...]).astype(o_ref.dtype)

    return kernel


# ----------------------------- weight packing ---------------------------------

def _pack_taps_flat(w_torch, pad):
    """(Co, Cin, K) torch Conv1d weight -> ((2*pad+1)*Cin, Co), zero-padding taps."""
    co, cin, k = w_torch.shape
    p = (k - 1) // 2
    wt = jnp.transpose(w_torch, (2, 1, 0))                    # (K, Cin, Co)
    wt = jnp.pad(wt, ((pad - p, pad - p), (0, 0), (0, 0)))    # (2*pad+1, Cin, Co)
    return wt.reshape((2 * pad + 1) * cin, co)


def _pack_init(init_convs, pad):
    w = jnp.concatenate([_pack_taps_flat(w, pad) for w, _ in init_convs], axis=1)
    b = jnp.concatenate([b for _, b in init_convs])
    return w.astype(MXU_DTYPE), b.astype(jnp.float32)


def _pack_block(convs, glu, n_hidden):
    taps = [_pack_taps_flat(w, 2) for w, _ in convs]
    biases = [b for _, b in convs]
    if glu:
        # one matmul emits [value_1, value_3, value_5 | gate_1, gate_3, gate_5]
        w = jnp.concatenate([t[:, :n_hidden] for t in taps]
                            + [t[:, n_hidden:] for t in taps], axis=1)
        b = jnp.concatenate([bv[:n_hidden] for bv in biases]
                            + [bv[n_hidden:] for bv in biases])
    else:
        w = jnp.concatenate(taps, axis=1)
        b = jnp.concatenate(biases)
    return w.astype(MXU_DTYPE), b.astype(jnp.float32)


# --------------------- generation-aware sizing helpers -------------------------

def _tpu_info():
    try:
        kind = jax.devices()[0].device_kind.lower()
    except Exception:
        kind = ""
    try:
        vmem_cap = int(pltpu.get_tpu_info().vmem_capacity_bytes)
    except Exception:
        vmem_cap = 64 << 20            # v7x per-core VMEM: safe lower bound
    multi_tc = any(t in kind for t in ("v7", "tpu7", "v4", "v5p"))
    return vmem_cap, multi_tc


def _pick_batch_block(batch, lp, target_rows, prefer_even_grid):
    divisors = [d for d in range(1, batch + 1) if batch % d == 0]
    if prefer_even_grid:
        cand = [d for d in divisors
                if d * lp <= target_rows and (batch // d) % 2 == 0]
        if cand:
            return max(cand)
    cand = [d for d in divisors if d * lp <= target_rows]
    return max(cand) if cand else 1


# ------------------------------ pallas wrapper ---------------------------------

def deep1d_incept_forward(x, params, cfg):
    """x: (B, L, n_in_channels) -> (B, L, n_out_channels)."""
    B, L, cin = x.shape
    H = cfg['n_hidden_channels']
    glu = cfg['glu_act']
    n_blocks = cfg['n_blocks']
    n_out = params['head_b'].shape[0]

    levels = [lvl for lvl, v in enumerate(cfg['n_init_features']) if v > 0]
    p_init = max(levels)                  # pad of the widest init conv
    halo = max(p_init, 2)                 # blocks always need pad 2 (k=5)
    lp = ((L + 2 * halo + 7) // 8) * 8    # padded length per element, 8-row aligned

    # ---- pack weights / per-layer vectors (resident in VMEM for all steps) ----
    weights = []
    vecs = []
    w0, b0 = _pack_init(params['init_convs'], p_init)
    weights.append(w0)
    vecs += [b0, params['norm0_gamma'], params['norm0_beta']]
    for bp in params['blocks']:
        wk, bk = _pack_block(bp['convs'], glu, H)
        weights.append(wk)
        vecs += [bk, bp['gamma'], bp['beta']]
    weights.append(params['head_w'].astype(MXU_DTYPE))           # (n_out, 3H)
    hb = params['head_b'].reshape(n_out, 1).astype(jnp.float32)  # column bias

    vec_widths = tuple(int(v.shape[0]) for v in vecs)
    vmax = max(vec_widths)
    vec_tbl = jnp.stack([jnp.pad(v.astype(jnp.float32), (0, vmax - v.shape[0]))
                         for v in vecs])

    # ---- generation-aware slab sizing + explicit VMEM budget ------------------
    vmem_cap, multi_tc = _tpu_info()
    weight_bytes = (sum(int(w.size) * 2 for w in weights)
                    + int(vec_tbl.size) * 4 + int(hb.size) * 4)
    c0 = int(vec_widths[0])
    cmax = max(c0, (6 if glu else 3) * H, 3 * H)
    taps_max = max((2 * p_init + 1) * cin, 5 * c0, 5 * 3 * H)
    per_row = cin * 8 + taps_max * 2 + cmax * 16 + n_out * 8     # bytes / slab row

    target_rows = 1024 if multi_tc else 2048        # bigger slabs on v5e/v6e
    slab_budget = int(0.6 * vmem_cap) - 2 * weight_bytes
    if slab_budget > 0:
        target_rows = max(min(target_rows, slab_budget // per_row), lp)
    bb = _pick_batch_block(B, lp, target_rows, prefer_even_grid=multi_tc)
    rb = bb * lp                                    # rows per grid step
    steps = B // bb

    est = 2 * weight_bytes + rb * per_row
    vmem_limit = int(max(32 << 20, min(2 * est + (4 << 20), int(0.9 * vmem_cap))))

    # ---- zero-padded, row-flattened input (halo rows = conv zero padding) -----
    # TODO(synk): halo padding could be done in-kernel (DMA only real rows) to
    # skip this extra HBM pass over the (small) input.
    xpad = jnp.zeros((B, lp, cin), jnp.float32).at[:, halo:halo + L, :].set(
        x.astype(jnp.float32))
    xflat = xpad.reshape(B * lp, cin)

    roll_sign = _roll_sign()

    def run(rs, single_buffer):
        kernel = _build_fused_kernel(
            L=L, Lp=lp, halo=halo, p_init=p_init, n_blocks=n_blocks, glu=glu,
            n_hidden=H, vec_widths=vec_widths, roll_sign=rs)

        if single_buffer:
            def const_spec(shape):
                return pl.BlockSpec(shape, lambda i: (0, 0),
                                    pipeline_mode=pl.Buffered(1))
        else:
            def const_spec(shape):
                return pl.BlockSpec(shape, lambda i: (0, 0))

        in_specs = ([pl.BlockSpec((rb, cin), lambda i: (i, 0)),
                     const_spec(vec_tbl.shape), const_spec(hb.shape)]
                    + [const_spec(w.shape) for w in weights])
        out_spec = pl.BlockSpec((1, n_out, rb), lambda i: (i, 0, 0))

        return pl.pallas_call(
            kernel,
            out_shape=jax.ShapeDtypeStruct((steps, n_out, rb), jnp.float32),
            grid=(steps,),
            in_specs=in_specs,
            out_specs=out_spec,
            compiler_params=pltpu.CompilerParams(
                dimension_semantics=("parallel",),
                vmem_limit_bytes=vmem_limit),
        )(xflat, vec_tbl, hb, *weights)

    # Try the fully optimized configuration first; degrade gracefully if a
    # lowering feature (Buffered(1) weights / sublane roll) is unavailable.
    attempts = list(dict.fromkeys(
        [(roll_sign, True), (roll_sign, False), (0, False)]))
    out3 = None
    last_err = None
    for rs, buf in attempts:
        try:
            out3 = run(rs, buf)
            break
        except Exception as e:                       # fallback path
            last_err = e
    if out3 is None:
        raise last_err

    out = (out3.reshape(steps, n_out, bb, lp)
               .transpose(0, 2, 3, 1)
               .reshape(B, lp, n_out))
    return out[:, halo:halo + L, :]


# ------------------------ deterministic parameter init ------------------------

def make_params(key, cfg):
    kit = iter(jax.random.split(key, 128))

    def nrm(shape, s=0.1):
        return s * jax.random.normal(next(kit), shape, jnp.float32)

    Cin = cfg['n_in_channels']
    H = cfg['n_hidden_channels']
    out_ch = 2 * H if cfg['glu_act'] else H
    init_convs = []
    for lvl, v in enumerate(cfg['n_init_features']):
        if v > 0:
            K = 1 + 2 * lvl
            init_convs.append((nrm((v, Cin, K)), nrm((v,))))
    Ctot = sum(cfg['n_init_features'])
    params = {
        'init_convs': init_convs,
        'norm0_gamma': jnp.ones((Ctot,), jnp.float32) + nrm((Ctot,)),
        'norm0_beta': nrm((Ctot,)),
        'blocks': [],
        'head_w': nrm((cfg['n_out_channels'], 3 * H)),   # torch Linear layout (out, in)
        'head_b': nrm((cfg['n_out_channels'],)),
    }
    c_in = Ctot
    for _ in range(cfg['n_blocks']):
        convs = [(nrm((out_ch, c_in, K)), nrm((out_ch,))) for K in (1, 3, 5)]
        params['blocks'].append({
            'convs': convs,
            'gamma': jnp.ones((3 * H,), jnp.float32) + nrm((3 * H,)),
            'beta': nrm((3 * H,)),
        })
        c_in = 3 * H
    return params


# ------------------------------ pure-JAX reference ----------------------------

def _ref_conv1d(x_ncw, w, b, pad):
    out = jax.lax.conv_general_dilated(
        x_ncw, w, window_strides=(1,), padding=[(pad, pad)],
        dimension_numbers=('NCH', 'OIH', 'NCH'),
        precision=jax.lax.Precision.HIGHEST)
    return out + b[None, :, None]


def _ref_ln(x_blc, gamma, beta):
    mu = jnp.mean(x_blc, -1, keepdims=True)
    var = jnp.mean((x_blc - mu) ** 2, -1, keepdims=True)
    return (x_blc - mu) / jnp.sqrt(var + LN_EPS) * gamma + beta


def reference_forward(x, params, cfg):
    H = cfg['n_hidden_channels']
    init_ks = [1 + 2 * lvl for lvl, v in enumerate(cfg['n_init_features']) if v > 0]
    xp = jnp.transpose(x, (0, 2, 1))
    feats = [_ref_conv1d(xp, w, b, (K - 1) // 2)
             for (w, b), K in zip(params['init_convs'], init_ks)]
    h = jnp.concatenate(feats, axis=1)
    h = _ref_ln(jnp.transpose(h, (0, 2, 1)),
                params['norm0_gamma'], params['norm0_beta'])
    h = jnp.transpose(jnp.maximum(h, 0.0), (0, 2, 1))   # (B, C, L)
    for bp in params['blocks']:
        outs = []
        for (w, b), K in zip(bp['convs'], (1, 3, 5)):
            o = _ref_conv1d(h, w, b, (K - 1) // 2)
            if cfg['glu_act']:
                o = o[:, :H, :] * jax.nn.sigmoid(o[:, H:, :])
            else:
                o = jnp.maximum(o, 0.0)
            outs.append(o)
        o = jnp.concatenate(outs, axis=1)
        o = _ref_ln(jnp.transpose(o, (0, 2, 1)), bp['gamma'], bp['beta'])
        h = jnp.transpose(o, (0, 2, 1))
    x2 = jnp.maximum(jnp.transpose(h, (0, 2, 1)), 0.0)
    return x2 @ params['head_w'].T + params['head_b']


# ------------------------------------ main ------------------------------------

if __name__ == "__main__":
    cfg = dict(n_in_channels=4, n_out_channels=3, n_hidden_channels=8,
               n_blocks=2, n_init_features=(4, 4, 4), drop_rate=0.0,
               glu_act=True)
    key = jax.random.PRNGKey(0)
    kx, kp = jax.random.split(key)
    B, L = 2, 16
    x = jax.random.normal(kx, (B, L, cfg['n_in_channels']), jnp.float32)
    params = make_params(kp, cfg)

    out = jax.block_until_ready(deep1d_incept_forward(x, params, cfg))
    ref = jax.block_until_ready(reference_forward(x, params, cfg))

    assert out.shape == (B, L, cfg['n_out_channels']), out.shape
    err = float(jnp.max(jnp.abs(out - ref)))
    assert err < 5e-2, f"max abs err {err}"
    print("KERNEL_OK")
</pallas_src>

<mosaic_0001>
module attributes {stable_mosaic.version = 11 : i64} {
  func.func @probe(%arg0: memref<16x128xbf16, #tpu.memory_space<vmem>>, %arg1: memref<16x128xbf16, #tpu.memory_space<vmem>>) attributes {dimension_semantics = [], scalar_prefetch = 0 : i64, scratch_operands = 0 : i64, tpu.core_type = #tpu.core_type<tc>} {
    %c0 = arith.constant 0 : index
    %c0_0 = arith.constant 0 : index
    %0 = vector.load %arg0[%c0, %c0_0] : memref<16x128xbf16, #tpu.memory_space<vmem>>, vector<16x128xbf16>
    %c3_i32 = arith.constant 3 : i32
    %1 = tpu.dynamic_rotate %0 by %c3_i32 dim 0 : vector<16x128xbf16>, i32 -> vector<16x128xbf16>
    %c0_1 = arith.constant 0 : index
    %c0_2 = arith.constant 0 : index
    %2 = vector.load %arg1[%c0_1, %c0_2] : memref<16x128xbf16, #tpu.memory_space<vmem>>, vector<16x128xbf16>
    tpu.vector_store %arg1[%c0_1, %c0_2], %1 {strides = array<i32>} : memref<16x128xbf16, #tpu.memory_space<vmem>>, vector<16x128xbf16>,
    return
  }
}

module attributes {stable_mosaic.version = 11 : i64} {
  func.func @kernel(%arg0: i32, %arg1: memref<48x4xf32, #tpu.memory_space<vmem>>, %arg2: memref<9x48xf32, #tpu.memory_space<vmem>>, %arg3: memref<3x1xf32, #tpu.memory_space<vmem>>, %arg4: memref<20x12xbf16, #tpu.memory_space<vmem>>, %arg5: memref<60x48xbf16, #tpu.memory_space<vmem>>, %arg6: memref<120x48xbf16, #tpu.memory_space<vmem>>, %arg7: memref<3x24xbf16, #tpu.memory_space<vmem>>, %arg8: memref<1x3x48xf32, #tpu.memory_space<vmem>>) attributes {dimension_semantics = [#tpu.dimension_semantics<parallel>], iteration_bounds = array<i64: 1>, scalar_prefetch = 0 : i64, scratch_operands = 0 : i64, tpu.core_type = #tpu.core_type<tc>, window_params = [{transform_indices = @transform_0, window_bounds = array<i64: 48, 4>}, {pipeline_mode = #tpu.pipeline_mode<synchronous>, transform_indices = @transform_1, window_bounds = array<i64: 9, 48>}, {pipeline_mode = #tpu.pipeline_mode<synchronous>, transform_indices = @transform_2, window_bounds = array<i64: 3, 1>}, {pipeline_mode = #tpu.pipeline_mode<synchronous>, transform_indices = @transform_3, window_bounds = array<i64: 20, 12>}, {pipeline_mode = #tpu.pipeline_mode<synchronous>, transform_indices = @transform_4, window_bounds = array<i64: 60, 48>}, {pipeline_mode = #tpu.pipeline_mode<synchronous>, transform_indices = @transform_5, window_bounds = array<i64: 120, 48>}, {pipeline_mode = #tpu.pipeline_mode<synchronous>, transform_indices = @transform_6, window_bounds = array<i64: 3, 24>}, {transform_indices = @transform_7, window_bounds = array<i64: 1, 3, 48>}]} {
    %0 = tpu.iota {dimensions = array<i32: 0>} : vector<48x1xi32>
    %c24_i32 = arith.constant 24 : i32
    %c0_i32 = arith.constant 0 : i32
    %1 = arith.cmpi eq, %c24_i32, %c0_i32 : i32
    %c1_i32 = arith.constant 1 : i32
    %2 = arith.select %1, %c1_i32, %c24_i32 : i32
    %3 = vector.broadcast %2 : i32 to vector<48x1xi32>
    %4 = arith.remsi %0, %3 : vector<48x1xi32>
    %c0_i32_0 = arith.constant 0 : i32
    %5 = vector.broadcast %c0_i32_0 : i32 to vector<48x1xi32>
    %6 = arith.cmpi ne, %4, %5 : vector<48x1xi32>
    %c0_i32_1 = arith.constant 0 : i32
    %7 = vector.broadcast %c0_i32_1 : i32 to vector<48x1xi32>
    %8 = arith.cmpi slt, %4, %7 : vector<48x1xi32>
    %c0_i32_2 = arith.constant 0 : i32
    %9 = arith.cmpi slt, %2, %c0_i32_2 : i32
    %10 = vector.broadcast %9 : i1 to vector<48x1xi1>
    %11 = vector.broadcast %10 : vector<48x1xi1> to vector<48x1xi1>
    %12 = arith.xori %8, %11 : vector<48x1xi1>
    %13 = arith.andi %12, %6 : vector<48x1xi1>
    %14 = vector.broadcast %2 : i32 to vector<48x1xi32>
    %15 = arith.addi %4, %14 : vector<48x1xi32>
    %16 = arith.select %13, %15, %4 : vector<48x1xi1>, vector<48x1xi32>
    %c2_i32 = arith.constant 2 : i32
    %17 = vector.broadcast %c2_i32 : i32 to vector<48x1xi32>
    %18 = arith.cmpi sge, %16, %17 : vector<48x1xi32>
    %c18_i32 = arith.constant 18 : i32
    %19 = vector.broadcast %c18_i32 : i32 to vector<48x1xi32>
    %20 = arith.cmpi slt, %16, %19 : vector<48x1xi32>
    %21 = arith.andi %18, %20 : vector<48x1xi1>
    %22 = arith.extui %21 : vector<48x1xi1> to vector<48x1xi32>
    %23 = arith.sitofp %22 : vector<48x1xi32> to vector<48x1xf32>
    %c0 = arith.constant 0 : index
    %c0_3 = arith.constant 0 : index
    %24 = vector.load %arg1[%c0, %c0_3] : memref<48x4xf32, #tpu.memory_space<vmem>>, vector<48x4xf32>
    %cst = arith.constant 0.000000e+00 : f32
    %25 = vector.broadcast %cst : f32 to vector<2x4xf32>
    %26 = tpu.concatenate %25, %24, %25 in 0 : vector<2x4xf32>, vector<48x4xf32>, vector<2x4xf32> -> vector<52x4xf32>
    %27 = vector.extract_strided_slice %26 {offsets = [0, 0], sizes = [48, 4], strides = [1, 1]} : vector<52x4xf32> to vector<48x4xf32>
    %28 = vector.extract_strided_slice %26 {offsets = [1, 0], sizes = [48, 4], strides = [1, 1]} : vector<52x4xf32> to vector<48x4xf32>
    %29 = vector.extract_strided_slice %26 {offsets = [2, 0], sizes = [48, 4], strides = [1, 1]} : vector<52x4xf32> to vector<48x4xf32>
    %30 = vector.extract_strided_slice %26 {offsets = [3, 0], sizes = [48, 4], strides = [1, 1]} : vector<52x4xf32> to vector<48x4xf32>
    %31 = vector.extract_strided_slice %26 {offsets = [4, 0], sizes = [48, 4], strides = [1, 1]} : vector<52x4xf32> to vector<48x4xf32>
    %32 = tpu.concatenate %27, %28, %29, %30, %31 in 1 : vector<48x4xf32>, vector<48x4xf32>, vector<48x4xf32>, vector<48x4xf32>, vector<48x4xf32> -> vector<48x20xf32>
    %33 = arith.truncf %32 : vector<48x20xf32> to vector<48x20xbf16>
    %c0_4 = arith.constant 0 : index
    %c0_5 = arith.constant 0 : index
    %34 = vector.load %arg4[%c0_4, %c0_5] : memref<20x12xbf16, #tpu.memory_space<vmem>>, vector<20x12xbf16>
    %cst_6 = arith.constant dense<0.000000e+00> : vector<48x12xf32>
    %35 = tpu.matmul %33, %34, %cst_6 {dimension_numbers = #tpu.dot_dimension_numbers<[1], [0], [0], [1], [0, 0, 1, 1], [], []>} : vector<48x20xbf16>, vector<20x12xbf16>, vector<48x12xf32> -> vector<48x12xf32>
    %c0_7 = arith.constant 0 : index
    %c0_8 = arith.constant 0 : index
    %36 = vector.load %arg2[%c0_7, %c0_8] : memref<9x48xf32, #tpu.memory_space<vmem>>, vector<1x12xf32>
    %37 = vector.broadcast %36 : vector<1x12xf32> to vector<48x12xf32>
    %38 = arith.addf %35, %37 : vector<48x12xf32>
    %c1 = arith.constant 1 : index
    %c0_9 = arith.constant 0 : index
    %39 = vector.load %arg2[%c1, %c0_9] : memref<9x48xf32, #tpu.memory_space<vmem>>, vector<1x12xf32>
    %c2 = arith.constant 2 : index
    %c0_10 = arith.constant 0 : index
    %40 = vector.load %arg2[%c2, %c0_10] : memref<9x48xf32, #tpu.memory_space<vmem>>, vector<1x12xf32>
    %cst_11 = arith.constant dense<0.000000e+00> : vector<48xf32>
    %41 = vector.multi_reduction <add>, %38, %cst_11 [1] : vector<48x12xf32> to vector<48xf32>
    %42 = vector.shape_cast %41 : vector<48xf32> to vector<48x1xf32>
    %cst_12 = arith.constant 1.200000e+01 : f32
    %43 = vector.broadcast %cst_12 : f32 to vector<48x1xf32>
    %44 = arith.divf %42, %43 : vector<48x1xf32>
    %45 = arith.mulf %38, %38 : vector<48x12xf32>
    %cst_13 = arith.constant dense<0.000000e+00> : vector<48xf32>
    %46 = vector.multi_reduction <add>, %45, %cst_13 [1] : vector<48x12xf32> to vector<48xf32>
    %47 = vector.shape_cast %46 : vector<48xf32> to vector<48x1xf32>
    %cst_14 = arith.constant 1.200000e+01 : f32
    %48 = vector.broadcast %cst_14 : f32 to vector<48x1xf32>
    %49 = arith.divf %47, %48 : vector<48x1xf32>
    %50 = arith.mulf %44, %44 : vector<48x1xf32>
    %51 = arith.subf %49, %50 : vector<48x1xf32>
    %cst_15 = arith.constant 0.000000e+00 : f32
    %52 = vector.broadcast %cst_15 : f32 to vector<48x1xf32>
    %53 = arith.maximumf %51, %52 : vector<48x1xf32>
    %54 = vector.broadcast %44 : vector<48x1xf32> to vector<48x12xf32>
    %55 = arith.subf %38, %54 : vector<48x12xf32>
    %cst_16 = arith.constant 9.99999974E-6 : f32
    %56 = vector.broadcast %cst_16 : f32 to vector<48x1xf32>
    %57 = arith.addf %53, %56 : vector<48x1xf32>
    %58 = math.rsqrt %57 : vector<48x1xf32>
    %59 = vector.broadcast %58 : vector<48x1xf32> to vector<48x12xf32>
    %60 = arith.mulf %55, %59 : vector<48x12xf32>
    %61 = vector.broadcast %39 : vector<1x12xf32> to vector<48x12xf32>
    %62 = arith.mulf %60, %61 : vector<48x12xf32>
    %63 = vector.broadcast %40 : vector<1x12xf32> to vector<48x12xf32>
    %64 = arith.addf %62, %63 : vector<48x12xf32>
    %cst_17 = arith.constant 0.000000e+00 : f32
    %65 = vector.broadcast %cst_17 : f32 to vector<48x12xf32>
    %66 = arith.maximumf %64, %65 : vector<48x12xf32>
    %67 = vector.broadcast %23 : vector<48x1xf32> to vector<48x12xf32>
    %68 = arith.mulf %66, %67 : vector<48x12xf32>
    %cst_18 = arith.constant 0.000000e+00 : f32
    %69 = vector.broadcast %cst_18 : f32 to vector<2x12xf32>
    %70 = tpu.concatenate %69, %68, %69 in 0 : vector<2x12xf32>, vector<48x12xf32>, vector<2x12xf32> -> vector<52x12xf32>
    %71 = vector.extract_strided_slice %70 {offsets = [0, 0], sizes = [48, 12], strides = [1, 1]} : vector<52x12xf32> to vector<48x12xf32>
    %72 = vector.extract_strided_slice %70 {offsets = [1, 0], sizes = [48, 12], strides = [1, 1]} : vector<52x12xf32> to vector<48x12xf32>
    %73 = vector.extract_strided_slice %70 {offsets = [2, 0], sizes = [48, 12], strides = [1, 1]} : vector<52x12xf32> to vector<48x12xf32>
    %74 = vector.extract_strided_slice %70 {offsets = [3, 0], sizes = [48, 12], strides = [1, 1]} : vector<52x12xf32> to vector<48x12xf32>
    %75 = vector.extract_strided_slice %70 {offsets = [4, 0], sizes = [48, 12], strides = [1, 1]} : vector<52x12xf32> to vector<48x12xf32>
    %76 = tpu.concatenate %71, %72, %73, %74, %75 in 1 : vector<48x12xf32>, vector<48x12xf32>, vector<48x12xf32>, vector<48x12xf32>, vector<48x12xf32> -> vector<48x60xf32>
    %77 = arith.truncf %76 : vector<48x60xf32> to vector<48x60xbf16>
    %c0_19 = arith.constant 0 : index
    %c0_20 = arith.constant 0 : index
    %78 = vector.load %arg5[%c0_19, %c0_20] : memref<60x48xbf16, #tpu.memory_space<vmem>>, vector<60x48xbf16>
    %cst_21 = arith.constant dense<0.000000e+00> : vector<48x48xf32>
    %79 = tpu.matmul %77, %78, %cst_21 {dimension_numbers = #tpu.dot_dimension_numbers<[1], [0], [0], [1], [0, 0, 1, 1], [], []>} : vector<48x60xbf16>, vector<60x48xbf16>, vector<48x48xf32> -> vector<48x48xf32>
    %c3 = arith.constant 3 : index
    %c0_22 = arith.constant 0 : index
    %80 = vector.load %arg2[%c3, %c0_22] : memref<9x48xf32, #tpu.memory_space<vmem>>, vector<1x48xf32>
    %81 = vector.broadcast %80 : vector<1x48xf32> to vector<48x48xf32>
    %82 = arith.addf %79, %81 : vector<48x48xf32>
    %83 = vector.extract_strided_slice %82 {offsets = [0, 0], sizes = [48, 24], strides = [1, 1]} : vector<48x48xf32> to vector<48x24xf32>
    %84 = vector.extract_strided_slice %82 {offsets = [0, 24], sizes = [48, 24], strides = [1, 1]} : vector<48x48xf32> to vector<48x24xf32>
    %85 = arith.negf %84 : vector<48x24xf32>
    %86 = math.exp %85 : vector<48x24xf32>
    %cst_23 = arith.constant 1.000000e+00 : f32
    %87 = vector.broadcast %cst_23 : f32 to vector<48x24xf32>
    %88 = arith.addf %87, %86 : vector<48x24xf32>
    %89 = arith.divf %87, %88 : vector<48x24xf32>
    %90 = arith.mulf %83, %89 : vector<48x24xf32>
    %c4 = arith.constant 4 : index
    %c0_24 = arith.constant 0 : index
    %91 = vector.load %arg2[%c4, %c0_24] : memref<9x48xf32, #tpu.memory_space<vmem>>, vector<1x24xf32>
    %c5 = arith.constant 5 : index
    %c0_25 = arith.constant 0 : index
    %92 = vector.load %arg2[%c5, %c0_25] : memref<9x48xf32, #tpu.memory_space<vmem>>, vector<1x24xf32>
    %cst_26 = arith.constant dense<0.000000e+00> : vector<48xf32>
    %93 = vector.multi_reduction <add>, %90, %cst_26 [1] : vector<48x24xf32> to vector<48xf32>
    %94 = vector.shape_cast %93 : vector<48xf32> to vector<48x1xf32>
    %cst_27 = arith.constant 2.400000e+01 : f32
    %95 = vector.broadcast %cst_27 : f32 to vector<48x1xf32>
    %96 = arith.divf %94, %95 : vector<48x1xf32>
    %97 = arith.mulf %90, %90 : vector<48x24xf32>
    %cst_28 = arith.constant dense<0.000000e+00> : vector<48xf32>
    %98 = vector.multi_reduction <add>, %97, %cst_28 [1] : vector<48x24xf32> to vector<48xf32>
    %99 = vector.shape_cast %98 : vector<48xf32> to vector<48x1xf32>
    %cst_29 = arith.constant 2.400000e+01 : f32
    %100 = vector.broadcast %cst_29 : f32 to vector<48x1xf32>
    %101 = arith.divf %99, %100 : vector<48x1xf32>
    %102 = arith.mulf %96, %96 : vector<48x1xf32>
    %103 = arith.subf %101, %102 : vector<48x1xf32>
    %cst_30 = arith.constant 0.000000e+00 : f32
    %104 = vector.broadcast %cst_30 : f32 to vector<48x1xf32>
    %105 = arith.maximumf %103, %104 : vector<48x1xf32>
    %106 = vector.broadcast %96 : vector<48x1xf32> to vector<48x24xf32>
    %107 = arith.subf %90, %106 : vector<48x24xf32>
    %cst_31 = arith.constant 9.99999974E-6 : f32
    %108 = vector.broadcast %cst_31 : f32 to vector<48x1xf32>
    %109 = arith.addf %105, %108 : vector<48x1xf32>
    %110 = math.rsqrt %109 : vector<48x1xf32>
    %111 = vector.broadcast %110 : vector<48x1xf32> to vector<48x24xf32>
    %112 = arith.mulf %107, %111 : vector<48x24xf32>
    %113 = vector.broadcast %91 : vector<1x24xf32> to vector<48x24xf32>
    %114 = arith.mulf %112, %113 : vector<48x24xf32>
    %115 = vector.broadcast %92 : vector<1x24xf32> to vector<48x24xf32>
    %116 = arith.addf %114, %115 : vector<48x24xf32>
    %117 = vector.broadcast %23 : vector<48x1xf32> to vector<48x24xf32>
    %118 = arith.mulf %116, %117 : vector<48x24xf32>
    %cst_32 = arith.constant 0.000000e+00 : f32
    %119 = vector.broadcast %cst_32 : f32 to vector<2x24xf32>
    %120 = tpu.concatenate %119, %118, %119 in 0 : vector<2x24xf32>, vector<48x24xf32>, vector<2x24xf32> -> vector<52x24xf32>
    %121 = vector.extract_strided_slice %120 {offsets = [0, 0], sizes = [48, 24], strides = [1, 1]} : vector<52x24xf32> to vector<48x24xf32>
    %122 = vector.extract_strided_slice %120 {offsets = [1, 0], sizes = [48, 24], strides = [1, 1]} : vector<52x24xf32> to vector<48x24xf32>
    %123 = vector.extract_strided_slice %120 {offsets = [2, 0], sizes = [48, 24], strides = [1, 1]} : vector<52x24xf32> to vector<48x24xf32>
    %124 = vector.extract_strided_slice %120 {offsets = [3, 0], sizes = [48, 24], strides = [1, 1]} : vector<52x24xf32> to vector<48x24xf32>
    %125 = vector.extract_strided_slice %120 {offsets = [4, 0], sizes = [48, 24], strides = [1, 1]} : vector<52x24xf32> to vector<48x24xf32>
    %126 = tpu.concatenate %121, %122, %123, %124, %125 in 1 : vector<48x24xf32>, vector<48x24xf32>, vector<48x24xf32>, vector<48x24xf32>, vector<48x24xf32> -> vector<48x120xf32>
    %127 = arith.truncf %126 : vector<48x120xf32> to vector<48x120xbf16>
    %c0_33 = arith.constant 0 : index
    %c0_34 = arith.constant 0 : index
    %128 = vector.load %arg6[%c0_33, %c0_34] : memref<120x48xbf16, #tpu.memory_space<vmem>>, vector<120x48xbf16>
    %cst_35 = arith.constant dense<0.000000e+00> : vector<48x48xf32>
    %129 = tpu.matmul %127, %128, %cst_35 {dimension_numbers = #tpu.dot_dimension_numbers<[1], [0], [0], [1], [0, 0, 1, 1], [], []>} : vector<48x120xbf16>, vector<120x48xbf16>, vector<48x48xf32> -> vector<48x48xf32>
    %c6 = arith.constant 6 : index
    %c0_36 = arith.constant 0 : index
    %130 = vector.load %arg2[%c6, %c0_36] : memref<9x48xf32, #tpu.memory_space<vmem>>, vector<1x48xf32>
    %131 = vector.broadcast %130 : vector<1x48xf32> to vector<48x48xf32>
    %132 = arith.addf %129, %131 : vector<48x48xf32>
    %133 = vector.extract_strided_slice %132 {offsets = [0, 0], sizes = [48, 24], strides = [1, 1]} : vector<48x48xf32> to vector<48x24xf32>
    %134 = vector.extract_strided_slice %132 {offsets = [0, 24], sizes = [48, 24], strides = [1, 1]} : vector<48x48xf32> to vector<48x24xf32>
    %135 = arith.negf %134 : vector<48x24xf32>
    %136 = math.exp %135 : vector<48x24xf32>
    %cst_37 = arith.constant 1.000000e+00 : f32
    %137 = vector.broadcast %cst_37 : f32 to vector<48x24xf32>
    %138 = arith.addf %137, %136 : vector<48x24xf32>
    %139 = arith.divf %137, %138 : vector<48x24xf32>
    %140 = arith.mulf %133, %139 : vector<48x24xf32>
    %c7 = arith.constant 7 : index
    %c0_38 = arith.constant 0 : index
    %141 = vector.load %arg2[%c7, %c0_38] : memref<9x48xf32, #tpu.memory_space<vmem>>, vector<1x24xf32>
    %c8 = arith.constant 8 : index
    %c0_39 = arith.constant 0 : index
    %142 = vector.load %arg2[%c8, %c0_39] : memref<9x48xf32, #tpu.memory_space<vmem>>, vector<1x24xf32>
    %cst_40 = arith.constant dense<0.000000e+00> : vector<48xf32>
    %143 = vector.multi_reduction <add>, %140, %cst_40 [1] : vector<48x24xf32> to vector<48xf32>
    %144 = vector.shape_cast %143 : vector<48xf32> to vector<48x1xf32>
    %cst_41 = arith.constant 2.400000e+01 : f32
    %145 = vector.broadcast %cst_41 : f32 to vector<48x1xf32>
    %146 = arith.divf %144, %145 : vector<48x1xf32>
    %147 = arith.mulf %140, %140 : vector<48x24xf32>
    %cst_42 = arith.constant dense<0.000000e+00> : vector<48xf32>
    %148 = vector.multi_reduction <add>, %147, %cst_42 [1] : vector<48x24xf32> to vector<48xf32>
    %149 = vector.shape_cast %148 : vector<48xf32> to vector<48x1xf32>
    %cst_43 = arith.constant 2.400000e+01 : f32
    %150 = vector.broadcast %cst_43 : f32 to vector<48x1xf32>
    %151 = arith.divf %149, %150 : vector<48x1xf32>
    %152 = arith.mulf %146, %146 : vector<48x1xf32>
    %153 = arith.subf %151, %152 : vector<48x1xf32>
    %cst_44 = arith.constant 0.000000e+00 : f32
    %154 = vector.broadcast %cst_44 : f32 to vector<48x1xf32>
    %155 = arith.maximumf %153, %154 : vector<48x1xf32>
    %156 = vector.broadcast %146 : vector<48x1xf32> to vector<48x24xf32>
    %157 = arith.subf %140, %156 : vector<48x24xf32>
    %cst_45 = arith.constant 9.99999974E-6 : f32
    %158 = vector.broadcast %cst_45 : f32 to vector<48x1xf32>
    %159 = arith.addf %155, %158 : vector<48x1xf32>
    %160 = math.rsqrt %159 : vector<48x1xf32>
    %161 = vector.broadcast %160 : vector<48x1xf32> to vector<48x24xf32>
    %162 = arith.mulf %157, %161 : vector<48x24xf32>
    %163 = vector.broadcast %141 : vector<1x24xf32> to vector<48x24xf32>
    %164 = arith.mulf %162, %163 : vector<48x24xf32>
    %165 = vector.broadcast %142 : vector<1x24xf32> to vector<48x24xf32>
    %166 = arith.addf %164, %165 : vector<48x24xf32>
    %167 = vector.broadcast %23 : vector<48x1xf32> to vector<48x24xf32>
    %168 = arith.mulf %166, %167 : vector<48x24xf32>
    %cst_46 = arith.constant 0.000000e+00 : f32
    %169 = vector.broadcast %cst_46 : f32 to vector<48x24xf32>
    %170 = arith.maximumf %168, %169 : vector<48x24xf32>
    %171 = arith.truncf %170 : vector<48x24xf32> to vector<48x24xbf16>
    %c0_47 = arith.constant 0 : index
    %c0_48 = arith.constant 0 : index
    %172 = vector.load %arg7[%c0_47, %c0_48] : memref<3x24xbf16, #tpu.memory_space<vmem>>, vector<3x24xbf16>
    %cst_49 = arith.constant dense<0.000000e+00> : vector<3x48xf32>
    %173 = tpu.matmul %172, %171, %cst_49 {dimension_numbers = #tpu.dot_dimension_numbers<[1], [1], [0], [0], [0, 0, 1, 0], [], []>} : vector<3x24xbf16>, vector<48x24xbf16>, vector<3x48xf32> -> vector<3x48xf32>
    %c0_50 = arith.constant 0 : index
    %c0_51 = arith.constant 0 : index
    %174 = vector.load %arg3[%c0_50, %c0_51] : memref<3x1xf32, #tpu.memory_space<vmem>>, vector<3x1xf32>
    %175 = vector.broadcast %174 : vector<3x1xf32> to vector<3x48xf32>
    %176 = arith.addf %173, %175 : vector<3x48xf32>
    %c0_52 = arith.constant 0 : index
    %c0_53 = arith.constant 0 : index
    %c0_54 = arith.constant 0 : index
    %177 = vector.load %arg8[%c0_52, %c0_53, %c0_54] : memref<1x3x48xf32, #tpu.memory_space<vmem>>, vector<1x3x48xf32>
    %178 = vector.shape_cast %177 : vector<1x3x48xf32> to vector<3x48xf32>
    %179 = vector.shape_cast %176 : vector<3x48xf32> to vector<1x3x48xf32>
    tpu.vector_store %arg8[%c0_52, %c0_53, %c0_54], %179 {strides = array<i32>} : memref<1x3x48xf32, #tpu.memory_space<vmem>>, vector<1x3x48xf32>,
    return
  }
  func.func @transform_0(%arg0: i32) -> (i32, i32) {
    %c0_i32 = arith.constant 0 : i32
    %c0_i32_0 = arith.constant 0 : i32
    return %arg0, %c0_i32 : i32, i32
  }
  func.func @transform_1(%arg0: i32) -> (i32, i32) {
    %c0_i32 = arith.constant 0 : i32
    %c0_i32_0 = arith.constant 0 : i32
    %c0_i32_1 = arith.constant 0 : i32
    return %c0_i32, %c0_i32_0 : i32, i32
  }
  func.func @transform_2(%arg0: i32) -> (i32, i32) {
    %c0_i32 = arith.constant 0 : i32
    %c0_i32_0 = arith.constant 0 : i32
    %c0_i32_1 = arith.constant 0 : i32
    return %c0_i32, %c0_i32_0 : i32, i32
  }
  func.func @transform_3(%arg0: i32) -> (i32, i32) {
    %c0_i32 = arith.constant 0 : i32
    %c0_i32_0 = arith.constant 0 : i32
    %c0_i32_1 = arith.constant 0 : i32
    return %c0_i32, %c0_i32_0 : i32, i32
  }
  func.func @transform_4(%arg0: i32) -> (i32, i32) {
    %c0_i32 = arith.constant 0 : i32
    %c0_i32_0 = arith.constant 0 : i32
    %c0_i32_1 = arith.constant 0 : i32
    return %c0_i32, %c0_i32_0 : i32, i32
  }
  func.func @transform_5(%arg0: i32) -> (i32, i32) {
    %c0_i32 = arith.constant 0 : i32
    %c0_i32_0 = arith.constant 0 : i32
    %c0_i32_1 = arith.constant 0 : i32
    return %c0_i32, %c0_i32_0 : i32, i32
  }
  func.func @transform_6(%arg0: i32) -> (i32, i32) {
    %c0_i32 = arith.constant 0 : i32
    %c0_i32_0 = arith.constant 0 : i32
    %c0_i32_1 = arith.constant 0 : i32
    return %c0_i32, %c0_i32_0 : i32, i32
  }
  func.func @transform_7(%arg0: i32) -> (i32, i32, i32) {
    %c0_i32 = arith.constant 0 : i32
    %c0_i32_0 = arith.constant 0 : i32
    %c0_i32_1 = arith.constant 0 : i32
    return %arg0, %c0_i32, %c0_i32_0 : i32, i32, i32
  }
}

module attributes {stable_mosaic.version = 11 : i64} {
  func.func @kernel(%arg0: i32, %arg1: memref<48x4xf32, #tpu.memory_space<vmem>>, %arg2: memref<9x48xf32, #tpu.memory_space<vmem>>, %arg3: memref<3x1xf32, #tpu.memory_space<vmem>>, %arg4: memref<20x12xbf16, #tpu.memory_space<vmem>>, %arg5: memref<60x48xbf16, #tpu.memory_space<vmem>>, %arg6: memref<120x48xbf16, #tpu.memory_space<vmem>>, %arg7: memref<3x24xbf16, #tpu.memory_space<vmem>>, %arg8: memref<1x3x48xf32, #tpu.memory_space<vmem>>) attributes {dimension_semantics = [#tpu.dimension_semantics<parallel>], iteration_bounds = array<i64: 1>, scalar_prefetch = 0 : i64, scratch_operands = 0 : i64, tpu.core_type = #tpu.core_type<tc>, window_params = [{transform_indices = @transform_0, window_bounds = array<i64: 48, 4>}, {pipeline_mode = #tpu.pipeline_mode<synchronous>, transform_indices = @transform_1, window_bounds = array<i64: 9, 48>}, {pipeline_mode = #tpu.pipeline_mode<synchronous>, transform_indices = @transform_2, window_bounds = array<i64: 3, 1>}, {pipeline_mode = #tpu.pipeline_mode<synchronous>, transform_indices = @transform_3, window_bounds = array<i64: 20, 12>}, {pipeline_mode = #tpu.pipeline_mode<synchronous>, transform_indices = @transform_4, window_bounds = array<i64: 60, 48>}, {pipeline_mode = #tpu.pipeline_mode<synchronous>, transform_indices = @transform_5, window_bounds = array<i64: 120, 48>}, {pipeline_mode = #tpu.pipeline_mode<synchronous>, transform_indices = @transform_6, window_bounds = array<i64: 3, 24>}, {transform_indices = @transform_7, window_bounds = array<i64: 1, 3, 48>}]} {
    %0 = tpu.iota {dimensions = array<i32: 0>} : vector<48x1xi32>
    %c24_i32 = arith.constant 24 : i32
    %c0_i32 = arith.constant 0 : i32
    %1 = arith.cmpi eq, %c24_i32, %c0_i32 : i32
    %c1_i32 = arith.constant 1 : i32
    %2 = arith.select %1, %c1_i32, %c24_i32 : i32
    %3 = vector.broadcast %2 : i32 to vector<48x1xi32>
    %4 = arith.remsi %0, %3 : vector<48x1xi32>
    %c0_i32_0 = arith.constant 0 : i32
    %5 = vector.broadcast %c0_i32_0 : i32 to vector<48x1xi32>
    %6 = arith.cmpi ne, %4, %5 : vector<48x1xi32>
    %c0_i32_1 = arith.constant 0 : i32
    %7 = vector.broadcast %c0_i32_1 : i32 to vector<48x1xi32>
    %8 = arith.cmpi slt, %4, %7 : vector<48x1xi32>
    %c0_i32_2 = arith.constant 0 : i32
    %9 = arith.cmpi slt, %2, %c0_i32_2 : i32
    %10 = vector.broadcast %9 : i1 to vector<48x1xi1>
    %11 = vector.broadcast %10 : vector<48x1xi1> to vector<48x1xi1>
    %12 = arith.xori %8, %11 : vector<48x1xi1>
    %13 = arith.andi %12, %6 : vector<48x1xi1>
    %14 = vector.broadcast %2 : i32 to vector<48x1xi32>
    %15 = arith.addi %4, %14 : vector<48x1xi32>
    %16 = arith.select %13, %15, %4 : vector<48x1xi1>, vector<48x1xi32>
    %c2_i32 = arith.constant 2 : i32
    %17 = vector.broadcast %c2_i32 : i32 to vector<48x1xi32>
    %18 = arith.cmpi sge, %16, %17 : vector<48x1xi32>
    %c18_i32 = arith.constant 18 : i32
    %19 = vector.broadcast %c18_i32 : i32 to vector<48x1xi32>
    %20 = arith.cmpi slt, %16, %19 : vector<48x1xi32>
    %21 = arith.andi %18, %20 : vector<48x1xi1>
    %22 = arith.extui %21 : vector<48x1xi1> to vector<48x1xi32>
    %23 = arith.sitofp %22 : vector<48x1xi32> to vector<48x1xf32>
    %c0 = arith.constant 0 : index
    %c0_3 = arith.constant 0 : index
    %24 = vector.load %arg1[%c0, %c0_3] : memref<48x4xf32, #tpu.memory_space<vmem>>, vector<48x4xf32>
    %cst = arith.constant 0.000000e+00 : f32
    %25 = vector.broadcast %cst : f32 to vector<2x4xf32>
    %26 = tpu.concatenate %25, %24, %25 in 0 : vector<2x4xf32>, vector<48x4xf32>, vector<2x4xf32> -> vector<52x4xf32>
    %27 = vector.extract_strided_slice %26 {offsets = [0, 0], sizes = [48, 4], strides = [1, 1]} : vector<52x4xf32> to vector<48x4xf32>
    %28 = vector.extract_strided_slice %26 {offsets = [1, 0], sizes = [48, 4], strides = [1, 1]} : vector<52x4xf32> to vector<48x4xf32>
    %29 = vector.extract_strided_slice %26 {offsets = [2, 0], sizes = [48, 4], strides = [1, 1]} : vector<52x4xf32> to vector<48x4xf32>
    %30 = vector.extract_strided_slice %26 {offsets = [3, 0], sizes = [48, 4], strides = [1, 1]} : vector<52x4xf32> to vector<48x4xf32>
    %31 = vector.extract_strided_slice %26 {offsets = [4, 0], sizes = [48, 4], strides = [1, 1]} : vector<52x4xf32> to vector<48x4xf32>
    %32 = tpu.concatenate %27, %28, %29, %30, %31 in 1 : vector<48x4xf32>, vector<48x4xf32>, vector<48x4xf32>, vector<48x4xf32>, vector<48x4xf32> -> vector<48x20xf32>
    %33 = arith.truncf %32 : vector<48x20xf32> to vector<48x20xbf16>
    %c0_4 = arith.constant 0 : index
    %c0_5 = arith.constant 0 : index
    %34 = vector.load %arg4[%c0_4, %c0_5] : memref<20x12xbf16, #tpu.memory_space<vmem>>, vector<20x12xbf16>
    %cst_6 = arith.constant dense<0.000000e+00> : vector<48x12xf32>
    %35 = tpu.matmul %33, %34, %cst_6 {dimension_numbers = #tpu.dot_dimension_numbers<[1], [0], [0], [1], [0, 0, 1, 1], [], []>} : vector<48x20xbf16>, vector<20x12xbf16>, vector<48x12xf32> -> vector<48x12xf32>
    %c0_7 = arith.constant 0 : index
    %c0_8 = arith.constant 0 : index
    %36 = vector.load %arg2[%c0_7, %c0_8] : memref<9x48xf32, #tpu.memory_space<vmem>>, vector<1x12xf32>
    %37 = vector.broadcast %36 : vector<1x12xf32> to vector<48x12xf32>
    %38 = arith.addf %35, %37 : vector<48x12xf32>
    %c1 = arith.constant 1 : index
    %c0_9 = arith.constant 0 : index
    %39 = vector.load %arg2[%c1, %c0_9] : memref<9x48xf32, #tpu.memory_space<vmem>>, vector<1x12xf32>
    %c2 = arith.constant 2 : index
    %c0_10 = arith.constant 0 : index
    %40 = vector.load %arg2[%c2, %c0_10] : memref<9x48xf32, #tpu.memory_space<vmem>>, vector<1x12xf32>
    %cst_11 = arith.constant dense<0.000000e+00> : vector<48xf32>
    %41 = vector.multi_reduction <add>, %38, %cst_11 [1] : vector<48x12xf32> to vector<48xf32>
    %42 = vector.shape_cast %41 : vector<48xf32> to vector<48x1xf32>
    %cst_12 = arith.constant 1.200000e+01 : f32
    %43 = vector.broadcast %cst_12 : f32 to vector<48x1xf32>
    %44 = arith.divf %42, %43 : vector<48x1xf32>
    %45 = arith.mulf %38, %38 : vector<48x12xf32>
    %cst_13 = arith.constant dense<0.000000e+00> : vector<48xf32>
    %46 = vector.multi_reduction <add>, %45, %cst_13 [1] : vector<48x12xf32> to vector<48xf32>
    %47 = vector.shape_cast %46 : vector<48xf32> to vector<48x1xf32>
    %cst_14 = arith.constant 1.200000e+01 : f32
    %48 = vector.broadcast %cst_14 : f32 to vector<48x1xf32>
    %49 = arith.divf %47, %48 : vector<48x1xf32>
    %50 = arith.mulf %44, %44 : vector<48x1xf32>
    %51 = arith.subf %49, %50 : vector<48x1xf32>
    %cst_15 = arith.constant 0.000000e+00 : f32
    %52 = vector.broadcast %cst_15 : f32 to vector<48x1xf32>
    %53 = arith.maximumf %51, %52 : vector<48x1xf32>
    %54 = vector.broadcast %44 : vector<48x1xf32> to vector<48x12xf32>
    %55 = arith.subf %38, %54 : vector<48x12xf32>
    %cst_16 = arith.constant 9.99999974E-6 : f32
    %56 = vector.broadcast %cst_16 : f32 to vector<48x1xf32>
    %57 = arith.addf %53, %56 : vector<48x1xf32>
    %58 = math.rsqrt %57 : vector<48x1xf32>
    %59 = vector.broadcast %58 : vector<48x1xf32> to vector<48x12xf32>
    %60 = arith.mulf %55, %59 : vector<48x12xf32>
    %61 = vector.broadcast %39 : vector<1x12xf32> to vector<48x12xf32>
    %62 = arith.mulf %60, %61 : vector<48x12xf32>
    %63 = vector.broadcast %40 : vector<1x12xf32> to vector<48x12xf32>
    %64 = arith.addf %62, %63 : vector<48x12xf32>
    %cst_17 = arith.constant 0.000000e+00 : f32
    %65 = vector.broadcast %cst_17 : f32 to vector<48x12xf32>
    %66 = arith.maximumf %64, %65 : vector<48x12xf32>
    %67 = vector.broadcast %23 : vector<48x1xf32> to vector<48x12xf32>
    %68 = arith.mulf %66, %67 : vector<48x12xf32>
    %cst_18 = arith.constant 0.000000e+00 : f32
    %69 = vector.broadcast %cst_18 : f32 to vector<2x12xf32>
    %70 = tpu.concatenate %69, %68, %69 in 0 : vector<2x12xf32>, vector<48x12xf32>, vector<2x12xf32> -> vector<52x12xf32>
    %71 = vector.extract_strided_slice %70 {offsets = [0, 0], sizes = [48, 12], strides = [1, 1]} : vector<52x12xf32> to vector<48x12xf32>
    %72 = vector.extract_strided_slice %70 {offsets = [1, 0], sizes = [48, 12], strides = [1, 1]} : vector<52x12xf32> to vector<48x12xf32>
    %73 = vector.extract_strided_slice %70 {offsets = [2, 0], sizes = [48, 12], strides = [1, 1]} : vector<52x12xf32> to vector<48x12xf32>
    %74 = vector.extract_strided_slice %70 {offsets = [3, 0], sizes = [48, 12], strides = [1, 1]} : vector<52x12xf32> to vector<48x12xf32>
    %75 = vector.extract_strided_slice %70 {offsets = [4, 0], sizes = [48, 12], strides = [1, 1]} : vector<52x12xf32> to vector<48x12xf32>
    %76 = tpu.concatenate %71, %72, %73, %74, %75 in 1 : vector<48x12xf32>, vector<48x12xf32>, vector<48x12xf32>, vector<48x12xf32>, vector<48x12xf32> -> vector<48x60xf32>
    %77 = arith.truncf %76 : vector<48x60xf32> to vector<48x60xbf16>
    %c0_19 = arith.constant 0 : index
    %c0_20 = arith.constant 0 : index
    %78 = vector.load %arg5[%c0_19, %c0_20] : memref<60x48xbf16, #tpu.memory_space<vmem>>, vector<60x48xbf16>
    %cst_21 = arith.constant dense<0.000000e+00> : vector<48x48xf32>
    %79 = tpu.matmul %77, %78, %cst_21 {dimension_numbers = #tpu.dot_dimension_numbers<[1], [0], [0], [1], [0, 0, 1, 1], [], []>} : vector<48x60xbf16>, vector<60x48xbf16>, vector<48x48xf32> -> vector<48x48xf32>
    %c3 = arith.constant 3 : index
    %c0_22 = arith.constant 0 : index
    %80 = vector.load %arg2[%c3, %c0_22] : memref<9x48xf32, #tpu.memory_space<vmem>>, vector<1x48xf32>
    %81 = vector.broadcast %80 : vector<1x48xf32> to vector<48x48xf32>
    %82 = arith.addf %79, %81 : vector<48x48xf32>
    %83 = vector.extract_strided_slice %82 {offsets = [0, 0], sizes = [48, 24], strides = [1, 1]} : vector<48x48xf32> to vector<48x24xf32>
    %84 = vector.extract_strided_slice %82 {offsets = [0, 24], sizes = [48, 24], strides = [1, 1]} : vector<48x48xf32> to vector<48x24xf32>
    %85 = arith.negf %84 : vector<48x24xf32>
    %86 = math.exp %85 : vector<48x24xf32>
    %cst_23 = arith.constant 1.000000e+00 : f32
    %87 = vector.broadcast %cst_23 : f32 to vector<48x24xf32>
    %88 = arith.addf %87, %86 : vector<48x24xf32>
    %89 = arith.divf %87, %88 : vector<48x24xf32>
    %90 = arith.mulf %83, %89 : vector<48x24xf32>
    %c4 = arith.constant 4 : index
    %c0_24 = arith.constant 0 : index
    %91 = vector.load %arg2[%c4, %c0_24] : memref<9x48xf32, #tpu.memory_space<vmem>>, vector<1x24xf32>
    %c5 = arith.constant 5 : index
    %c0_25 = arith.constant 0 : index
    %92 = vector.load %arg2[%c5, %c0_25] : memref<9x48xf32, #tpu.memory_space<vmem>>, vector<1x24xf32>
    %cst_26 = arith.constant dense<0.000000e+00> : vector<48xf32>
    %93 = vector.multi_reduction <add>, %90, %cst_26 [1] : vector<48x24xf32> to vector<48xf32>
    %94 = vector.shape_cast %93 : vector<48xf32> to vector<48x1xf32>
    %cst_27 = arith.constant 2.400000e+01 : f32
    %95 = vector.broadcast %cst_27 : f32 to vector<48x1xf32>
    %96 = arith.divf %94, %95 : vector<48x1xf32>
    %97 = arith.mulf %90, %90 : vector<48x24xf32>
    %cst_28 = arith.constant dense<0.000000e+00> : vector<48xf32>
    %98 = vector.multi_reduction <add>, %97, %cst_28 [1] : vector<48x24xf32> to vector<48xf32>
    %99 = vector.shape_cast %98 : vector<48xf32> to vector<48x1xf32>
    %cst_29 = arith.constant 2.400000e+01 : f32
    %100 = vector.broadcast %cst_29 : f32 to vector<48x1xf32>
    %101 = arith.divf %99, %100 : vector<48x1xf32>
    %102 = arith.mulf %96, %96 : vector<48x1xf32>
    %103 = arith.subf %101, %102 : vector<48x1xf32>
    %cst_30 = arith.constant 0.000000e+00 : f32
    %104 = vector.broadcast %cst_30 : f32 to vector<48x1xf32>
    %105 = arith.maximumf %103, %104 : vector<48x1xf32>
    %106 = vector.broadcast %96 : vector<48x1xf32> to vector<48x24xf32>
    %107 = arith.subf %90, %106 : vector<48x24xf32>
    %cst_31 = arith.constant 9.99999974E-6 : f32
    %108 = vector.broadcast %cst_31 : f32 to vector<48x1xf32>
    %109 = arith.addf %105, %108 : vector<48x1xf32>
    %110 = math.rsqrt %109 : vector<48x1xf32>
    %111 = vector.broadcast %110 : vector<48x1xf32> to vector<48x24xf32>
    %112 = arith.mulf %107, %111 : vector<48x24xf32>
    %113 = vector.broadcast %91 : vector<1x24xf32> to vector<48x24xf32>
    %114 = arith.mulf %112, %113 : vector<48x24xf32>
    %115 = vector.broadcast %92 : vector<1x24xf32> to vector<48x24xf32>
    %116 = arith.addf %114, %115 : vector<48x24xf32>
    %117 = vector.broadcast %23 : vector<48x1xf32> to vector<48x24xf32>
    %118 = arith.mulf %116, %117 : vector<48x24xf32>
    %cst_32 = arith.constant 0.000000e+00 : f32
    %119 = vector.broadcast %cst_32 : f32 to vector<2x24xf32>
    %120 = tpu.concatenate %119, %118, %119 in 0 : vector<2x24xf32>, vector<48x24xf32>, vector<2x24xf32> -> vector<52x24xf32>
    %121 = vector.extract_strided_slice %120 {offsets = [0, 0], sizes = [48, 24], strides = [1, 1]} : vector<52x24xf32> to vector<48x24xf32>
    %122 = vector.extract_strided_slice %120 {offsets = [1, 0], sizes = [48, 24], strides = [1, 1]} : vector<52x24xf32> to vector<48x24xf32>
    %123 = vector.extract_strided_slice %120 {offsets = [2, 0], sizes = [48, 24], strides = [1, 1]} : vector<52x24xf32> to vector<48x24xf32>
    %124 = vector.extract_strided_slice %120 {offsets = [3, 0], sizes = [48, 24], strides = [1, 1]} : vector<52x24xf32> to vector<48x24xf32>
    %125 = vector.extract_strided_slice %120 {offsets = [4, 0], sizes = [48, 24], strides = [1, 1]} : vector<52x24xf32> to vector<48x24xf32>
    %126 = tpu.concatenate %121, %122, %123, %124, %125 in 1 : vector<48x24xf32>, vector<48x24xf32>, vector<48x24xf32>, vector<48x24xf32>, vector<48x24xf32> -> vector<48x120xf32>
    %127 = arith.truncf %126 : vector<48x120xf32> to vector<48x120xbf16>
    %c0_33 = arith.constant 0 : index
    %c0_34 = arith.constant 0 : index
    %128 = vector.load %arg6[%c0_33, %c0_34] : memref<120x48xbf16, #tpu.memory_space<vmem>>, vector<120x48xbf16>
    %cst_35 = arith.constant dense<0.000000e+00> : vector<48x48xf32>
    %129 = tpu.matmul %127, %128, %cst_35 {dimension_numbers = #tpu.dot_dimension_numbers<[1], [0], [0], [1], [0, 0, 1, 1], [], []>} : vector<48x120xbf16>, vector<120x48xbf16>, vector<48x48xf32> -> vector<48x48xf32>
    %c6 = arith.constant 6 : index
    %c0_36 = arith.constant 0 : index
    %130 = vector.load %arg2[%c6, %c0_36] : memref<9x48xf32, #tpu.memory_space<vmem>>, vector<1x48xf32>
    %131 = vector.broadcast %130 : vector<1x48xf32> to vector<48x48xf32>
    %132 = arith.addf %129, %131 : vector<48x48xf32>
    %133 = vector.extract_strided_slice %132 {offsets = [0, 0], sizes = [48, 24], strides = [1, 1]} : vector<48x48xf32> to vector<48x24xf32>
    %134 = vector.extract_strided_slice %132 {offsets = [0, 24], sizes = [48, 24], strides = [1, 1]} : vector<48x48xf32> to vector<48x24xf32>
    %135 = arith.negf %134 : vector<48x24xf32>
    %136 = math.exp %135 : vector<48x24xf32>
    %cst_37 = arith.constant 1.000000e+00 : f32
    %137 = vector.broadcast %cst_37 : f32 to vector<48x24xf32>
    %138 = arith.addf %137, %136 : vector<48x24xf32>
    %139 = arith.divf %137, %138 : vector<48x24xf32>
    %140 = arith.mulf %133, %139 : vector<48x24xf32>
    %c7 = arith.constant 7 : index
    %c0_38 = arith.constant 0 : index
    %141 = vector.load %arg2[%c7, %c0_38] : memref<9x48xf32, #tpu.memory_space<vmem>>, vector<1x24xf32>
    %c8 = arith.constant 8 : index
    %c0_39 = arith.constant 0 : index
    %142 = vector.load %arg2[%c8, %c0_39] : memref<9x48xf32, #tpu.memory_space<vmem>>, vector<1x24xf32>
    %cst_40 = arith.constant dense<0.000000e+00> : vector<48xf32>
    %143 = vector.multi_reduction <add>, %140, %cst_40 [1] : vector<48x24xf32> to vector<48xf32>
    %144 = vector.shape_cast %143 : vector<48xf32> to vector<48x1xf32>
    %cst_41 = arith.constant 2.400000e+01 : f32
    %145 = vector.broadcast %cst_41 : f32 to vector<48x1xf32>
    %146 = arith.divf %144, %145 : vector<48x1xf32>
    %147 = arith.mulf %140, %140 : vector<48x24xf32>
    %cst_42 = arith.constant dense<0.000000e+00> : vector<48xf32>
    %148 = vector.multi_reduction <add>, %147, %cst_42 [1] : vector<48x24xf32> to vector<48xf32>
    %149 = vector.shape_cast %148 : vector<48xf32> to vector<48x1xf32>
    %cst_43 = arith.constant 2.400000e+01 : f32
    %150 = vector.broadcast %cst_43 : f32 to vector<48x1xf32>
    %151 = arith.divf %149, %150 : vector<48x1xf32>
    %152 = arith.mulf %146, %146 : vector<48x1xf32>
    %153 = arith.subf %151, %152 : vector<48x1xf32>
    %cst_44 = arith.constant 0.000000e+00 : f32
    %154 = vector.broadcast %cst_44 : f32 to vector<48x1xf32>
    %155 = arith.maximumf %153, %154 : vector<48x1xf32>
    %156 = vector.broadcast %146 : vector<48x1xf32> to vector<48x24xf32>
    %157 = arith.subf %140, %156 : vector<48x24xf32>
    %cst_45 = arith.constant 9.99999974E-6 : f32
    %158 = vector.broadcast %cst_45 : f32 to vector<48x1xf32>
    %159 = arith.addf %155, %158 : vector<48x1xf32>
    %160 = math.rsqrt %159 : vector<48x1xf32>
    %161 = vector.broadcast %160 : vector<48x1xf32> to vector<48x24xf32>
    %162 = arith.mulf %157, %161 : vector<48x24xf32>
    %163 = vector.broadcast %141 : vector<1x24xf32> to vector<48x24xf32>
    %164 = arith.mulf %162, %163 : vector<48x24xf32>
    %165 = vector.broadcast %142 : vector<1x24xf32> to vector<48x24xf32>
    %166 = arith.addf %164, %165 : vector<48x24xf32>
    %167 = vector.broadcast %23 : vector<48x1xf32> to vector<48x24xf32>
    %168 = arith.mulf %166, %167 : vector<48x24xf32>
    %cst_46 = arith.constant 0.000000e+00 : f32
    %169 = vector.broadcast %cst_46 : f32 to vector<48x24xf32>
    %170 = arith.maximumf %168, %169 : vector<48x24xf32>
    %171 = arith.truncf %170 : vector<48x24xf32> to vector<48x24xbf16>
    %c0_47 = arith.constant 0 : index
    %c0_48 = arith.constant 0 : index
    %172 = vector.load %arg7[%c0_47, %c0_48] : memref<3x24xbf16, #tpu.memory_space<vmem>>, vector<3x24xbf16>
    %cst_49 = arith.constant dense<0.000000e+00> : vector<3x48xf32>
    %173 = tpu.matmul %172, %171, %cst_49 {dimension_numbers = #tpu.dot_dimension_numbers<[1], [1], [0], [0], [0, 0, 1, 0], [], []>} : vector<3x24xbf16>, vector<48x24xbf16>, vector<3x48xf32> -> vector<3x48xf32>
    %c0_50 = arith.constant 0 : index
    %c0_51 = arith.constant 0 : index
    %174 = vector.load %arg3[%c0_50, %c0_51] : memref<3x1xf32, #tpu.memory_space<vmem>>, vector<3x1xf32>
    %175 = vector.broadcast %174 : vector<3x1xf32> to vector<3x48xf32>
    %176 = arith.addf %173, %175 : vector<3x48xf32>
    %c0_52 = arith.constant 0 : index
    %c0_53 = arith.constant 0 : index
    %c0_54 = arith.constant 0 : index
    %177 = vector.load %arg8[%c0_52, %c0_53, %c0_54] : memref<1x3x48xf32, #tpu.memory_space<vmem>>, vector<1x3x48xf32>
    %178 = vector.shape_cast %177 : vector<1x3x48xf32> to vector<3x48xf32>
    %179 = vector.shape_cast %176 : vector<3x48xf32> to vector<1x3x48xf32>
    tpu.vector_store %arg8[%c0_52, %c0_53, %c0_54], %179 {strides = array<i32>} : memref<1x3x48xf32, #tpu.memory_space<vmem>>, vector<1x3x48xf32>,
    return
  }
  func.func @transform_0(%arg0: i32) -> (i32, i32) {
    %c0_i32 = arith.constant 0 : i32
    %c0_i32_0 = arith.constant 0 : i32
    return %arg0, %c0_i32 : i32, i32
  }
  func.func @transform_1(%arg0: i32) -> (i32, i32) {
    %c0_i32 = arith.constant 0 : i32
    %c0_i32_0 = arith.constant 0 : i32
    %c0_i32_1 = arith.constant 0 : i32
    return %c0_i32, %c0_i32_0 : i32, i32
  }
  func.func @transform_2(%arg0: i32) -> (i32, i32) {
    %c0_i32 = arith.constant 0 : i32
    %c0_i32_0 = arith.constant 0 : i32
    %c0_i32_1 = arith.constant 0 : i32
    return %c0_i32, %c0_i32_0 : i32, i32
  }
  func.func @transform_3(%arg0: i32) -> (i32, i32) {
    %c0_i32 = arith.constant 0 : i32
    %c0_i32_0 = arith.constant 0 : i32
    %c0_i32_1 = arith.constant 0 : i32
    return %c0_i32, %c0_i32_0 : i32, i32
  }
  func.func @transform_4(%arg0: i32) -> (i32, i32) {
    %c0_i32 = arith.constant 0 : i32
    %c0_i32_0 = arith.constant 0 : i32
    %c0_i32_1 = arith.constant 0 : i32
    return %c0_i32, %c0_i32_0 : i32, i32
  }
  func.func @transform_5(%arg0: i32) -> (i32, i32) {
    %c0_i32 = arith.constant 0 : i32
    %c0_i32_0 = arith.constant 0 : i32
    %c0_i32_1 = arith.constant 0 : i32
    return %c0_i32, %c0_i32_0 : i32, i32
  }
  func.func @transform_6(%arg0: i32) -> (i32, i32) {
    %c0_i32 = arith.constant 0 : i32
    %c0_i32_0 = arith.constant 0 : i32
    %c0_i32_1 = arith.constant 0 : i32
    return %c0_i32, %c0_i32_0 : i32, i32
  }
  func.func @transform_7(%arg0: i32) -> (i32, i32, i32) {
    %c0_i32 = arith.constant 0 : i32
    %c0_i32_0 = arith.constant 0 : i32
    %c0_i32_1 = arith.constant 0 : i32
    return %arg0, %c0_i32, %c0_i32_0 : i32, i32, i32
  }
}

</mosaic_0001>

<bundles_post_ra>
// kernel: tpu_custom_call.1
= control target key start
LH: loop header
LB: loop body
LE: loop exit
PB: predicated region body
PF: predicated region fallthrough
CT: control target
= control target key end

     0   :  { %vm172_vm0 = vcmask 1041408   ;;  %vm195_vm1 = vcmask 1046528   ;;  %vm259_vm2 = vcmask 1044480   ;;  %vm227_vm3 = vcmask 1045504   ;;  %s2090_s15 = smov 12   ;;  %s2091_s16 = smov 8   ;;  %s2962_s0 = inlined_call_operand.vmem [shape: f32[48,4], index: 0, kind: input, shape index: {}]   ;;  %s2963_s3 = inlined_call_operand.vmem [shape: bf16[20,12], index: 3, kind: input, shape index: {}]   ;;  %s2964_s1 = inlined_call_operand.vmem [shape: f32[9,48], index: 1, kind: input, shape index: {}]   ;;  %s2965_s4 = inlined_call_operand.vmem [shape: bf16[60,48], index: 4, kind: input, shape index: {}]   ;;  %s2966_s5 = inlined_call_operand.vmem [shape: bf16[120,48], index: 5, kind: input, shape index: {}]   ;;  %s2967_s2 = inlined_call_operand.vmem [shape: f32[3,1], index: 2, kind: input, shape index: {}]   ;;  %s2968_s6 = inlined_call_operand.vmem [shape: bf16[3,24], index: 6, kind: input, shape index: {}]   ;;  %s2969_s7 = inlined_call_operand.vmem [shape: f32[1,3,48], index: 7, kind: output, shape index: {}]  }
   0x1   :  { %v160_v0 = vld [vmem:[%s2962_s0] sm:$0xff]  ;;  %v161_v1 = vld [vmem:[%s2962_s0 + $0x8] sm:$0xff]  ;;  %v162_v2 = vld [vmem:[%s2962_s0 + $0x10] sm:$0xff]  ;;  %vm291_vm4 = vcmask 1043456   ;;  %v2088_v20 = vmov 0.0   ;;  %s2092_s17 = smov 16  }
   0x2   :  { %v173_v3 = vrot.slane %v160_v0, 6  ;;  %v174_v4 = vrot.slane %v161_v1, 6  ;;  %v176_v5 = vrot.slane %v162_v2, 6  ;;  %v163_v6 = vld [vmem:[%s2962_s0 + $0x18] sm:$0xff]  ;;  %v164_v7 = vld [vmem:[%s2962_s0 + $0x20] sm:$0xff]  ;;  %v2159_v8 = vld [vmem:[%s2962_s0 + $0x28] sm:$0xff]  ;;  %1709 = vmatprep.subr.bf16.mxu0 %v2088_v20  ;;  %1725 = vmatprep.subr.bf16.mxu1 %v2088_v20 }
   0x3   :  { %v178_v9 = vrot.slane %v163_v6, 6  ;;  %v180_v10 = vrot.slane %v164_v7, 6  ;;  %v182_v11 = vrot.slane %v2159_v8, 6  ;;  %v1990_v15 = vld [vmem:[%s2963_s3] sm:$0xff]   ;;  %s2089_s0 = smov 4   ;;  %vm2970_vm5 = vmmov 0  }
   0x4   :  { %v2163_v12 = vsel %vm172_vm0, %v173_v3, %v174_v4  ;;  %v2166_v13 = vsel %vm172_vm0, %v174_v4, %v176_v5  ;;  %v2169_v14 = vsel %vm172_vm0, 0.0, %v173_v3  ;;  %1710 = vmatpush3.bf16.msra.mxu0 %v1990_v15  ;;  %1713 = vmatprep.mubr.msk.bf16.mxu0 %vm2970_vm5, %v2088_v20  ;;  %vm323_vm6 = vcmask 31744   ;;  %s2094_s10 = smov 24   ;;  %s2096_s11 = smov 48  }
   0x5   :  { %v196_v16 = vrot.slane %v2169_v14, 1  ;;  %v197_v17 = vrot.slane %v2163_v12, 1  ;;  %v199_v18 = vrot.slane %v2166_v13, 1  ;;  %v260_v19 = vrot.slane %v2169_v14, 3  ;;  %1711 = vmatprep.subr.bf16.mxu0 %v2088_v20  ;;  %1733 = vmatprep.mubr.msk.bf16.mxu1 %vm2970_vm5, %v2088_v20  ;;  %s2097_s14 = smov 104  }
   0x6   :  { %v261_v21 = vrot.slane %v2163_v12, 3  ;;  %v263_v22 = vrot.slane %v2166_v13, 3  ;;  %v228_v23 = vrot.slane %v2169_v14, 2  ;;  %v229_v24 = vrot.slane %v2163_v12, 2 }
   0x7   :  { %v198_v25 = vsel %vm195_vm1, %v196_v16, %v197_v17  ;;  %v200_v26 = vsel %vm195_vm1, %v197_v17, %v199_v18  ;;  %v231_v27 = vrot.slane %v2166_v13, 2  ;;  %v292_v28 = vrot.slane %v2169_v14, 4 }
   0x8   :  { %v1808_v29 = vpack.i.bf16 %v200_v26, %v198_v25  ;;  %v262_v30 = vsel %vm259_vm2, %v260_v19, %v261_v21  ;;  %v264_v31 = vsel %vm259_vm2, %v261_v21, %v263_v22  ;;  %v230_v32 = vsel %vm227_vm3, %v228_v23, %v229_v24 }
   0x9   :  { %v1818_v33 = vpack.i.bf16 %v264_v31, %v262_v30  ;;  %v232_v34 = vsel %vm227_vm3, %v229_v24, %v231_v27  ;;  %v293_v35 = vrot.slane %v2163_v12, 4  ;;  %v295_v36 = vrot.slane %v2166_v13, 4 }
   0xa   :  { %1809 = vrot.lane.b32.xlu0 %v1808_v29, %s2089_s0  ;;  %v1813_v37 = vpack.i.bf16 %v232_v34, %v230_v32  ;;  %v2197_v38 = vsel %vm172_vm0, %v176_v5, %v178_v9  ;;  %v2200_v39 = vsel %vm172_vm0, %v178_v9, %v180_v10  ;;  %v2205_v40 = vsel %vm172_vm0, %v180_v10, %v182_v11  ;;  %v1991_v5 = vld [vmem:[%s2963_s3 + $0x8] ss:$0 sps:$4 sm:$0x33]  }
   0xb   :  { %1819 = vrot.lane.b32.xlu1 %v1818_v33, %s2090_s15  ;;  %v294_v41 = vsel %vm291_vm4, %v292_v28, %v293_v35  ;;  %v296_v42 = vsel %vm291_vm4, %v293_v35, %v295_v36  ;;  %v201_v43 = vrot.slane %v2197_v38, 1  ;;  %v203_v44 = vrot.slane %v2200_v39, 1 }
   0xc   :  { %v1823_v45 = vpack.i.bf16 %v296_v42, %v294_v41  ;;  %v233_v46 = vrot.slane %v2197_v38, 2  ;;  %v235_v47 = vrot.slane %v2200_v39, 2  ;;  %v265_v48 = vrot.slane %v2197_v38, 3 }
   0xd   :  { %v202_v49 = vsel %vm195_vm1, %v199_v18, %v201_v43  ;;  %v204_v50 = vsel %vm195_vm1, %v201_v43, %v203_v44  ;;  %v267_v51 = vrot.slane %v2200_v39, 3  ;;  %v297_v52 = vrot.slane %v2197_v38, 4 }
   0xe   :  { %1814 = vrot.lane.b32.xlu0 %v1813_v37, %s2091_s16  ;;  %v1828_v53 = vpack.i.bf16 %v204_v50, %v202_v49  ;;  %v234_v54 = vsel %vm227_vm3, %v231_v27, %v233_v46  ;;  %v236_v55 = vsel %vm227_vm3, %v233_v46, %v235_v47  ;;  %v266_v57 = vsel %vm259_vm2, %v263_v22, %v265_v48 }
   0xf   :  { %1824 = vrot.lane.b32.xlu1 %v1823_v45, %s2092_s17  ;;  %v1833_v56 = vpack.i.bf16 %v236_v55, %v234_v54  ;;  %v268_v58 = vsel %vm259_vm2, %v265_v48, %v267_v51  ;;  %v299_v59 = vrot.slane %v2200_v39, 4  ;;  %v298_v60 = vsel %vm291_vm4, %v295_v36, %v297_v52 }
  0x10   :  { %v192_v61 = vsel %vm172_vm0, %v182_v11, 0.0  ;;  %v205_v62 = vrot.slane %v2205_v40, 1  ;;  %v237_v63 = vrot.slane %v2205_v40, 2  ;;  %v1838_v3 = vpack.i.bf16 %v268_v58, %v266_v57 }
  0x11   :  { %v300_v0 = vsel %vm291_vm4, %v297_v52, %v299_v59  ;;  %v207_v1 = vrot.slane %v192_v61, 1  ;;  %v239_v2 = vrot.slane %v192_v61, 2  ;;  %v269_v4 = vrot.slane %v2205_v40, 3 }
  0x12   :  { %1829 = vrot.lane.b32.xlu0 %v1828_v53, %s2089_s0  ;;  %v1843_v6 = vpack.i.bf16 %v300_v0, %v298_v60  ;;  %v206_v7 = vsel %vm195_vm1, %v203_v44, %v205_v62  ;;  %v271_v9 = vrot.slane %v192_v61, 3  ;;  %v238_v10 = vsel %vm227_vm3, %v235_v47, %v237_v63 }
  0x13   :  { %1834 = vrot.lane.b32.xlu1 %v1833_v56, %s2091_s16  ;;  %v208_v8 = vsel %vm195_vm1, %v205_v62, %v207_v1  ;;  %v240_v11 = vsel %vm227_vm3, %v237_v63, %v239_v2  ;;  %v301_v15 = vrot.slane %v2205_v40, 4  ;;  %v303_v16 = vrot.slane %v192_v61, 4 }
  0x14   :  { %v1848_v17 = vpack.i.bf16 %v208_v8, %v206_v7  ;;  %v382_v18 = vsel %vm172_vm0, %v1991_v5, 0  ;;  %v1853_v19 = vpack.i.bf16 %v240_v11, %v238_v10  ;;  %v270_v21 = vsel %vm259_vm2, %v267_v51, %v269_v4 }
  0x15   :  { %v272_v22 = vsel %vm259_vm2, %v269_v4, %v271_v9  ;;  %1712 = vmatpush3.bf16.msra.mxu0 %v382_v18  ;;  %v302_v23 = vsel %vm291_vm4, %v299_v59, %v301_v15  ;;  %v304_v24 = vsel %vm291_vm4, %v301_v15, %v303_v16  ;;  %vm330_vm7 = vcmask 64512  }
  0x16   :  { %1839 = vrot.lane.b32.xlu0 %v1838_v3, %s2090_s15  ;;  %1745 = vmatprep.subr.bf16.mxu0 %v2088_v20  ;;  %v1858_v25 = vpack.i.bf16 %v272_v22, %v270_v21  ;;  %v1863_v26 = vpack.i.bf16 %v304_v24, %v302_v23  ;;  %vm2972_vm8 = vcmask 97280   ;;  %vm344_vm9 = vcmask 130048  }
  0x17   :  { %1844 = vrot.lane.b32.xlu1 %v1843_v6, %s2092_s17  ;;  %vm371_vm10 = vcmask 162816  }
  0x1a   :  { %1849 = vrot.lane.b32.xlu0 %v1848_v17, %s2089_s0 }
  0x1b   :  { %1854 = vrot.lane.b32.xlu1 %v1853_v19, %s2091_s16 }
  0x1e   :  { %1859 = vrot.lane.b32.xlu0 %v1858_v25, %s2090_s15 }
  0x1f   :  { %1864 = vrot.lane.b32.xlu1 %v1863_v26, %s2092_s17 }
  0x7c   :  { %v1810_v27 = vpop.permute.xlu0 %1809 }
  0x7d   :  { %v1820_v28 = vpop.permute.xlu1 %1819  ;;  %v1812_v29 = vunpack.i.h.bf16 %v1810_v27  ;;  %v1811_v30 = vunpack.i.l.bf16 %v1810_v27  ;;  %v1637_v27 = vld [vmem:[%s2964_s1] ss:$0 sm:$0xff] }
  0x7e   :  { %v1822_v32 = vunpack.i.h.bf16 %v1820_v28  ;;  %v1821_v33 = vunpack.i.l.bf16 %v1820_v28 }
  0x7f   :  { %v325_v37 = vsel %vm323_vm6, %v2163_v12, %v1812_v29  ;;  %v324_v41 = vsel %vm323_vm6, %v2169_v14, %v1811_v30 }
  0x80   :  { %v1815_v31 = vpop.permute.xlu0 %1814 }
  0x81   :  { %v1817_v34 = vunpack.i.h.bf16 %v1815_v31  ;;  %v1816_v35 = vunpack.i.l.bf16 %v1815_v31  ;;  %v1825_v36 = vpop.permute.xlu1 %1824 }
  0x82   :  { %v1827_v42 = vunpack.i.h.bf16 %v1825_v36  ;;  %v1826_v43 = vunpack.i.l.bf16 %v1825_v36 }
  0x83   :  { %v331_v44 = vsel %vm330_vm7, %v324_v41, %v1816_v35  ;;  %v332_v45 = vsel %vm330_vm7, %v325_v37, %v1817_v34 }
  0x84   :  { %v338_v46 = vsel %vm2972_vm8, %v331_v44, %v1821_v33  ;;  %v339_v47 = vsel %vm2972_vm8, %v332_v45, %v1822_v32  ;;  %v1830_v48 = vpop.permute.xlu0 %1829 }
  0x85   :  { %v345_v49 = vsel %vm344_vm9, %v338_v46, %v1826_v43  ;;  %v346_v50 = vsel %vm344_vm9, %v339_v47, %v1827_v42  ;;  %v1832_v12 = vunpack.i.h.bf16 %v1830_v48  ;;  %v1831_v51 = vunpack.i.l.bf16 %v1830_v48  ;;  %v1835_v52 = vpop.permute.xlu1 %1834 }
  0x86   :  { %v351_v14 = vpack.c.bf16 %v346_v50, %v345_v49  ;;  %v1837_v53 = vunpack.i.h.bf16 %v1835_v52  ;;  %v1836_v54 = vunpack.i.l.bf16 %v1835_v52 }
  0x87   :  { %v327_v55 = vsel %vm323_vm6, %v2197_v38, %v1832_v12  ;;  %v326_v56 = vsel %vm323_vm6, %v2166_v13, %v1831_v51 }
  0x88   :  { %v333_v57 = vsel %vm330_vm7, %v326_v56, %v1836_v54  ;;  %v334_v58 = vsel %vm330_vm7, %v327_v55, %v1837_v53  ;;  %v1840_v59 = vpop.permute.xlu0 %1839  ;;  %1714 = vmatmul.mubr.msk.bf16.vlgmr.msra.gmra.mrb[0].mxu0 %vm371_vm10, %v351_v14 }
  0x89   :  { %v1842_v60 = vunpack.i.h.bf16 %v1840_v59  ;;  %v1841_v61 = vunpack.i.l.bf16 %v1840_v59  ;;  %v1845_v62 = vpop.permute.xlu1 %1844  ;;  %1717 = vmatprep.mubr.msk.bf16.mxu0 %vm2970_vm5, %v2088_v20 }
  0x8a   :  { %v1847_v63 = vunpack.i.h.bf16 %v1845_v62  ;;  %v1846_v0 = vunpack.i.l.bf16 %v1845_v62 }
  0x8b   :  { %v340_v38 = vsel %vm2972_vm8, %v333_v57, %v1841_v61  ;;  %v341_v1 = vsel %vm2972_vm8, %v334_v58, %v1842_v60 }
  0x8c   :  { %v347_v13 = vsel %vm344_vm9, %v340_v38, %v1846_v0  ;;  %v348_v2 = vsel %vm344_vm9, %v341_v1, %v1847_v63  ;;  %v1850_v3 = vpop.permute.xlu0 %1849  ;;  %v1992_v38 = vld [vmem:[%s2965_s4] sm:$0xff]   ;;  %v27_v1 = vlaneseq }
  0x8d   :  { %v352_v4 = vpack.c.bf16 %v348_v2, %v347_v13  ;;  %v1852_v5 = vunpack.i.h.bf16 %v1850_v3  ;;  %v1851_v6 = vunpack.i.l.bf16 %v1850_v3  ;;  %v1855_v7 = vpop.permute.xlu1 %1854  ;;  %1726 = vmatpush3.bf16.msra.mxu1 %v1992_v38 }
  0x8e   :  { %v1857_v8 = vunpack.i.h.bf16 %v1855_v7  ;;  %v1856_v9 = vunpack.i.l.bf16 %v1855_v7  ;;  %1727 = vmatprep.subr.bf16.mxu1 %v2088_v20  ;;  %v28_v13 = vshrl.u32 %v27_v1, 7 }
  0x8f   :  { %v329_v10 = vsel %vm323_vm6, %v2205_v40, %v1852_v5  ;;  %v328_v11 = vsel %vm323_vm6, %v2200_v39, %v1851_v6 }
  0x90   :  { %v335_v15 = vsel %vm330_vm7, %v328_v11, %v1856_v9  ;;  %v336_v16 = vsel %vm330_vm7, %v329_v10, %v1857_v8  ;;  %1718 = vmatmul.mubr.msk.bf16.gmra.mrb[4].mxu0 %vm371_vm10, %v352_v4  ;;  %v1860_v17 = vpop.permute.xlu0 %1859  ;;  %v29_v2 = vadd.s32 8, %v28_v13  ;;  %v30_v7 = vadd.s32 16, %v28_v13 }
  0x91   :  { %v1862_v18 = vunpack.i.h.bf16 %v1860_v17  ;;  %v1861_v19 = vunpack.i.l.bf16 %v1860_v17  ;;  %v1865_v21 = vpop.permute.xlu1 %1864  ;;  %1721 = vmatprep.mubr.msk.bf16.mxu0 %vm2970_vm5, %v2088_v20  ;;  %v2348_v3 = vmul.u32.u64.low 2863311531, %v28_v13  ;;  %v2349_v4 = vmul.u32.u64.high 2863311531, %v28_v13, %v2348_v3 }
  0x92   :  { %v1867_v22 = vunpack.i.h.bf16 %v1865_v21  ;;  %v1866_v23 = vunpack.i.l.bf16 %v1865_v21  ;;  %v2351_v5 = vmul.u32.u64.low 2863311531, %v29_v2  ;;  %v2352_v6 = vmul.u32.u64.high 2863311531, %v29_v2, %v2351_v5 }
  0x93   :  { %v342_v40 = vsel %vm2972_vm8, %v335_v15, %v1861_v19  ;;  %v343_v24 = vsel %vm2972_vm8, %v336_v16, %v1862_v18  ;;  %v40_v8 = vshrl.u32 %v2349_v4, 4  ;;  %v2356_v10 = vadd.s32 24, %v28_v13 }
  0x94   :  { %v349_v39 = vsel %vm344_vm9, %v342_v40, %v1866_v23  ;;  %v350_v25 = vsel %vm344_vm9, %v343_v24, %v1867_v22  ;;  %v51_v9 = vshrl.u32 %v2352_v6, 4  ;;  %v2361_v18 = vadd.s32 32, %v28_v13 }
  0x95   :  { %v353_v26 = vpack.c.bf16 %v350_v25, %v349_v39  ;;  %v41_v15 = vmul.u32 24, %v40_v8  ;;  %v2358_v16 = vmul.u32.u64.low 2863311531, %v30_v7  ;;  %v2359_v17 = vmul.u32.u64.high 2863311531, %v30_v7, %v2358_v16 }
  0x96   :  { %v52_v22 = vmul.u32 24, %v51_v9  ;;  %v2366_v23 = vmul.u32.u64.low 2863311531, %v2356_v10  ;;  %v2367_v40 = vmul.u32.u64.high 2863311531, %v2356_v10, %v2366_v23 }
  0x97   :  { %v42_v25 = vsub.s32 %v28_v13, %v41_v15 }
  0x98   :  { %1722 = vmatmul.mubr.msk.bf16.gmra.mrb[8].mxu0 %vm371_vm10, %v353_v26 }
  0x99   :  { %1761 = vmatprep.mubr.msk.bf16.mxu0 %vm2970_vm5, %v2088_v20  ;;  %vm100_vm11 = vcmp.ne.s32.totalorder %v42_v25, 0  ;;  %vm106_vm12 = vcmp.lt.s32.totalorder %v42_v25, 0 }
  0x9a   :  { %vm112_vm14 = vmand %vm106_vm12, %vm100_vm11 }
 0x15b   :  { %v418_v28 = vpop.f32.mrb[0].mxu0 }
 0x15c   :  { %v2302_v29 = vadd.f32 %v1637_v27, %v418_v28  ;;  %v1715_v30 = vpop.f32.mrb[1].mxu0 }
 0x15d   :  { %v421_v31 = vpop.f32.mrb[2].mxu0 }
 0x15e   :  { %v2304_v32 = vadd.f32 %v1637_v27, %v421_v31  ;;  %v1716_v33 = vpop.f32.mrb[3].mxu0  ;;  %v443_v34 = vsel %vm2972_vm8, %v2302_v29, 0.0  ;;  %v468_v35 = vmul.f32 %v2302_v29, %v2302_v29 }
 0x15f   :  { %444 = vadd.xlane.f32.xlu0 %v443_v34  ;;  %v53_v33 = vsub.s32 %v29_v2, %v52_v22 }
 0x160   :  { %v446_v36 = vsel %vm2972_vm8, %v2304_v32, 0.0  ;;  %v469_v37 = vmul.f32 %v2304_v32, %v2304_v32  ;;  %v474_v41 = vsel %vm2972_vm8, %v468_v35, 0.0 }
 0x161   :  { %447 = vadd.xlane.f32.xlu1 %v446_v36  ;;  %vm101_vm13 = vcmp.ne.s32.totalorder %v53_v33, 0  ;;  %vm107_vm15 = vcmp.lt.s32.totalorder %v53_v33, 0 }
 0x162   :  { %v477_v45 = vsel %vm2972_vm8, %v469_v37, 0.0  ;;  %v2379_v37 = vadd.s32 40, %v28_v13  ;;  %vm113_vm6 = vmand %vm107_vm15, %vm101_vm13 }
 0x163   :  { %475 = vadd.xlane.f32.xlu0 %v474_v41  ;;  %v426_v42 = vpop.f32.mrb[4].mxu0 }
 0x164   :  { %v2315_v43 = vadd.f32 %v1637_v27, %v426_v42  ;;  %v1719_v44 = vpop.f32.mrb[5].mxu0  ;;  %v62_v42 = vshrl.u32 %v2359_v17, 4 }
 0x165   :  { %478 = vadd.xlane.f32.xlu1 %v477_v45  ;;  %v429_v46 = vpop.f32.mrb[6].mxu0 }
 0x166   :  { %v2318_v47 = vadd.f32 %v1637_v27, %v429_v46  ;;  %v1720_v48 = vpop.f32.mrb[7].mxu0  ;;  %v449_v49 = vsel %vm2972_vm8, %v2315_v43, 0.0  ;;  %v470_v50 = vmul.f32 %v2315_v43, %v2315_v43 }
 0x167   :  { %450 = vadd.xlane.f32.xlu0 %v449_v49  ;;  %v118_v49 = vadd.s32 24, %v42_v25 }
 0x168   :  { %v452_v12 = vsel %vm2972_vm8, %v2318_v47, 0.0  ;;  %v471_v51 = vmul.f32 %v2318_v47, %v2318_v47  ;;  %v480_v52 = vsel %vm2972_vm8, %v470_v50, 0.0  ;;  %v73_v50 = vshrl.u32 %v2367_v40, 4 }
 0x169   :  { %453 = vadd.xlane.f32.xlu1 %v452_v12 }
 0x16a   :  { %v483_v55 = vsel %vm2972_vm8, %v471_v51, 0.0  ;;  %v74_v38 = vmul.u32 24, %v73_v50 }
 0x16b   :  { %481 = vadd.xlane.f32.xlu0 %v480_v52  ;;  %v434_v14 = vpop.f32.mrb[8].mxu0 }
 0x16c   :  { %v2329_v53 = vadd.f32 %v1637_v27, %v434_v14  ;;  %v1723_v54 = vpop.f32.mrb[9].mxu0  ;;  %v2386_v52 = vmul.u32.u64.low 2863311531, %v2379_v37  ;;  %v2387_v14 = vmul.u32.u64.high 2863311531, %v2379_v37, %v2386_v52  ;;  %v75_v16 = vsub.s32 %v2356_v10, %v74_v38 }
 0x16d   :  { %484 = vadd.xlane.f32.xlu1 %v483_v55  ;;  %v437_v56 = vpop.f32.mrb[10].mxu0 }
 0x16e   :  { %v2332_v57 = vadd.f32 %v1637_v27, %v437_v56  ;;  %v1724_v58 = vpop.f32.mrb[11].mxu0  ;;  %v455_v59 = vsel %vm2972_vm8, %v2329_v53, 0.0  ;;  %v472_v60 = vmul.f32 %v2329_v53, %v2329_v53  ;;  %v63_v56 = vmul.u32 24, %v62_v42 }
 0x16f   :  { %456 = vadd.xlane.f32.xlu0 %v455_v59  ;;  %v2372_v26 = vmul.u32.u64.low 2863311531, %v2361_v18  ;;  %v2373_v27 = vmul.u32.u64.high 2863311531, %v2361_v18, %v2372_v26  ;;  %v95_v23 = vshrl.u32 %v2387_v14, 4  ;;  %vm103_vm15 = vcmp.ne.s32.totalorder %v75_v16, 0 }
 0x170   :  { %v458_v61 = vsel %vm2972_vm8, %v2332_v57, 0.0  ;;  %v486_v62 = vsel %vm2972_vm8, %v472_v60, 0.0  ;;  %v473_v63 = vmul.f32 %v2332_v57, %v2332_v57  ;;  %v64_v4 = vsub.s32 %v30_v7, %v63_v56 }
 0x171   :  { %459 = vadd.xlane.f32.xlu1 %v458_v61  ;;  %v84_v58 = vshrl.u32 %v2373_v27, 4 }
 0x172   :  { %v489_v0 = vsel %vm2972_vm8, %v473_v63, 0.0  ;;  %v119_v63 = vadd.s32 24, %v53_v33  ;;  %vm102_vm9 = vcmp.ne.s32.totalorder %v64_v4, 0  ;;  %vm108_vm10 = vcmp.lt.s32.totalorder %v64_v4, 0 }
 0x173   :  { %487 = vadd.xlane.f32.xlu0 %v486_v62  ;;  %v85_v5 = vmul.u32 24, %v84_v58  ;;  %v120_v27 = vadd.s32 24, %v64_v4  ;;  %vm109_vm8 = vcmp.lt.s32.totalorder %v75_v16, 0 }
 0x174   :  { %v125_v15 = vsel %vm113_vm6, %v119_v63, %v53_v33  ;;  %v96_v33 = vmul.u32 24, %v95_v23 }
 0x175   :  { %v86_v7 = vsub.s32 %v2361_v18, %v85_v5  ;;  %vm131_vm12 = vcmp.ge.s32.totalorder %v125_v15, 2  ;;  %vm137_vm13 = vcmp.lt.s32.totalorder %v125_v15, 18 }
 0x176   :  { %v97_v52 = vsub.s32 %v2379_v37, %v96_v33 }
 0x177   :  { %490 = vadd.xlane.f32.xlu0 %v489_v0  ;;  %v124_v0 = vsel %vm112_vm14, %v118_v49, %v42_v25  ;;  %vm2415_vm14 = vmand %vm108_vm10, %vm102_vm9  ;;  %vm104_vm5 = vcmp.ne.s32.totalorder %v86_v7, 0  ;;  %v121_v49 = vadd.s32 24, %v75_v16 }
 0x178   :  { %vm130_vm7 = vcmp.ge.s32.totalorder %v124_v0, 2  ;;  %vm136_vm11 = vcmp.lt.s32.totalorder %v124_v0, 18  ;;  %vm143_vm9 = vmand %vm131_vm12, %vm137_vm13  ;;  %vm105_vm13 = vcmp.ne.s32.totalorder %v97_v52, 0 }
 0x179   :  { %vm2423_vm6 = vmand %vm130_vm7, %vm136_vm11  ;;  %vm110_vm7 = vcmp.lt.s32.totalorder %v86_v7, 0  ;;  %v2449_v58 = vsel %vm143_vm9, 1.0, %v2088_v20 }
 0x17a   :  { %vm115_vm10 = vmand %vm109_vm8, %vm103_vm15  ;;  %v2446_v56 = vsel %vm2423_vm6, 1.0, %v2088_v20 }
 0x17b   :  { %vm116_vm11 = vmand %vm110_vm7, %vm104_vm5 }
 0x1ec   :  { %v445_v11 = vpop.xlane.xlu0 %444 }
 0x1ed   :  { %v2363_v19 = vmul.f32 0.083333336, %v445_v11 }
 0x1ee   :  { %v448_v21 = vpop.xlane.xlu1 %447 }
 0x1ef   :  { %v2369_v24 = vmul.f32 0.083333336, %v448_v21  ;;  %v498_v28 = vmul.f32 %v2363_v19, %v2363_v19  ;;  %v516_v10 = vsub.f32 %v2302_v29, %v2363_v19 }
 0x1f0   :  { %v476_v39 = vpop.xlane.xlu0 %475 }
 0x1f1   :  { %v492_v30 = vmul.f32 0.083333336, %v476_v39  ;;  %v499_v34 = vmul.f32 %v2369_v24, %v2369_v24  ;;  %v517_v29 = vsub.f32 %v2304_v32, %v2369_v24 }
 0x1f2   :  { %v479_v31 = vpop.xlane.xlu1 %478 }
 0x1f3   :  { %v504_v35 = vsub.f32 %v492_v30, %v498_v28  ;;  %v493_v36 = vmul.f32 0.083333336, %v479_v31  ;;  %v2411_v30 = vld [vmem:[%s2964_s1 + $0x1] ss:$0 sm:$0xff] }
 0x1f4   :  { %v451_v41 = vpop.xlane.xlu0 %450 }
 0x1f5   :  { %v510_v44 = vmax.f32 %v504_v35, 0.0  ;;  %v505_v45 = vsub.f32 %v493_v36, %v499_v34  ;;  %v2382_v46 = vmul.f32 0.083333336, %v451_v41  ;;  %v2430_v41 = vld [vmem:[%s2964_s1 + $0x2] ss:$0 sm:$0xff] }
 0x1f6   :  { %v454_v48 = vpop.xlane.xlu1 %453 }
 0x1f7   :  { %v522_v12 = vadd.f32 1e-05, %v510_v44  ;;  %v511_v51 = vmax.f32 %v505_v45, 0.0  ;;  %v2389_v54 = vmul.f32 0.083333336, %v454_v48  ;;  %v500_v60 = vmul.f32 %v2382_v46, %v2382_v46 }
 0x1f8   :  { %v482_v55 = vpop.xlane.xlu0 %481  ;;  %v126_v48 = vsel %vm2415_vm14, %v120_v27, %v64_v4  ;;  %vm111_vm14 = vcmp.lt.s32.totalorder %v97_v52, 0 }
 0x1f9   :  { %2004 = vrsqrt.f32 %v522_v12  ;;  %v523_v59 = vadd.f32 1e-05, %v511_v51  ;;  %v494_v61 = vmul.f32 0.083333336, %v482_v55  ;;  %v501_v1 = vmul.f32 %v2389_v54, %v2389_v54 }
 0x1fa   :  { %v485_v62 = vpop.xlane.xlu1 %484  ;;  %v122_v51 = vadd.s32 24, %v86_v7  ;;  %vm132_vm8 = vcmp.ge.s32.totalorder %v126_v48, 2  ;;  %vm138_vm12 = vcmp.lt.s32.totalorder %v126_v48, 18 }
 0x1fb   :  { %2006 = vrsqrt.f32 %v523_v59  ;;  %v506_v13 = vsub.f32 %v494_v61, %v500_v60  ;;  %v495_v2 = vmul.f32 0.083333336, %v485_v62  ;;  %v518_v61 = vsub.f32 %v2315_v43, %v2382_v46  ;;  %vm144_vm6 = vmand %vm132_vm8, %vm138_vm12 }
 0x1fc   :  { %v457_v3 = vpop.xlane.xlu0 %456  ;;  %v127_v62 = vsel %vm115_vm10, %v121_v49, %v75_v16  ;;  %v128_v38 = vsel %vm116_vm11, %v122_v51, %v86_v7  ;;  %vm117_vm10 = vmand %vm111_vm14, %vm105_vm13  ;;  %v2467_v15 = vsel %vm144_vm6, 1.0, %v2088_v20 }
 0x1fd   :  { %v512_v6 = vmax.f32 %v506_v13, 0.0  ;;  %v507_v8 = vsub.f32 %v495_v2, %v501_v1  ;;  %v2397_v9 = vmul.f32 0.083333336, %v457_v3  ;;  %v519_v13 = vsub.f32 %v2318_v47, %v2389_v54 }
 0x1fe   :  { %v460_v11 = vpop.xlane.xlu1 %459  ;;  %vm133_vm5 = vcmp.ge.s32.totalorder %v127_v62, 2  ;;  %vm139_vm15 = vcmp.lt.s32.totalorder %v127_v62, 18  ;;  %vm134_vm9 = vcmp.ge.s32.totalorder %v128_v38, 2  ;;  %vm140_vm7 = vcmp.lt.s32.totalorder %v128_v38, 18 }
 0x1ff   :  { %v524_v17 = vadd.f32 1e-05, %v512_v6  ;;  %v513_v21 = vmax.f32 %v507_v8, 0.0  ;;  %v502_v22 = vmul.f32 %v2397_v9, %v2397_v9  ;;  %v2404_v25 = vmul.f32 0.083333336, %v460_v11  ;;  %vm145_vm11 = vmand %vm133_vm5, %vm139_vm15 }
 0x200   :  { %v488_v40 = vpop.xlane.xlu0 %487  ;;  %v123_v6 = vadd.s32 24, %v97_v52  ;;  %vm146_vm8 = vmand %vm134_vm9, %vm140_vm7  ;;  %v2476_v7 = vsel %vm145_vm11, 1.0, %v2088_v20  ;;  %vm730_vm5 = vcmask 195584   ;;  %vm2977_vm15 = vcmask 97280  }
 0x201   :  { %2008 = vrsqrt.f32 %v524_v17  ;;  %v525_v39 = vadd.f32 1e-05, %v513_v21  ;;  %v496_v26 = vmul.f32 0.083333336, %v488_v40  ;;  %v503_v42 = vmul.f32 %v2404_v25, %v2404_v25  ;;  %vm2978_vm6 = vmmov %vm2977_vm15 }
 0x202   :  { %v520_v21 = vsub.f32 %v2329_v53, %v2397_v9  ;;  %v2486_v53 = vsel %vm146_vm8, 1.0, %v2088_v20  ;;  %v521_v9 = vsub.f32 %v2332_v57, %v2404_v25  ;;  %vm737_vm9 = vcmask 293888   ;;  %vm2979_vm11 = vmmov %vm2978_vm6 }
 0x203   :  { %v2005_v28 = vpop.eup %2004  ;;  %2010 = vrsqrt.f32 %v525_v39  ;;  %v508_v31 = vsub.f32 %v496_v26, %v502_v22  ;;  %v129_v22 = vsel %vm117_vm10, %v123_v6, %v97_v52  ;;  %v1993_v39 = vld [vmem:[%s2965_s4 + $0x8] sm:$0xff]   ;;  %vm744_vm7 = vcmask 392192   ;;  %vm2980_vm8 = vmmov %vm2978_vm6 }
 0x204   :  { %v534_v19 = vmul.f32 %v2005_v28, %v516_v10  ;;  %v491_v34 = vpop.xlane.xlu0 %490  ;;  %vm135_vm12 = vcmp.ge.s32.totalorder %v129_v22, 2  ;;  %1728 = vmatpush3.bf16.msra.mxu1 %v1993_v39  ;;  %vm141_vm13 = vcmp.lt.s32.totalorder %v129_v22, 18  ;;  %vm790_vm10 = vcmask 490496  }
 0x205   :  { %v2007_v36 = vpop.eup %2006  ;;  %v514_v32 = vmax.f32 %v508_v31, 0.0  ;;  %v497_v24 = vmul.f32 0.083333336, %v491_v34  ;;  %1729 = vmatprep.subr.bf16.mxu1 %v2088_v20  ;;  %vm147_vm14 = vmand %vm135_vm12, %vm141_vm13  ;;  %vm2981_vm12 = vmmov 0  }
 0x206   :  { %v544_v44 = vmul.f32 %v2411_v30, %v534_v19  ;;  %v535_v45 = vmul.f32 %v2007_v36, %v517_v29  ;;  %v1994_v36 = vld [vmem:[%s2965_s4 + $0x10] sm:$0xff]   ;;  %vm2982_vm13 = vmmov %vm2978_vm6 }
 0x207   :  { %v526_v50 = vadd.f32 1e-05, %v514_v32  ;;  %v509_v12 = vsub.f32 %v497_v24, %v503_v42 }
 0x208   :  { %v554_v14 = vadd.f32 %v2430_v41, %v544_v44  ;;  %v545_v55 = vmul.f32 %v2411_v30, %v535_v45  ;;  %1730 = vmatpush3.bf16.msra.mxu1 %v1994_v36 }
 0x209   :  { %2012 = vrsqrt.f32 %v526_v50  ;;  %v515_v59 = vmax.f32 %v509_v12, 0.0  ;;  %1731 = vmatprep.subr.bf16.mxu1 %v2088_v20 }
 0x20a   :  { %v560_v60 = vmax.f32 %v554_v14, 0.0  ;;  %v555_v37 = vadd.f32 %v2430_v41, %v545_v55 }
 0x20b   :  { %v2009_v63 = vpop.eup %2008  ;;  %v527_v0 = vadd.f32 1e-05, %v515_v59 }
 0x20c   :  { %v561_v1 = vmax.f32 %v555_v37, 0.0  ;;  %v536_v2 = vmul.f32 %v2009_v63, %v518_v61  ;;  %v566_v3 = vmul.f32 %v2446_v56, %v560_v60 }
 0x20d   :  { %v2011_v4 = vpop.eup %2010  ;;  %2014 = vrsqrt.f32 %v527_v0 }
 0x20e   :  { %v546_v5 = vmul.f32 %v2411_v30, %v536_v2  ;;  %v537_v43 = vmul.f32 %v2011_v4, %v519_v13  ;;  %v567_v46 = vmul.f32 %v2449_v58, %v561_v1  ;;  %v578_v8 = vrot.slane %v566_v3, 6 }
 0x20f   :  { %v2533_v4 = vsel %vm147_vm14, 1.0, %v2088_v20  ;;  %vm2983_vm14 = vmmov %vm2978_vm6 }
 0x210   :  { %v556_v47 = vadd.f32 %v2430_v41, %v546_v5  ;;  %v547_v54 = vmul.f32 %v2411_v30, %v537_v43  ;;  %v579_v11 = vrot.slane %v567_v46, 6  ;;  %v2473_v40 = vsel %vm172_vm0, 0.0, %v578_v8 }
 0x211   :  { %v631_v19 = vrot.slane %v2473_v40, 2  ;;  %v600_v44 = vrot.slane %v2473_v40, 1  ;;  %v662_v62 = vrot.slane %v2473_v40, 3  ;;  %v693_v6 = vrot.slane %v2473_v40, 4 }
 0x212   :  { %v562_v16 = vmax.f32 %v556_v47, 0.0  ;;  %v557_v17 = vadd.f32 %v2430_v41, %v547_v54  ;;  %v2483_v28 = vsel %vm172_vm0, %v578_v8, %v579_v11 }
 0x213   :  { %v2013_v23 = vpop.eup %2012  ;;  %v632_v34 = vrot.slane %v2483_v28, 2  ;;  %v601_v35 = vrot.slane %v2483_v28, 1  ;;  %v663_v12 = vrot.slane %v2483_v28, 3  ;;  %v694_v1 = vrot.slane %v2483_v28, 4 }
 0x214   :  { %v563_v26 = vmax.f32 %v557_v17, 0.0  ;;  %v538_v10 = vmul.f32 %v2013_v23, %v520_v21  ;;  %v568_v27 = vmul.f32 %v2467_v15, %v562_v16 }
 0x215   :  { %v633_v51 = vsel %vm227_vm3, %v631_v19, %v632_v34  ;;  %v602_v14 = vsel %vm195_vm1, %v600_v44, %v601_v35  ;;  %v664_v2 = vsel %vm259_vm2, %v662_v62, %v663_v12  ;;  %v695_v16 = vsel %vm291_vm4, %v693_v6, %v694_v1 }
 0x216   :  { %v548_v31 = vmul.f32 %v2411_v30, %v538_v10  ;;  %v581_v18 = vrot.slane %v568_v27, 6  ;;  %v569_v33 = vmul.f32 %v2476_v7, %v563_v26 }
 0x217   :  { %v2015_v29 = vpop.eup %2014 }
 0x218   :  { %v558_v57 = vadd.f32 %v2430_v41, %v548_v31  ;;  %v539_v25 = vmul.f32 %v2015_v29, %v521_v9  ;;  %v2501_v42 = vsel %vm172_vm0, %v579_v11, %v581_v18  ;;  %v583_v32 = vrot.slane %v569_v33, 6 }
 0x219   :  { %v634_v24 = vrot.slane %v2501_v42, 2  ;;  %v603_v45 = vrot.slane %v2501_v42, 1  ;;  %v665_v48 = vrot.slane %v2501_v42, 3  ;;  %v696_v0 = vrot.slane %v2501_v42, 4 }
 0x21a   :  { %v564_v49 = vmax.f32 %v558_v57, 0.0  ;;  %v549_v50 = vmul.f32 %v2411_v30, %v539_v25  ;;  %v2516_v61 = vsel %vm172_vm0, %v581_v18, %v583_v32  ;;  %v1995_v30 = vld [vmem:[%s2965_s4 + $0x18] sm:$0x3f]   ;;  %s2095_s4 = smov 36  }
 0x21b   :  { %v635_v52 = vsel %vm227_vm3, %v632_v34, %v634_v24  ;;  %v604_v55 = vsel %vm195_vm1, %v601_v35, %v603_v45  ;;  %v666_v63 = vsel %vm259_vm2, %v663_v12, %v665_v48  ;;  %v605_v3 = vrot.slane %v2516_v61, 1 }
 0x21c   :  { %v1873_v59 = vpack.i.bf16 %v635_v52, %v633_v51  ;;  %v1868_v60 = vpack.i.bf16 %v604_v55, %v602_v14  ;;  %v570_v37 = vmul.f32 %v2486_v53, %v564_v49  ;;  %v559_v13 = vadd.f32 %v2430_v41, %v549_v50 }
 0x21d   :  { %v801_v5 = vsel %vm227_vm3, %v1995_v30, 0  ;;  %v1878_v43 = vpack.i.bf16 %v666_v63, %v664_v2  ;;  %v697_v41 = vsel %vm291_vm4, %v694_v1, %v696_v0  ;;  %v667_v17 = vrot.slane %v2516_v61, 3 }
 0x21e   :  { %1874 = vrot.lane.b32.xlu0 %v1873_v59, %s2094_s10  ;;  %1869 = vrot.lane.b32.xlu1 %v1868_v60, %s2090_s15  ;;  %v585_v38 = vrot.slane %v570_v37, 6  ;;  %v565_v8 = vmax.f32 %v559_v13, 0.0  ;;  %v606_v22 = vsel %vm195_vm1, %v603_v45, %v605_v3  ;;  %v636_v39 = vrot.slane %v2516_v61, 2 }
 0x21f   :  { %1732 = vmatpush3.bf16.msra.mxu1 %v801_v5  ;;  %v1883_v27 = vpack.i.bf16 %v697_v41, %v695_v16  ;;  %v698_v18 = vrot.slane %v2516_v61, 4  ;;  %v668_v29 = vsel %vm259_vm2, %v665_v48, %v667_v17 }
 0x220   :  { %v2537_v46 = vsel %vm172_vm0, %v583_v32, %v585_v38  ;;  %1773 = vmatprep.subr.bf16.mxu1 %v2088_v20  ;;  %v571_v21 = vmul.f32 %v2533_v4, %v565_v8  ;;  %v637_v19 = vsel %vm227_vm3, %v634_v24, %v636_v39 }
 0x221   :  { %v607_v47 = vrot.slane %v2537_v46, 1  ;;  %v669_v54 = vrot.slane %v2537_v46, 3  ;;  %v638_v11 = vrot.slane %v2537_v46, 2  ;;  %v700_v26 = vrot.slane %v2537_v46, 4 }
 0x222   :  { %1879 = vrot.lane.b32.xlu1 %v1878_v43, %s2095_s4  ;;  %v587_v33 = vrot.slane %v571_v21, 6  ;;  %v699_v51 = vsel %vm291_vm4, %v696_v0, %v698_v18 }
 0x223   :  { %v608_v23 = vsel %vm195_vm1, %v605_v3, %v607_v47  ;;  %v670_v9 = vsel %vm259_vm2, %v667_v17, %v669_v54  ;;  %v639_v31 = vsel %vm227_vm3, %v636_v39, %v638_v11  ;;  %v701_v34 = vsel %vm291_vm4, %v698_v18, %v700_v26 }
 0x224   :  { %v1888_v10 = vpack.i.bf16 %v608_v23, %v606_v22  ;;  %v2562_v35 = vsel %vm172_vm0, %v585_v38, %v587_v33  ;;  %v597_v36 = vsel %vm172_vm0, %v587_v33, 0.0  ;;  %v1898_v57 = vpack.i.bf16 %v670_v9, %v668_v29 }
 0x225   :  { %v1893_v25 = vpack.i.bf16 %v639_v31, %v637_v19  ;;  %v609_v32 = vrot.slane %v2562_v35, 1  ;;  %v611_v44 = vrot.slane %v597_v36, 1  ;;  %v640_v45 = vrot.slane %v2562_v35, 2 }
 0x226   :  { %1889 = vrot.lane.b32.xlu0 %v1888_v10, %s2090_s15  ;;  %1884 = vrot.lane.b32.xlu1 %v1883_v27, %s2096_s11  ;;  %v642_v49 = vrot.slane %v597_v36, 2  ;;  %v671_v50 = vrot.slane %v2562_v35, 3  ;;  %v673_v48 = vrot.slane %v597_v36, 3  ;;  %v1903_v52 = vpack.i.bf16 %v701_v34, %v699_v51 }
 0x227   :  { %v610_v24 = vsel %vm195_vm1, %v607_v47, %v609_v32  ;;  %v612_v12 = vsel %vm195_vm1, %v609_v32, %v611_v44  ;;  %v702_v55 = vrot.slane %v2562_v35, 4  ;;  %v704_v59 = vrot.slane %v597_v36, 4 }
 0x228   :  { %v1908_v14 = vpack.i.bf16 %v612_v12, %v610_v24  ;;  %v641_v60 = vsel %vm227_vm3, %v638_v11, %v640_v45  ;;  %v643_v37 = vsel %vm227_vm3, %v640_v45, %v642_v49  ;;  %v672_v30 = vsel %vm259_vm2, %v669_v54, %v671_v50 }
 0x229   :  { %v674_v62 = vsel %vm259_vm2, %v671_v50, %v673_v48  ;;  %v1913_v63 = vpack.i.bf16 %v643_v37, %v641_v60  ;;  %v703_v0 = vsel %vm291_vm4, %v700_v26, %v702_v55  ;;  %v705_v1 = vsel %vm291_vm4, %v702_v55, %v704_v59 }
 0x22a   :  { %1899 = vrot.lane.b32.xlu0 %v1898_v57, %s2095_s4  ;;  %1894 = vrot.lane.b32.xlu1 %v1893_v25, %s2094_s10  ;;  %v1918_v38 = vpack.i.bf16 %v674_v62, %v672_v30  ;;  %v1923_v13 = vpack.i.bf16 %v705_v1, %v703_v0 }
 0x22e   :  { %1904 = vrot.lane.b32.xlu1 %v1903_v52, %s2096_s11  ;;  %1909 = vrot.lane.b32.xlu0 %v1908_v14, %s2090_s15 }
 0x232   :  { %1914 = vrot.lane.b32.xlu1 %v1913_v63, %s2094_s10  ;;  %1919 = vrot.lane.b32.xlu0 %v1918_v38, %s2095_s4  ;;  %s2099_s4 = smov 96  }
 0x236   :  { %1924 = vrot.lane.b32.xlu1 %v1923_v13, %s2096_s11 }
 0x290   :  { %v1870_v2 = vpop.permute.xlu1 %1869  ;;  %v1875_v3 = vpop.permute.xlu0 %1874 }
 0x291   :  { %v1872_v5 = vunpack.i.h.bf16 %v1870_v2  ;;  %v1871_v43 = vunpack.i.l.bf16 %v1870_v2  ;;  %v1877_v8 = vunpack.i.h.bf16 %v1875_v3  ;;  %v1876_v47 = vunpack.i.l.bf16 %v1875_v3 }
 0x293   :  { %v725_v41 = vsel %vm2977_vm15, %v2483_v28, %v1872_v5  ;;  %v724_v54 = vsel %vm2978_vm6, %v2473_v40, %v1871_v43 }
 0x294   :  { %v1880_v6 = vpop.permute.xlu1 %1879  ;;  %v731_v22 = vsel %vm730_vm5, %v724_v54, %v1876_v47  ;;  %v732_v23 = vsel %vm730_vm5, %v725_v41, %v1877_v8  ;;  %v1645_v47 = vld [vmem:[%s2964_s1 + $0x3] ss:$0 sm:$0xff] }
 0x295   :  { %v1882_v11 = vunpack.i.h.bf16 %v1880_v6  ;;  %v1881_v16 = vunpack.i.l.bf16 %v1880_v6 }
 0x297   :  { %v738_v10 = vsel %vm737_vm9, %v731_v22, %v1881_v16  ;;  %v739_v27 = vsel %vm737_vm9, %v732_v23, %v1882_v11 }
 0x298   :  { %v1890_v17 = vpop.permute.xlu0 %1889  ;;  %v1885_v21 = vpop.permute.xlu1 %1884 }
 0x299   :  { %v1887_v39 = vunpack.i.h.bf16 %v1885_v21  ;;  %v1886_v26 = vunpack.i.l.bf16 %v1885_v21  ;;  %v1892_v28 = vunpack.i.h.bf16 %v1890_v17  ;;  %v1891_v9 = vunpack.i.l.bf16 %v1890_v17 }
 0x29b   :  { %v745_v40 = vsel %vm744_vm7, %v738_v10, %v1886_v26  ;;  %v746_v31 = vsel %vm744_vm7, %v739_v27, %v1887_v39  ;;  %v727_v36 = vsel %vm2979_vm11, %v2516_v61, %v1892_v28  ;;  %v726_v57 = vsel %vm2980_vm8, %v2501_v42, %v1891_v9 }
 0x29c   :  { %v751_v18 = vpack.c.bf16 %v746_v31, %v745_v40  ;;  %v1900_v33 = vpop.permute.xlu0 %1899  ;;  %v1895_v29 = vpop.permute.xlu1 %1894 }
 0x29d   :  { %v1897_v19 = vunpack.i.h.bf16 %v1895_v29  ;;  %v1896_v34 = vunpack.i.l.bf16 %v1895_v29  ;;  %v1902_v25 = vunpack.i.h.bf16 %v1900_v33  ;;  %v1901_v32 = vunpack.i.l.bf16 %v1900_v33 }
 0x29e   :  { %1734 = vmatmul.mubr.msk.bf16.vlgmr.msra.gmra.mrb[0].mxu1 %vm790_vm10, %v751_v18 }
 0x29f   :  { %v734_v44 = vsel %vm730_vm5, %v727_v36, %v1897_v19  ;;  %v733_v45 = vsel %vm730_vm5, %v726_v57, %v1896_v34  ;;  %1737 = vmatprep.mubr.msk.bf16.mxu1 %vm2981_vm12, %v2088_v20 }
 0x2a0   :  { %v1910_v49 = vpop.permute.xlu0 %1909  ;;  %v1905_v50 = vpop.permute.xlu1 %1904  ;;  %v740_v51 = vsel %vm737_vm9, %v733_v45, %v1901_v32  ;;  %v741_v42 = vsel %vm737_vm9, %v734_v44, %v1902_v25 }
 0x2a1   :  { %v1907_v48 = vunpack.i.h.bf16 %v1905_v50  ;;  %v1906_v24 = vunpack.i.l.bf16 %v1905_v50  ;;  %v1912_v12 = vunpack.i.h.bf16 %v1910_v49  ;;  %v1911_v61 = vunpack.i.l.bf16 %v1910_v49 }
 0x2a3   :  { %v747_v52 = vsel %vm744_vm7, %v740_v51, %v1906_v24  ;;  %v748_v14 = vsel %vm744_vm7, %v741_v42, %v1907_v48  ;;  %v729_v62 = vsel %vm2982_vm13, %v2562_v35, %v1912_v12  ;;  %v728_v63 = vsel %vm2983_vm14, %v2537_v46, %v1911_v61 }
 0x2a4   :  { %v752_v55 = vpack.c.bf16 %v748_v14, %v747_v52  ;;  %v1920_v59 = vpop.permute.xlu0 %1919  ;;  %v1915_v60 = vpop.permute.xlu1 %1914 }
 0x2a5   :  { %v1917_v37 = vunpack.i.h.bf16 %v1915_v60  ;;  %v1916_v30 = vunpack.i.l.bf16 %v1915_v60  ;;  %v1922_v38 = vunpack.i.h.bf16 %v1920_v59  ;;  %v1921_v0 = vunpack.i.l.bf16 %v1920_v59 }
 0x2a6   :  { %1738 = vmatmul.mubr.msk.bf16.gmra.mrb[4].mxu1 %vm790_vm10, %v752_v55 }
 0x2a7   :  { %v736_v1 = vsel %vm730_vm5, %v729_v62, %v1917_v37  ;;  %v735_v13 = vsel %vm730_vm5, %v728_v63, %v1916_v30  ;;  %1741 = vmatprep.mubr.msk.bf16.mxu1 %vm2981_vm12, %v2088_v20 }
 0x2a8   :  { %v1925_v2 = vpop.permute.xlu1 %1924  ;;  %v742_v43 = vsel %vm737_vm9, %v735_v13, %v1921_v0  ;;  %v743_v35 = vsel %vm737_vm9, %v736_v1, %v1922_v38 }
 0x2a9   :  { %v1927_v3 = vunpack.i.h.bf16 %v1925_v2  ;;  %v1926_v5 = vunpack.i.l.bf16 %v1925_v2 }
 0x2ab   :  { %v749_v46 = vsel %vm744_vm7, %v742_v43, %v1926_v5  ;;  %v750_v6 = vsel %vm744_vm7, %v743_v35, %v1927_v3 }
 0x2ac   :  { %v753_v8 = vpack.c.bf16 %v750_v6, %v749_v46 }
 0x2ae   :  { %1742 = vmatmul.mubr.msk.bf16.gmra.mrb[8].mxu1 %vm790_vm10, %v753_v8 }
 0x2af   :  { %1779 = vmatprep.mubr.msk.bf16.mxu1 %vm2981_vm12, %v2088_v20 }
 0x371   :  { %v837_v41 = vpop.f32.mrb[0].mxu1 }
 0x372   :  { %v838_v54 = vadd.f32 %v1645_v47, %v837_v41  ;;  %v1735_v11 = vpop.f32.mrb[1].mxu1 }
 0x373   :  { %v840_v16 = vpop.f32.mrb[2].mxu1 }
 0x374   :  { %v1653_v17 = vmul.f32 -1.442695, %v838_v54  ;;  %v841_v21 = vadd.f32 %v1645_v47, %v840_v16  ;;  %v1736_v22 = vpop.f32.mrb[3].mxu1 }
 0x376   :  { %2016 = vpow2.f32 %v1653_v17  ;;  %v1654_v23 = vmul.f32 -1.442695, %v841_v21 }
 0x378   :  { %2018 = vpow2.f32 %v1654_v23 }
 0x379   :  { %v845_v39 = vpop.f32.mrb[4].mxu1 }
 0x37a   :  { %v2627_v26 = vadd.f32 %v1645_v47, %v845_v39  ;;  %v1739_v10 = vpop.f32.mrb[5].mxu1 }
 0x37b   :  { %v848_v27 = vpop.f32.mrb[6].mxu1 }
 0x37c   :  { %v1655_v28 = vmul.f32 -1.442695, %v2627_v26  ;;  %v2630_v9 = vadd.f32 %v1645_v47, %v848_v27  ;;  %v1740_v40 = vpop.f32.mrb[7].mxu1 }
 0x37e   :  { %2020 = vpow2.f32 %v1655_v28  ;;  %v1656_v31 = vmul.f32 -1.442695, %v2630_v9 }
 0x380   :  { %v2017_v18 = vpop.eup %2016  ;;  %2022 = vpow2.f32 %v1656_v31  ;;  %v1996_v31 = vld [vmem:[%s2966_s5] sm:$0xff]  }
 0x381   :  { %v878_v33 = vadd.f32 1.0, %v2017_v18  ;;  %v853_v29 = vpop.f32.mrb[8].mxu1  ;;  %1746 = vmatpush3.bf16.msra.mxu0 %v1996_v31  ;;  %v1997_v18 = vld [vmem:[%s2966_s5 + $0x8] sm:$0xff]  }
 0x382   :  { %v2019_v19 = vpop.eup %2018  ;;  %v2633_v34 = vadd.f32 %v1645_v47, %v853_v29  ;;  %v1743_v36 = vpop.f32.mrb[9].mxu1  ;;  %1747 = vmatprep.subr.bf16.mxu0 %v2088_v20  ;;  %v1999_v29 = vld [vmem:[%s2966_s5 + $0x18] sm:$0xff]  }
 0x383   :  { %2024 = vrcp.f32 %v878_v33  ;;  %v879_v57 = vadd.f32 1.0, %v2019_v19  ;;  %v856_v25 = vpop.f32.mrb[10].mxu1  ;;  %v1998_v33 = vld [vmem:[%s2966_s5 + $0x10] sm:$0xff]   ;;  %v2000_v19 = vld [vmem:[%s2966_s5 + $0x20] sm:$0xff]  }
 0x384   :  { %v1657_v32 = vmul.f32 -1.442695, %v2633_v34  ;;  %v857_v44 = vadd.f32 %v1645_v47, %v856_v25  ;;  %v1744_v45 = vpop.f32.mrb[11].mxu1 }
 0x385   :  { %2026 = vrcp.f32 %v879_v57  ;;  %1748 = vmatpush3.bf16.msra.mxu0 %v1997_v18  ;;  %v2719_v18 = vld [vmem:[%s2964_s1 + $0x5] ss:$0 sm:$0xff] }
 0x386   :  { %2028 = vpow2.f32 %v1657_v32  ;;  %v1658_v49 = vmul.f32 -1.442695, %v857_v44  ;;  %1749 = vmatprep.subr.bf16.mxu0 %v2088_v20 }
 0x388   :  { %v2021_v50 = vpop.eup %2020  ;;  %2030 = vpow2.f32 %v1658_v49 }
 0x389   :  { %v880_v48 = vadd.f32 1.0, %v2021_v50  ;;  %1750 = vmatpush3.bf16.msra.mxu0 %v1998_v33 }
 0x38a   :  { %v2023_v24 = vpop.eup %2022  ;;  %1751 = vmatprep.subr.bf16.mxu0 %v2088_v20 }
 0x38b   :  { %2032 = vrcp.f32 %v880_v48  ;;  %v881_v12 = vadd.f32 1.0, %v2023_v24 }
 0x38d   :  { %v2025_v61 = vpop.eup %2024  ;;  %2034 = vrcp.f32 %v881_v12  ;;  %1752 = vmatpush3.bf16.msra.mxu0 %v1999_v29 }
 0x38e   :  { %902 = vrot.lane.b32.xlu0 %v2025_v61, %s2097_s14  ;;  %1753 = vmatprep.subr.bf16.mxu0 %v2088_v20 }
 0x38f   :  { %v2027_v51 = vpop.eup %2026 }
 0x390   :  { %v2029_v42 = vpop.eup %2028  ;;  %904 = vrot.lane.b32.xlu1 %v2027_v51, %s2097_s14 }
 0x391   :  { %v882_v52 = vadd.f32 1.0, %v2029_v42  ;;  %1754 = vmatpush3.bf16.msra.mxu0 %v2000_v19 }
 0x392   :  { %v2031_v14 = vpop.eup %2030  ;;  %1755 = vmatprep.subr.bf16.mxu0 %v2088_v20 }
 0x393   :  { %2036 = vrcp.f32 %v882_v52  ;;  %v883_v55 = vadd.f32 1.0, %v2031_v14 }
 0x395   :  { %v2033_v59 = vpop.eup %2032  ;;  %2038 = vrcp.f32 %v883_v55 }
 0x396   :  { %906 = vrot.lane.b32.xlu0 %v2033_v59, %s2097_s14 }
 0x397   :  { %v2035_v60 = vpop.eup %2034 }
 0x398   :  { %908 = vrot.lane.b32.xlu1 %v2035_v60, %s2097_s14 }
 0x39d   :  { %v2037_v37 = vpop.eup %2036 }
 0x39e   :  { %910 = vrot.lane.b32.xlu0 %v2037_v37, %s2097_s14 }
 0x39f   :  { %v2039_v30 = vpop.eup %2038 }
 0x3a0   :  { %912 = vrot.lane.b32.xlu1 %v2039_v30, %s2097_s14 }
 0x400   :  { %v903_v62 = vpop.permute.xlu0 %902 }
 0x401   :  { %v2642_v63 = vmul.f32 %v903_v62, %v838_v54 }
 0x402   :  { %v905_v38 = vpop.permute.xlu1 %904 }
 0x403   :  { %v2644_v0 = vmul.f32 %v905_v38, %v841_v21  ;;  %v928_v1 = vsel %vm730_vm5, %v2642_v63, 0.0  ;;  %v953_v13 = vmul.f32 %v2642_v63, %v2642_v63 }
 0x404   :  { %929 = vadd.xlane.f32.xlu0 %v928_v1 }
 0x405   :  { %v931_v2 = vsel %vm730_vm5, %v2644_v0, 0.0  ;;  %v954_v3 = vmul.f32 %v2644_v0, %v2644_v0  ;;  %v959_v5 = vsel %vm730_vm5, %v953_v13, 0.0 }
 0x406   :  { %932 = vadd.xlane.f32.xlu1 %v931_v2 }
 0x407   :  { %v962_v46 = vsel %vm730_vm5, %v954_v3, 0.0 }
 0x408   :  { %v907_v43 = vpop.permute.xlu0 %906  ;;  %960 = vadd.xlane.f32.xlu0 %v959_v5 }
 0x409   :  { %v2656_v35 = vmul.f32 %v907_v43, %v2627_v26 }
 0x40a   :  { %v909_v6 = vpop.permute.xlu1 %908  ;;  %963 = vadd.xlane.f32.xlu1 %v962_v46 }
 0x40b   :  { %v2660_v8 = vmul.f32 %v909_v6, %v2630_v9  ;;  %v934_v47 = vsel %vm730_vm5, %v2656_v35, 0.0  ;;  %v955_v41 = vmul.f32 %v2656_v35, %v2656_v35 }
 0x40c   :  { %935 = vadd.xlane.f32.xlu0 %v934_v47 }
 0x40d   :  { %v937_v54 = vsel %vm730_vm5, %v2660_v8, 0.0  ;;  %v956_v11 = vmul.f32 %v2660_v8, %v2660_v8  ;;  %v965_v16 = vsel %vm730_vm5, %v955_v41, 0.0 }
 0x40e   :  { %938 = vadd.xlane.f32.xlu1 %v937_v54 }
 0x40f   :  { %v968_v22 = vsel %vm730_vm5, %v956_v11, 0.0 }
 0x410   :  { %966 = vadd.xlane.f32.xlu0 %v965_v16  ;;  %v911_v17 = vpop.permute.xlu0 %910 }
 0x411   :  { %v2672_v21 = vmul.f32 %v911_v17, %v2633_v34 }
 0x412   :  { %969 = vadd.xlane.f32.xlu1 %v968_v22  ;;  %v913_v23 = vpop.permute.xlu1 %912 }
 0x413   :  { %v2675_v39 = vmul.f32 %v913_v23, %v857_v44  ;;  %v940_v26 = vsel %vm730_vm5, %v2672_v21, 0.0  ;;  %v957_v10 = vmul.f32 %v2672_v21, %v2672_v21 }
 0x414   :  { %941 = vadd.xlane.f32.xlu0 %v940_v26 }
 0x415   :  { %v943_v27 = vsel %vm730_vm5, %v2675_v39, 0.0  ;;  %v971_v28 = vsel %vm730_vm5, %v957_v10, 0.0  ;;  %v958_v9 = vmul.f32 %v2675_v39, %v2675_v39  ;;  %v2713_v10 = vld [vmem:[%s2964_s1 + $0x4] ss:$0 sm:$0xff] }
 0x416   :  { %944 = vadd.xlane.f32.xlu1 %v943_v27 }
 0x417   :  { %v974_v40 = vsel %vm730_vm5, %v958_v9, 0.0 }
 0x418   :  { %972 = vadd.xlane.f32.xlu0 %v971_v28 }
 0x41c   :  { %975 = vadd.xlane.f32.xlu0 %v974_v40 }
 0x491   :  { %v930_v34 = vpop.xlane.xlu0 %929 }
 0x492   :  { %v947_v36 = vmul.f32 0.041666668, %v930_v34 }
 0x493   :  { %v933_v57 = vpop.xlane.xlu1 %932 }
 0x494   :  { %v948_v25 = vmul.f32 0.041666668, %v933_v57  ;;  %v983_v44 = vmul.f32 %v947_v36, %v947_v36  ;;  %v1001_v23 = vsub.f32 %v2642_v63, %v947_v36 }
 0x495   :  { %v961_v32 = vpop.xlane.xlu0 %960 }
 0x496   :  { %v977_v45 = vmul.f32 0.041666668, %v961_v32  ;;  %v984_v50 = vmul.f32 %v948_v25, %v948_v25  ;;  %v1002_v28 = vsub.f32 %v2644_v0, %v948_v25 }
 0x497   :  { %v964_v49 = vpop.xlane.xlu1 %963 }
 0x498   :  { %v989_v48 = vsub.f32 %v977_v45, %v983_v44  ;;  %v978_v24 = vmul.f32 0.041666668, %v964_v49 }
 0x499   :  { %v936_v12 = vpop.xlane.xlu0 %935 }
 0x49a   :  { %v995_v61 = vmax.f32 %v989_v48, 0.0  ;;  %v990_v51 = vsub.f32 %v978_v24, %v984_v50  ;;  %v949_v42 = vmul.f32 0.041666668, %v936_v12 }
 0x49b   :  { %v939_v52 = vpop.xlane.xlu1 %938 }
 0x49c   :  { %v1007_v14 = vadd.f32 1e-05, %v995_v61  ;;  %v996_v55 = vmax.f32 %v990_v51, 0.0  ;;  %v950_v59 = vmul.f32 0.041666668, %v939_v52  ;;  %v985_v30 = vmul.f32 %v949_v42, %v949_v42 }
 0x49d   :  { %v967_v60 = vpop.xlane.xlu0 %966  ;;  %v1003_v45 = vsub.f32 %v2656_v35, %v949_v42  ;;  %v2001_v42 = vld [vmem:[%s2966_s5 + $0x28] sm:$0xff]  }
 0x49e   :  { %2040 = vrsqrt.f32 %v1007_v14  ;;  %v1008_v37 = vadd.f32 1e-05, %v996_v55  ;;  %v979_v62 = vmul.f32 0.041666668, %v967_v60  ;;  %v986_v1 = vmul.f32 %v950_v59, %v950_v59  ;;  %1756 = vmatpush3.bf16.msra.mxu0 %v2001_v42 }
 0x49f   :  { %v970_v38 = vpop.xlane.xlu1 %969  ;;  %v1004_v24 = vsub.f32 %v2660_v8, %v950_v59  ;;  %1757 = vmatprep.subr.bf16.mxu0 %v2088_v20 }
 0x4a0   :  { %2042 = vrsqrt.f32 %v1008_v37  ;;  %v991_v13 = vsub.f32 %v979_v62, %v985_v30  ;;  %v980_v2 = vmul.f32 0.041666668, %v970_v38 }
 0x4a1   :  { %v942_v3 = vpop.xlane.xlu0 %941 }
 0x4a2   :  { %v997_v5 = vmax.f32 %v991_v13, 0.0  ;;  %v992_v43 = vsub.f32 %v980_v2, %v986_v1  ;;  %v951_v46 = vmul.f32 0.041666668, %v942_v3 }
 0x4a3   :  { %v945_v6 = vpop.xlane.xlu1 %944 }
 0x4a4   :  { %v1009_v47 = vadd.f32 1e-05, %v997_v5  ;;  %v998_v41 = vmax.f32 %v992_v43, 0.0  ;;  %v987_v54 = vmul.f32 %v951_v46, %v951_v46  ;;  %v2707_v17 = vmul.f32 0.041666668, %v945_v6 }
 0x4a5   :  { %v973_v11 = vpop.xlane.xlu0 %972  ;;  %v1005_v59 = vsub.f32 %v2672_v21, %v951_v46  ;;  %v2002_v46 = vld [vmem:[%s2966_s5 + $0x30] sm:$0xff]  }
 0x4a6   :  { %2044 = vrsqrt.f32 %v1009_v47  ;;  %v1010_v16 = vadd.f32 1e-05, %v998_v41  ;;  %v981_v22 = vmul.f32 0.041666668, %v973_v11  ;;  %v988_v63 = vmul.f32 %v2707_v17, %v2707_v17  ;;  %1758 = vmatpush3.bf16.msra.mxu0 %v2002_v46 }
 0x4a7   :  { %v1006_v5 = vsub.f32 %v2675_v39, %v2707_v17  ;;  %1759 = vmatprep.subr.bf16.mxu0 %v2088_v20 }
 0x4a8   :  { %v2041_v26 = vpop.eup %2040  ;;  %2046 = vrsqrt.f32 %v1010_v16  ;;  %v993_v27 = vsub.f32 %v981_v22, %v987_v54 }
 0x4a9   :  { %v1019_v9 = vmul.f32 %v2041_v26, %v1001_v23  ;;  %v976_v40 = vpop.xlane.xlu0 %975 }
 0x4aa   :  { %v2043_v31 = vpop.eup %2042  ;;  %v999_v33 = vmax.f32 %v993_v27, 0.0  ;;  %v982_v29 = vmul.f32 0.041666668, %v976_v40 }
 0x4ab   :  { %v1029_v19 = vmul.f32 %v2713_v10, %v1019_v9  ;;  %v1020_v34 = vmul.f32 %v2043_v31, %v1002_v28 }
 0x4ac   :  { %v1011_v36 = vadd.f32 1e-05, %v999_v33  ;;  %v994_v57 = vsub.f32 %v982_v29, %v988_v63 }
 0x4ad   :  { %v1039_v0 = vadd.f32 %v2719_v18, %v1029_v19  ;;  %v1030_v25 = vmul.f32 %v2713_v10, %v1020_v34  ;;  %v2003_v34 = vld [vmem:[%s2966_s5 + $0x38] ss:$0 sps:$4 sm:$0xff]   ;;  %s2098_s5 = smov 72  }
 0x4ae   :  { %2048 = vrsqrt.f32 %v1011_v36  ;;  %v1000_v32 = vmax.f32 %v994_v57, 0.0 }
 0x4af   :  { %v1040_v44 = vadd.f32 %v2719_v18, %v1030_v25  ;;  %v1045_v48 = vmul.f32 %v2446_v56, %v1039_v0 }
 0x4b0   :  { %v2045_v49 = vpop.eup %2044  ;;  %v1012_v50 = vadd.f32 1e-05, %v1000_v32 }
 0x4b1   :  { %v1021_v12 = vmul.f32 %v2045_v49, %v1003_v45  ;;  %v1046_v61 = vmul.f32 %v2449_v58, %v1040_v44  ;;  %v1057_v60 = vrot.slane %v1045_v48, 6  ;;  %v1308_v49 = vsel %vm291_vm4, %v2003_v34, 0 }
 0x4b2   :  { %v2047_v51 = vpop.eup %2046  ;;  %2050 = vrsqrt.f32 %v1012_v50  ;;  %1760 = vmatpush3.bf16.msra.mxu0 %v1308_v49 }
 0x4b3   :  { %v1031_v52 = vmul.f32 %v2713_v10, %v1021_v12  ;;  %v1022_v14 = vmul.f32 %v2047_v51, %v1004_v24  ;;  %v1058_v55 = vrot.slane %v1046_v61, 6  ;;  %v2744_v1 = vsel %vm172_vm0, 0.0, %v1057_v60 }
 0x4b4   :  { %v1110_v41 = vrot.slane %v2744_v1, 2  ;;  %v1079_v54 = vrot.slane %v2744_v1, 1  ;;  %v1141_v19 = vrot.slane %v2744_v1, 3  ;;  %v1172_v12 = vrot.slane %v2744_v1, 4 }
 0x4b5   :  { %v1041_v37 = vadd.f32 %v2719_v18, %v1031_v52  ;;  %v1032_v35 = vmul.f32 %v2713_v10, %v1022_v14  ;;  %v2741_v62 = vsel %vm172_vm0, %v1057_v60, %v1058_v55 }
 0x4b6   :  { %v1111_v21 = vrot.slane %v2741_v62, 2  ;;  %v1080_v43 = vrot.slane %v2741_v62, 1  ;;  %v1142_v27 = vrot.slane %v2741_v62, 3  ;;  %v1173_v44 = vrot.slane %v2741_v62, 4 }
 0x4b7   :  { %v1042_v8 = vadd.f32 %v2719_v18, %v1032_v35  ;;  %v1047_v30 = vmul.f32 %v2467_v15, %v1041_v37 }
 0x4b8   :  { %v2049_v38 = vpop.eup %2048  ;;  %v1112_v28 = vsel %vm227_vm3, %v1110_v41, %v1111_v21  ;;  %v1081_v40 = vsel %vm195_vm1, %v1079_v54, %v1080_v43  ;;  %v1143_v32 = vsel %vm259_vm2, %v1141_v19, %v1142_v27 }
 0x4b9   :  { %v1023_v13 = vmul.f32 %v2049_v38, %v1005_v59  ;;  %v1060_v2 = vrot.slane %v1047_v30, 6  ;;  %v1048_v3 = vmul.f32 %v2476_v7, %v1042_v8 }
 0x4bb   :  { %v1033_v6 = vmul.f32 %v2713_v10, %v1023_v13  ;;  %v2757_v47 = vsel %vm172_vm0, %v1058_v55, %v1060_v2  ;;  %v1062_v22 = vrot.slane %v1048_v3, 6  ;;  %v1174_v55 = vsel %vm291_vm4, %v1172_v12, %v1173_v44 }
 0x4bc   :  { %v2051_v11 = vpop.eup %2050  ;;  %v1113_v39 = vrot.slane %v2757_v47, 2  ;;  %v1082_v16 = vrot.slane %v2757_v47, 1  ;;  %v1144_v17 = vrot.slane %v2757_v47, 3  ;;  %v1175_v57 = vrot.slane %v2757_v47, 4 }
 0x4bd   :  { %v1043_v23 = vadd.f32 %v2719_v18, %v1033_v6  ;;  %v1024_v26 = vmul.f32 %v2051_v11, %v1006_v5  ;;  %v2780_v25 = vsel %vm172_vm0, %v1060_v2, %v1062_v22 }
 0x4be   :  { %v1114_v9 = vsel %vm227_vm3, %v1111_v21, %v1113_v39  ;;  %v1083_v31 = vsel %vm195_vm1, %v1080_v43, %v1082_v16  ;;  %v1145_v36 = vsel %vm259_vm2, %v1142_v27, %v1144_v17  ;;  %v1084_v48 = vrot.slane %v2780_v25, 1 }
 0x4bf   :  { %v1034_v63 = vmul.f32 %v2713_v10, %v1024_v26  ;;  %v1933_v33 = vpack.i.bf16 %v1114_v9, %v1112_v28  ;;  %v1928_v29 = vpack.i.bf16 %v1083_v31, %v1081_v40  ;;  %v1049_v0 = vmul.f32 %v2486_v53, %v1043_v23 }
 0x4c0   :  { %v1938_v50 = vpack.i.bf16 %v1145_v36, %v1143_v32  ;;  %v1176_v61 = vsel %vm291_vm4, %v1173_v44, %v1175_v57  ;;  %v1115_v60 = vrot.slane %v2780_v25, 2  ;;  %v1085_v42 = vsel %vm195_vm1, %v1082_v16, %v1084_v48 }
 0x4c1   :  { %1934 = vrot.lane.b32.xlu0 %v1933_v33, %s2096_s11  ;;  %1929 = vrot.lane.b32.xlu1 %v1928_v29, %s2094_s10  ;;  %v1044_v10 = vadd.f32 %v2719_v18, %v1034_v63  ;;  %v1064_v45 = vrot.slane %v1049_v0, 6  ;;  %v1943_v35 = vpack.i.bf16 %v1176_v61, %v1174_v55  ;;  %v1146_v59 = vrot.slane %v2780_v25, 3 }
 0x4c2   :  { %v1116_v21 = vsel %vm227_vm3, %v1113_v39, %v1115_v60  ;;  %v1177_v43 = vrot.slane %v2780_v25, 4 }
 0x4c3   :  { %v1050_v24 = vmul.f32 %v2533_v4, %v1044_v10  ;;  %v2793_v51 = vsel %vm172_vm0, %v1062_v22, %v1064_v45  ;;  %v1147_v54 = vsel %vm259_vm2, %v1144_v17, %v1146_v59 }
 0x4c4   :  { %v1086_v18 = vrot.slane %v2793_v51, 1  ;;  %v1117_v52 = vrot.slane %v2793_v51, 2  ;;  %v1148_v14 = vrot.slane %v2793_v51, 3  ;;  %v1179_v13 = vrot.slane %v2793_v51, 4 }
 0x4c5   :  { %1939 = vrot.lane.b32.xlu1 %v1938_v50, %s2098_s5  ;;  %v1066_v37 = vrot.slane %v1050_v24, 6  ;;  %v1178_v9 = vsel %vm291_vm4, %v1175_v57, %v1177_v43 }
 0x4c6   :  { %v1087_v8 = vsel %vm195_vm1, %v1084_v48, %v1086_v18  ;;  %v1118_v38 = vsel %vm227_vm3, %v1115_v60, %v1117_v52  ;;  %v1149_v2 = vsel %vm259_vm2, %v1146_v59, %v1148_v14  ;;  %v1180_v16 = vsel %vm291_vm4, %v1177_v43, %v1179_v13 }
 0x4c7   :  { %v1948_v30 = vpack.i.bf16 %v1087_v8, %v1085_v42  ;;  %v2809_v3 = vsel %vm172_vm0, %v1064_v45, %v1066_v37  ;;  %v1076_v5 = vsel %vm172_vm0, %v1066_v37, 0.0  ;;  %v1953_v41 = vpack.i.bf16 %v1118_v38, %v1116_v21 }
 0x4c8   :  { %v1088_v46 = vrot.slane %v2809_v3, 1  ;;  %v1090_v6 = vrot.slane %v1076_v5, 1  ;;  %v1958_v11 = vpack.i.bf16 %v1149_v2, %v1147_v54  ;;  %v1119_v22 = vrot.slane %v2809_v3, 2 }
 0x4c9   :  { %1944 = vrot.lane.b32.xlu1 %v1943_v35, %s2099_s4  ;;  %1949 = vrot.lane.b32.xlu0 %v1948_v30, %s2094_s10  ;;  %v1121_v23 = vrot.slane %v1076_v5, 2  ;;  %v1150_v27 = vrot.slane %v2809_v3, 3  ;;  %v1152_v28 = vrot.slane %v1076_v5, 3  ;;  %v1963_v17 = vpack.i.bf16 %v1180_v16, %v1178_v9 }
 0x4ca   :  { %v1089_v26 = vsel %vm195_vm1, %v1086_v18, %v1088_v46  ;;  %v1091_v39 = vsel %vm195_vm1, %v1088_v46, %v1090_v6  ;;  %v1181_v40 = vrot.slane %v2809_v3, 4  ;;  %v1120_v63 = vsel %vm227_vm3, %v1117_v52, %v1119_v22 }
 0x4cb   :  { %v1968_v31 = vpack.i.bf16 %v1091_v39, %v1089_v26  ;;  %v1122_v33 = vsel %vm227_vm3, %v1119_v22, %v1121_v23  ;;  %v1183_v29 = vrot.slane %v1076_v5, 4  ;;  %v1151_v19 = vsel %vm259_vm2, %v1148_v14, %v1150_v27 }
 0x4cc   :  { %v1153_v34 = vsel %vm259_vm2, %v1150_v27, %v1152_v28  ;;  %v1973_v36 = vpack.i.bf16 %v1122_v33, %v1120_v63  ;;  %v1182_v57 = vsel %vm291_vm4, %v1179_v13, %v1181_v40  ;;  %vm1215_vm0 = vcmask 588800  }
 0x4cd   :  { %1954 = vrot.lane.b32.xlu1 %v1953_v41, %s2096_s11  ;;  %1959 = vrot.lane.b32.xlu0 %v1958_v11, %s2098_s5  ;;  %v1978_v0 = vpack.i.bf16 %v1153_v34, %v1151_v19  ;;  %v1184_v10 = vsel %vm291_vm4, %v1181_v40, %v1183_v29  ;;  %vm1222_vm1 = vcmask 785408   ;;  %vm1297_vm2 = vcmask 982016  }
 0x4ce   :  { %v1983_v32 = vpack.i.bf16 %v1184_v10, %v1182_v57  ;;  %vm1625_vm3 = vcmask 387072  }
 0x4d1   :  { %1964 = vrot.lane.b32.xlu1 %v1963_v17, %s2099_s4  ;;  %1969 = vrot.lane.b32.xlu0 %v1968_v31, %s2094_s10 }
 0x4d5   :  { %1974 = vrot.lane.b32.xlu1 %v1973_v36, %s2096_s11  ;;  %1979 = vrot.lane.b32.xlu0 %v1978_v0, %s2098_s5 }
 0x4d9   :  { %1984 = vrot.lane.b32.xlu1 %v1983_v32, %s2099_s4 }
 0x533   :  { %v1930_v44 = vpop.permute.xlu1 %1929  ;;  %v1935_v45 = vpop.permute.xlu0 %1934 }
 0x534   :  { %v1932_v49 = vunpack.i.h.bf16 %v1930_v44  ;;  %v1931_v50 = vunpack.i.l.bf16 %v1930_v44  ;;  %v1937_v24 = vunpack.i.h.bf16 %v1935_v45  ;;  %v1936_v12 = vunpack.i.l.bf16 %v1935_v45 }
 0x536   :  { %v1204_v61 = vsel %vm730_vm5, %v2741_v62, %v1932_v49  ;;  %v1203_v18 = vsel %vm730_vm5, %v2744_v1, %v1931_v50 }
 0x537   :  { %v1940_v48 = vpop.permute.xlu1 %1939  ;;  %v1209_v60 = vsel %vm744_vm7, %v1203_v18, %v1936_v12  ;;  %v1210_v37 = vsel %vm744_vm7, %v1204_v61, %v1937_v24  ;;  %v1661_v12 = vld [vmem:[%s2964_s1 + $0x6] ss:$0 sm:$0xff] }
 0x538   :  { %v1942_v52 = vunpack.i.h.bf16 %v1940_v48  ;;  %v1941_v14 = vunpack.i.l.bf16 %v1940_v48 }
 0x53a   :  { %v1216_v59 = vsel %vm1215_vm0, %v1209_v60, %v1941_v14  ;;  %v1217_v30 = vsel %vm1215_vm0, %v1210_v37, %v1942_v52 }
 0x53b   :  { %v1945_v55 = vpop.permute.xlu1 %1944  ;;  %v1950_v35 = vpop.permute.xlu0 %1949 }
 0x53c   :  { %v1947_v42 = vunpack.i.h.bf16 %v1945_v55  ;;  %v1946_v8 = vunpack.i.l.bf16 %v1945_v55  ;;  %v1952_v62 = vunpack.i.h.bf16 %v1950_v35  ;;  %v1951_v38 = vunpack.i.l.bf16 %v1950_v35 }
 0x53e   :  { %v1223_v1 = vsel %vm1222_vm1, %v1216_v59, %v1946_v8  ;;  %v1224_v13 = vsel %vm1222_vm1, %v1217_v30, %v1947_v42  ;;  %v1206_v6 = vsel %vm730_vm5, %v2780_v25, %v1952_v62  ;;  %v1205_v41 = vsel %vm730_vm5, %v2757_v47, %v1951_v38 }
 0x53f   :  { %v1229_v2 = vpack.c.bf16 %v1224_v13, %v1223_v1  ;;  %v1955_v5 = vpop.permute.xlu1 %1954  ;;  %v1960_v21 = vpop.permute.xlu0 %1959 }
 0x540   :  { %v1957_v43 = vunpack.i.h.bf16 %v1955_v5  ;;  %v1956_v46 = vunpack.i.l.bf16 %v1955_v5  ;;  %v1962_v54 = vunpack.i.h.bf16 %v1960_v21  ;;  %v1961_v11 = vunpack.i.l.bf16 %v1960_v21 }
 0x541   :  { %1762 = vmatmul.mubr.msk.bf16.vlgmr.msra.gmra.mrb[12].mxu0 %vm1297_vm2, %v1229_v2 }
 0x542   :  { %v1212_v16 = vsel %vm744_vm7, %v1206_v6, %v1957_v43  ;;  %v1211_v22 = vsel %vm744_vm7, %v1205_v41, %v1956_v46  ;;  %1765 = vmatprep.mubr.msk.bf16.mxu0 %vm2981_vm12, %v2088_v20 }
 0x543   :  { %v1965_v23 = vpop.permute.xlu1 %1964  ;;  %v1970_v26 = vpop.permute.xlu0 %1969  ;;  %v1218_v9 = vsel %vm1215_vm0, %v1211_v22, %v1961_v11  ;;  %v1219_v47 = vsel %vm1215_vm0, %v1212_v16, %v1962_v54 }
 0x544   :  { %v1967_v39 = vunpack.i.h.bf16 %v1965_v23  ;;  %v1966_v27 = vunpack.i.l.bf16 %v1965_v23  ;;  %v1972_v28 = vunpack.i.h.bf16 %v1970_v26  ;;  %v1971_v25 = vunpack.i.l.bf16 %v1970_v26 }
 0x546   :  { %v1225_v17 = vsel %vm1222_vm1, %v1218_v9, %v1966_v27  ;;  %v1226_v40 = vsel %vm1222_vm1, %v1219_v47, %v1967_v39  ;;  %v1208_v34 = vsel %vm730_vm5, %v2809_v3, %v1972_v28  ;;  %v1207_v36 = vsel %vm730_vm5, %v2793_v51, %v1971_v25 }
 0x547   :  { %v1230_v31 = vpack.c.bf16 %v1226_v40, %v1225_v17  ;;  %v1975_v63 = vpop.permute.xlu1 %1974  ;;  %v1980_v33 = vpop.permute.xlu0 %1979 }
 0x548   :  { %v1977_v29 = vunpack.i.h.bf16 %v1975_v63  ;;  %v1976_v19 = vunpack.i.l.bf16 %v1975_v63  ;;  %v1982_v0 = vunpack.i.h.bf16 %v1980_v33  ;;  %v1981_v57 = vunpack.i.l.bf16 %v1980_v33 }
 0x549   :  { %1766 = vmatmul.mubr.msk.bf16.gmra.mrb[16].mxu0 %vm1297_vm2, %v1230_v31 }
 0x54a   :  { %v1214_v10 = vsel %vm744_vm7, %v1208_v34, %v1977_v29  ;;  %v1213_v32 = vsel %vm744_vm7, %v1207_v36, %v1976_v19  ;;  %1769 = vmatprep.mubr.msk.bf16.mxu0 %vm2981_vm12, %v2088_v20 }
 0x54b   :  { %v1985_v44 = vpop.permute.xlu1 %1984  ;;  %v1220_v50 = vsel %vm1215_vm0, %v1213_v32, %v1981_v57  ;;  %v1221_v3 = vsel %vm1215_vm0, %v1214_v10, %v1982_v0 }
 0x54c   :  { %v1987_v45 = vunpack.i.h.bf16 %v1985_v44  ;;  %v1986_v49 = vunpack.i.l.bf16 %v1985_v44 }
 0x54e   :  { %v1227_v51 = vsel %vm1222_vm1, %v1220_v50, %v1986_v49  ;;  %v1228_v48 = vsel %vm1222_vm1, %v1221_v3, %v1987_v45 }
 0x54f   :  { %v1231_v24 = vpack.c.bf16 %v1228_v48, %v1227_v51 }
 0x551   :  { %1770 = vmatmul.mubr.msk.bf16.gmra.mrb[20].mxu0 %vm1297_vm2, %v1231_v24 }
 0x614   :  { %v1344_v61 = vpop.f32.mrb[12].mxu0 }
 0x615   :  { %v1345_v18 = vadd.f32 %v1661_v12, %v1344_v61  ;;  %v1763_v52 = vpop.f32.mrb[13].mxu0 }
 0x616   :  { %v1347_v14 = vpop.f32.mrb[14].mxu0 }
 0x617   :  { %v1673_v55 = vmul.f32 -1.442695, %v1345_v18  ;;  %v1348_v60 = vadd.f32 %v1661_v12, %v1347_v14  ;;  %v1764_v37 = vpop.f32.mrb[15].mxu0 }
 0x619   :  { %2052 = vpow2.f32 %v1673_v55  ;;  %v1674_v35 = vmul.f32 -1.442695, %v1348_v60 }
 0x61b   :  { %2054 = vpow2.f32 %v1674_v35 }
 0x61c   :  { %v1352_v42 = vpop.f32.mrb[16].mxu0 }
 0x61d   :  { %v1353_v8 = vadd.f32 %v1661_v12, %v1352_v42  ;;  %v1767_v59 = vpop.f32.mrb[17].mxu0 }
 0x61e   :  { %v1355_v30 = vpop.f32.mrb[18].mxu0 }
 0x61f   :  { %v1675_v62 = vmul.f32 -1.442695, %v1353_v8  ;;  %v1356_v38 = vadd.f32 %v1661_v12, %v1355_v30  ;;  %v1768_v1 = vpop.f32.mrb[19].mxu0 }
 0x621   :  { %2056 = vpow2.f32 %v1675_v62  ;;  %v1676_v13 = vmul.f32 -1.442695, %v1356_v38 }
 0x623   :  { %v2053_v2 = vpop.eup %2052  ;;  %2058 = vpow2.f32 %v1676_v13  ;;  %v2100_v13 = vmov 0  }
 0x624   :  { %v1385_v5 = vadd.f32 1.0, %v2053_v2  ;;  %v1360_v21 = vpop.f32.mrb[20].mxu0  ;;  %1988 = vset.pattern.permute.xlu1 %v2100_v13  ;;  %v1567_v2 = vld [vmem:[%s2967_s2] sm:$0x7]  ;;  %1989 = vset.pattern.permute.xlu0 %v2100_v13 }
 0x625   :  { %v2055_v43 = vpop.eup %2054  ;;  %v2877_v46 = vadd.f32 %v1661_v12, %v1360_v21  ;;  %v1771_v6 = vpop.f32.mrb[21].mxu0 }
 0x626   :  { %2060 = vrcp.f32 %v1385_v5  ;;  %v1386_v41 = vadd.f32 1.0, %v2055_v43  ;;  %v1363_v54 = vpop.f32.mrb[22].mxu0 }
 0x627   :  { %v1677_v11 = vmul.f32 -1.442695, %v2877_v46  ;;  %v1364_v16 = vadd.f32 %v1661_v12, %v1363_v54  ;;  %v1772_v22 = vpop.f32.mrb[23].mxu0 }
 0x628   :  { %2062 = vrcp.f32 %v1386_v41 }
 0x629   :  { %2064 = vpow2.f32 %v1677_v11  ;;  %v1678_v23 = vmul.f32 -1.442695, %v1364_v16 }
 0x62b   :  { %v2057_v26 = vpop.eup %2056  ;;  %2066 = vpow2.f32 %v1678_v23 }
 0x62c   :  { %v1387_v39 = vadd.f32 1.0, %v2057_v26 }
 0x62d   :  { %v2059_v27 = vpop.eup %2058 }
 0x62e   :  { %2068 = vrcp.f32 %v1387_v39  ;;  %v1388_v28 = vadd.f32 1.0, %v2059_v27 }
 0x630   :  { %v2061_v25 = vpop.eup %2060  ;;  %2070 = vrcp.f32 %v1388_v28 }
 0x631   :  { %1409 = vrot.lane.b32.xlu0 %v2061_v25, %s2097_s14 }
 0x632   :  { %v2063_v9 = vpop.eup %2062 }
 0x633   :  { %v2065_v47 = vpop.eup %2064  ;;  %1411 = vrot.lane.b32.xlu1 %v2063_v9, %s2097_s14 }
 0x634   :  { %v1389_v17 = vadd.f32 1.0, %v2065_v47 }
 0x635   :  { %v2067_v40 = vpop.eup %2066 }
 0x636   :  { %2072 = vrcp.f32 %v1389_v17  ;;  %v1390_v31 = vadd.f32 1.0, %v2067_v40 }
 0x638   :  { %v2069_v63 = vpop.eup %2068  ;;  %2074 = vrcp.f32 %v1390_v31 }
 0x639   :  { %1413 = vrot.lane.b32.xlu0 %v2069_v63, %s2097_s14 }
 0x63a   :  { %v2071_v33 = vpop.eup %2070 }
 0x63b   :  { %1415 = vrot.lane.b32.xlu1 %v2071_v33, %s2097_s14 }
 0x640   :  { %v2073_v29 = vpop.eup %2072 }
 0x641   :  { %1417 = vrot.lane.b32.xlu0 %v2073_v29, %s2097_s14 }
 0x642   :  { %v2075_v19 = vpop.eup %2074 }
 0x643   :  { %1419 = vrot.lane.b32.xlu1 %v2075_v19, %s2097_s14 }
 0x6a3   :  { %v1410_v34 = vpop.permute.xlu0 %1409 }
 0x6a4   :  { %v2886_v36 = vmul.f32 %v1410_v34, %v1345_v18 }
 0x6a5   :  { %v1412_v0 = vpop.permute.xlu1 %1411 }
 0x6a6   :  { %v2888_v57 = vmul.f32 %v1412_v0, %v1348_v60  ;;  %v1435_v10 = vsel %vm730_vm5, %v2886_v36, 0.0  ;;  %v1459_v32 = vmul.f32 %v2886_v36, %v2886_v36 }
 0x6a7   :  { %1436 = vadd.xlane.f32.xlu0 %v1435_v10 }
 0x6a8   :  { %v1438_v44 = vsel %vm730_vm5, %v2888_v57, 0.0  ;;  %v1465_v45 = vsel %vm730_vm5, %v1459_v32, 0.0  ;;  %v1460_v49 = vmul.f32 %v2888_v57, %v2888_v57 }
 0x6a9   :  { %1439 = vadd.xlane.f32.xlu1 %v1438_v44 }
 0x6aa   :  { %v1468_v24 = vsel %vm730_vm5, %v1460_v49, 0.0 }
 0x6ab   :  { %v1414_v50 = vpop.permute.xlu0 %1413  ;;  %1466 = vadd.xlane.f32.xlu0 %v1465_v45 }
 0x6ac   :  { %v2899_v3 = vmul.f32 %v1414_v50, %v1353_v8 }
 0x6ad   :  { %v1416_v51 = vpop.permute.xlu1 %1415 }
 0x6ae   :  { %v2901_v48 = vmul.f32 %v1416_v51, %v1356_v38  ;;  %v1441_v12 = vsel %vm730_vm5, %v2899_v3, 0.0  ;;  %v1461_v61 = vmul.f32 %v2899_v3, %v2899_v3 }
 0x6af   :  { %1469 = vadd.xlane.f32.xlu0 %v1468_v24  ;;  %1442 = vadd.xlane.f32.xlu1 %v1441_v12 }
 0x6b0   :  { %v1444_v18 = vsel %vm730_vm5, %v2901_v48, 0.0  ;;  %v1471_v52 = vsel %vm730_vm5, %v1461_v61, 0.0  ;;  %v1462_v14 = vmul.f32 %v2901_v48, %v2901_v48 }
 0x6b2   :  { %v1474_v42 = vsel %vm730_vm5, %v1462_v14, 0.0 }
 0x6b3   :  { %1445 = vadd.xlane.f32.xlu0 %v1444_v18  ;;  %v1418_v55 = vpop.permute.xlu0 %1417  ;;  %1472 = vadd.xlane.f32.xlu1 %v1471_v52 }
 0x6b4   :  { %v2914_v60 = vmul.f32 %v1418_v55, %v2877_v46 }
 0x6b5   :  { %v1420_v37 = vpop.permute.xlu1 %1419 }
 0x6b6   :  { %v2916_v35 = vmul.f32 %v1420_v37, %v1364_v16  ;;  %v1447_v8 = vsel %vm730_vm5, %v2914_v60, 0.0  ;;  %v1463_v59 = vmul.f32 %v2914_v60, %v2914_v60 }
 0x6b7   :  { %1475 = vadd.xlane.f32.xlu0 %v1474_v42  ;;  %1448 = vadd.xlane.f32.xlu1 %v1447_v8  ;;  %v1679_v42 = vld [vmem:[%s2964_s1 + $0x7] ss:$0 sm:$0xff] }
 0x6b8   :  { %v1477_v30 = vsel %vm730_vm5, %v1463_v59, 0.0  ;;  %v1450_v62 = vsel %vm730_vm5, %v2916_v35, 0.0  ;;  %v1464_v38 = vmul.f32 %v2916_v35, %v2916_v35 }
 0x6ba   :  { %v1480_v1 = vsel %vm730_vm5, %v1464_v38, 0.0 }
 0x6bb   :  { %1478 = vadd.xlane.f32.xlu1 %v1477_v30  ;;  %1451 = vadd.xlane.f32.xlu0 %v1450_v62 }
 0x6bf   :  { %1481 = vadd.xlane.f32.xlu0 %v1480_v1  ;;  %v1680_v1 = vld [vmem:[%s2964_s1 + $0x8] ss:$0 sm:$0xff] }
 0x6cc   :  { %1570 = vperm.xlu1 %1988, %v1567_v2  }
 0x734   :  { %v1437_v5 = vpop.xlane.xlu0 %1436 }
 0x735   :  { %v1453_v21 = vmul.f32 0.041666668, %v1437_v5 }
 0x736   :  { %v1440_v43 = vpop.xlane.xlu1 %1439 }
 0x737   :  { %v1489_v6 = vmul.f32 %v1453_v21, %v1453_v21  ;;  %v1454_v41 = vmul.f32 0.041666668, %v1440_v43  ;;  %v1507_v52 = vsub.f32 %v2886_v36, %v1453_v21 }
 0x738   :  { %v1467_v46 = vpop.xlane.xlu0 %1466 }
 0x739   :  { %v1483_v54 = vmul.f32 0.041666668, %v1467_v46  ;;  %v1490_v23 = vmul.f32 %v1454_v41, %v1454_v41  ;;  %v1508_v13 = vsub.f32 %v2888_v57, %v1454_v41 }
 0x73b   :  { %v1495_v11 = vsub.f32 %v1483_v54, %v1489_v6 }
 0x73c   :  { %v1470_v16 = vpop.xlane.xlu0 %1469  ;;  %v1443_v22 = vpop.xlane.xlu1 %1442 }
 0x73d   :  { %v1501_v26 = vmax.f32 %v1495_v11, 0.0  ;;  %v1484_v39 = vmul.f32 0.041666668, %v1470_v16  ;;  %v1455_v27 = vmul.f32 0.041666668, %v1443_v22 }
 0x73f   :  { %v1513_v28 = vadd.f32 1e-05, %v1501_v26  ;;  %v1496_v25 = vsub.f32 %v1484_v39, %v1490_v23  ;;  %v1491_v9 = vmul.f32 %v1455_v27, %v1455_v27  ;;  %v1509_v54 = vsub.f32 %v2899_v3, %v1455_v27 }
 0x740   :  { %v1446_v47 = vpop.xlane.xlu0 %1445  ;;  %v1473_v17 = vpop.xlane.xlu1 %1472 }
 0x741   :  { %2076 = vrsqrt.f32 %v1513_v28  ;;  %v1502_v40 = vmax.f32 %v1496_v25, 0.0  ;;  %v1456_v31 = vmul.f32 0.041666668, %v1446_v47  ;;  %v1485_v63 = vmul.f32 0.041666668, %v1473_v17 }
 0x743   :  { %v1514_v33 = vadd.f32 1e-05, %v1502_v40  ;;  %v1497_v29 = vsub.f32 %v1485_v63, %v1491_v9  ;;  %v1492_v19 = vmul.f32 %v1456_v31, %v1456_v31  ;;  %v1510_v57 = vsub.f32 %v2901_v48, %v1456_v31 }
 0x744   :  { %v1476_v34 = vpop.xlane.xlu0 %1475  ;;  %v1449_v0 = vpop.xlane.xlu1 %1448 }
 0x745   :  { %2078 = vrsqrt.f32 %v1514_v33  ;;  %v1503_v10 = vmax.f32 %v1497_v29, 0.0  ;;  %v1486_v32 = vmul.f32 0.041666668, %v1476_v34  ;;  %v1457_v44 = vmul.f32 0.041666668, %v1449_v0 }
 0x747   :  { %v1515_v45 = vadd.f32 1e-05, %v1503_v10  ;;  %v1498_v49 = vsub.f32 %v1486_v32, %v1492_v19  ;;  %v1493_v50 = vmul.f32 %v1457_v44, %v1457_v44  ;;  %v1511_v3 = vsub.f32 %v2914_v60, %v1457_v44 }
 0x748   :  { %v1452_v51 = vpop.xlane.xlu0 %1451  ;;  %v1479_v24 = vpop.xlane.xlu1 %1478 }
 0x749   :  { %2080 = vrsqrt.f32 %v1515_v45  ;;  %v1504_v12 = vmax.f32 %v1498_v49, 0.0  ;;  %v1458_v61 = vmul.f32 0.041666668, %v1452_v51  ;;  %v1487_v18 = vmul.f32 0.041666668, %v1479_v24 }
 0x74b   :  { %v2077_v14 = vpop.eup %2076  ;;  %v1516_v55 = vadd.f32 1e-05, %v1504_v12  ;;  %v1499_v37 = vsub.f32 %v1487_v18, %v1493_v50  ;;  %v1494_v30 = vmul.f32 %v1458_v61, %v1458_v61  ;;  %v1566_v18 = vld [vmem:[%s2968_s6] sm:$0x3] }
 0x74c   :  { %v1482_v8 = vpop.xlane.xlu0 %1481  ;;  %v1525_v59 = vmul.f32 %v2077_v14, %v1507_v52  ;;  %v1571_v52 = vpop.permute.xlu1 %1570 }
 0x74d   :  { %2082 = vrsqrt.f32 %v1516_v55  ;;  %v1505_v62 = vmax.f32 %v1499_v37, 0.0  ;;  %v1488_v38 = vmul.f32 0.041666668, %v1482_v8 }
 0x74e   :  { %v1535_v36 = vmul.f32 %v1679_v42, %v1525_v59 }
 0x74f   :  { %v2079_v2 = vpop.eup %2078  ;;  %v1517_v5 = vadd.f32 1e-05, %v1505_v62  ;;  %v1500_v21 = vsub.f32 %v1488_v38, %v1494_v30 }
 0x750   :  { %v1526_v43 = vmul.f32 %v2079_v2, %v1508_v13  ;;  %v1545_v46 = vadd.f32 %v1680_v1, %v1535_v36 }
 0x751   :  { %2084 = vrsqrt.f32 %v1517_v5  ;;  %v1506_v6 = vmax.f32 %v1500_v21, 0.0 }
 0x752   :  { %v1536_v11 = vmul.f32 %v1679_v42, %v1526_v43  ;;  %v1551_v26 = vmul.f32 %v2446_v56, %v1545_v46 }
 0x753   :  { %v2081_v16 = vpop.eup %2080  ;;  %v1518_v22 = vadd.f32 1e-05, %v1506_v6 }
 0x754   :  { %v1546_v23 = vadd.f32 %v1680_v1, %v1536_v11  ;;  %v1527_v39 = vmul.f32 %v2081_v16, %v1509_v54  ;;  %v1557_v9 = vmax.f32 %v1551_v26, 0.0 }
 0x755   :  { %2086 = vrsqrt.f32 %v1518_v22 }
 0x756   :  { %v1552_v41 = vmul.f32 %v2449_v58, %v1546_v23  ;;  %v1537_v28 = vmul.f32 %v1679_v42, %v1527_v39  ;;  %v1512_v58 = vsub.f32 %v2916_v35, %v1458_v61 }
 0x757   :  { %v2083_v25 = vpop.eup %2082 }
 0x758   :  { %v1558_v47 = vmax.f32 %v1552_v41, 0.0  ;;  %v1528_v17 = vmul.f32 %v2083_v25, %v1510_v57  ;;  %v1547_v40 = vadd.f32 %v1680_v1, %v1537_v28 }
 0x75a   :  { %v1563_v27 = vpack.c.bf16 %v1558_v47, %v1557_v9  ;;  %v1538_v63 = vmul.f32 %v1679_v42, %v1528_v17  ;;  %v1553_v19 = vmul.f32 %v2467_v15, %v1547_v40 }
 0x75b   :  { %v2085_v33 = vpop.eup %2084 }
 0x75c   :  { %v1577_v29 = vsel %vm730_vm5, %v1563_v27, 0  ;;  %v1548_v56 = vadd.f32 %v1680_v1, %v1538_v63  ;;  %v1529_v34 = vmul.f32 %v2085_v33, %v1511_v3  ;;  %v1559_v10 = vmax.f32 %v1553_v19, 0.0 }
 0x75d   :  { %1774 = vmatpush3.bf16.xpose.msra.mxu1 %v1577_v29 }
 0x75e   :  { %1775 = vmatprep.subr.bf16.mxu1 %v2088_v20  ;;  %v1554_v48 = vmul.f32 %v2476_v7, %v1548_v56  ;;  %v1539_v31 = vmul.f32 %v1679_v42, %v1529_v34 }
 0x75f   :  { %v2087_v0 = vpop.eup %2086 }
 0x760   :  { %v1560_v60 = vmax.f32 %v1554_v48, 0.0  ;;  %v1530_v32 = vmul.f32 %v2087_v0, %v1512_v58  ;;  %v1549_v44 = vadd.f32 %v1680_v1, %v1539_v31 }
 0x762   :  { %v1564_v45 = vpack.c.bf16 %v1560_v60, %v1559_v10  ;;  %v1540_v49 = vmul.f32 %v1679_v42, %v1530_v32  ;;  %v1555_v15 = vmul.f32 %v2486_v53, %v1549_v44 }
 0x764   :  { %v1580_v50 = vsel %vm730_vm5, %v1564_v45, 0  ;;  %v1550_v51 = vadd.f32 %v1680_v1, %v1540_v49  ;;  %v1561_v24 = vmax.f32 %v1555_v15, 0.0 }
 0x765   :  { %1776 = vmatpush3.bf16.xpose.msra.mxu1 %v1580_v50 }
 0x766   :  { %1777 = vmatprep.subr.bf16.mxu1 %v2088_v20  ;;  %v1556_v35 = vmul.f32 %v2533_v4, %v1550_v51 }
 0x768   :  { %v1562_v7 = vmax.f32 %v1556_v35, 0.0 }
 0x76a   :  { %v1565_v12 = vpack.c.bf16 %v1562_v7, %v1561_v24 }
 0x76c   :  { %v1583_v61 = vsel %vm730_vm5, %v1565_v12, 0 }
 0x76d   :  { %1778 = vmatpush3.bf16.xpose.msra.mxu1 %v1583_v61 }
 0x774   :  { %1780 = vmatmul.mubr.msk.bf16.vlgmr.msra.gmra.mrb[12].mxu1 %vm730_vm5, %v1566_v18 }
 0x847   :  { %v1619_v14 = vpop.f32.mrb[12].mxu1 }
 0x848   :  { %v1781_v53 = vpop.f32.mrb[13].mxu1  ;;  %v1620_v55 = vadd.f32 %v1619_v14, %v1571_v52 }
 0x849   :  { %v1622_v20 = vpop.f32.mrb[14].mxu1 }
 0x84a   :  { %1626 = vst.msk [vmem:[%s2969_s7] sm:$0x7] %vm1625_vm3, %v1620_v55  ;;  %v1782_v4 = vpop.f32.mrb[15].mxu1 }

// kernel: tpu_custom_call.1
= control target key start
LH: loop header
LB: loop body
LE: loop exit
PB: predicated region body
PF: predicated region fallthrough
CT: control target
= control target key end

     0   :  { %vm172_vm0 = vcmask 1041408   ;;  %vm195_vm1 = vcmask 1046528   ;;  %vm259_vm2 = vcmask 1044480   ;;  %vm227_vm3 = vcmask 1045504   ;;  %s2090_s15 = smov 12   ;;  %s2091_s16 = smov 8   ;;  %s2962_s0 = inlined_call_operand.vmem [shape: f32[48,4], index: 0, kind: input, shape index: {}]   ;;  %s2963_s3 = inlined_call_operand.vmem [shape: bf16[20,12], index: 3, kind: input, shape index: {}]   ;;  %s2964_s1 = inlined_call_operand.vmem [shape: f32[9,48], index: 1, kind: input, shape index: {}]   ;;  %s2965_s4 = inlined_call_operand.vmem [shape: bf16[60,48], index: 4, kind: input, shape index: {}]   ;;  %s2966_s5 = inlined_call_operand.vmem [shape: bf16[120,48], index: 5, kind: input, shape index: {}]   ;;  %s2967_s2 = inlined_call_operand.vmem [shape: f32[3,1], index: 2, kind: input, shape index: {}]   ;;  %s2968_s6 = inlined_call_operand.vmem [shape: bf16[3,24], index: 6, kind: input, shape index: {}]   ;;  %s2969_s7 = inlined_call_operand.vmem [shape: f32[1,3,48], index: 7, kind: output, shape index: {}]  }
   0x1   :  { %v160_v0 = vld [vmem:[%s2962_s0] sm:$0xff]  ;;  %v161_v1 = vld [vmem:[%s2962_s0 + $0x8] sm:$0xff]  ;;  %v162_v2 = vld [vmem:[%s2962_s0 + $0x10] sm:$0xff]  ;;  %vm291_vm4 = vcmask 1043456   ;;  %v2088_v20 = vmov 0.0   ;;  %s2092_s17 = smov 16  }
   0x2   :  { %v173_v3 = vrot.slane %v160_v0, 6  ;;  %v174_v4 = vrot.slane %v161_v1, 6  ;;  %v176_v5 = vrot.slane %v162_v2, 6  ;;  %v163_v6 = vld [vmem:[%s2962_s0 + $0x18] sm:$0xff]  ;;  %v164_v7 = vld [vmem:[%s2962_s0 + $0x20] sm:$0xff]  ;;  %v2159_v8 = vld [vmem:[%s2962_s0 + $0x28] sm:$0xff]  ;;  %1709 = vmatprep.subr.bf16.mxu0 %v2088_v20  ;;  %1725 = vmatprep.subr.bf16.mxu1 %v2088_v20 }
   0x3   :  { %v178_v9 = vrot.slane %v163_v6, 6  ;;  %v180_v10 = vrot.slane %v164_v7, 6  ;;  %v182_v11 = vrot.slane %v2159_v8, 6  ;;  %v1990_v15 = vld [vmem:[%s2963_s3] sm:$0xff]   ;;  %s2089_s0 = smov 4   ;;  %vm2970_vm5 = vmmov 0  }
   0x4   :  { %v2163_v12 = vsel %vm172_vm0, %v173_v3, %v174_v4  ;;  %v2166_v13 = vsel %vm172_vm0, %v174_v4, %v176_v5  ;;  %v2169_v14 = vsel %vm172_vm0, 0.0, %v173_v3  ;;  %1710 = vmatpush3.bf16.msra.mxu0 %v1990_v15  ;;  %1713 = vmatprep.mubr.msk.bf16.mxu0 %vm2970_vm5, %v2088_v20  ;;  %vm323_vm6 = vcmask 31744   ;;  %s2094_s10 = smov 24   ;;  %s2096_s11 = smov 48  }
   0x5   :  { %v196_v16 = vrot.slane %v2169_v14, 1  ;;  %v197_v17 = vrot.slane %v2163_v12, 1  ;;  %v199_v18 = vrot.slane %v2166_v13, 1  ;;  %v260_v19 = vrot.slane %v2169_v14, 3  ;;  %1711 = vmatprep.subr.bf16.mxu0 %v2088_v20  ;;  %1733 = vmatprep.mubr.msk.bf16.mxu1 %vm2970_vm5, %v2088_v20  ;;  %s2097_s14 = smov 104  }
   0x6   :  { %v261_v21 = vrot.slane %v2163_v12, 3  ;;  %v263_v22 = vrot.slane %v2166_v13, 3  ;;  %v228_v23 = vrot.slane %v2169_v14, 2  ;;  %v229_v24 = vrot.slane %v2163_v12, 2 }
   0x7   :  { %v198_v25 = vsel %vm195_vm1, %v196_v16, %v197_v17  ;;  %v200_v26 = vsel %vm195_vm1, %v197_v17, %v199_v18  ;;  %v231_v27 = vrot.slane %v2166_v13, 2  ;;  %v292_v28 = vrot.slane %v2169_v14, 4 }
   0x8   :  { %v1808_v29 = vpack.i.bf16 %v200_v26, %v198_v25  ;;  %v262_v30 = vsel %vm259_vm2, %v260_v19, %v261_v21  ;;  %v264_v31 = vsel %vm259_vm2, %v261_v21, %v263_v22  ;;  %v230_v32 = vsel %vm227_vm3, %v228_v23, %v229_v24 }
   0x9   :  { %v1818_v33 = vpack.i.bf16 %v264_v31, %v262_v30  ;;  %v232_v34 = vsel %vm227_vm3, %v229_v24, %v231_v27  ;;  %v293_v35 = vrot.slane %v2163_v12, 4  ;;  %v295_v36 = vrot.slane %v2166_v13, 4 }
   0xa   :  { %1809 = vrot.lane.b32.xlu0 %v1808_v29, %s2089_s0  ;;  %v1813_v37 = vpack.i.bf16 %v232_v34, %v230_v32  ;;  %v2197_v38 = vsel %vm172_vm0, %v176_v5, %v178_v9  ;;  %v2200_v39 = vsel %vm172_vm0, %v178_v9, %v180_v10  ;;  %v2205_v40 = vsel %vm172_vm0, %v180_v10, %v182_v11  ;;  %v1991_v5 = vld [vmem:[%s2963_s3 + $0x8] ss:$0 sps:$4 sm:$0x33]  }
   0xb   :  { %1819 = vrot.lane.b32.xlu1 %v1818_v33, %s2090_s15  ;;  %v294_v41 = vsel %vm291_vm4, %v292_v28, %v293_v35  ;;  %v296_v42 = vsel %vm291_vm4, %v293_v35, %v295_v36  ;;  %v201_v43 = vrot.slane %v2197_v38, 1  ;;  %v203_v44 = vrot.slane %v2200_v39, 1 }
   0xc   :  { %v1823_v45 = vpack.i.bf16 %v296_v42, %v294_v41  ;;  %v233_v46 = vrot.slane %v2197_v38, 2  ;;  %v235_v47 = vrot.slane %v2200_v39, 2  ;;  %v265_v48 = vrot.slane %v2197_v38, 3 }
   0xd   :  { %v202_v49 = vsel %vm195_vm1, %v199_v18, %v201_v43  ;;  %v204_v50 = vsel %vm195_vm1, %v201_v43, %v203_v44  ;;  %v267_v51 = vrot.slane %v2200_v39, 3  ;;  %v297_v52 = vrot.slane %v2197_v38, 4 }
   0xe   :  { %1814 = vrot.lane.b32.xlu0 %v1813_v37, %s2091_s16  ;;  %v1828_v53 = vpack.i.bf16 %v204_v50, %v202_v49  ;;  %v234_v54 = vsel %vm227_vm3, %v231_v27, %v233_v46  ;;  %v236_v55 = vsel %vm227_vm3, %v233_v46, %v235_v47  ;;  %v266_v57 = vsel %vm259_vm2, %v263_v22, %v265_v48 }
   0xf   :  { %1824 = vrot.lane.b32.xlu1 %v1823_v45, %s2092_s17  ;;  %v1833_v56 = vpack.i.bf16 %v236_v55, %v234_v54  ;;  %v268_v58 = vsel %vm259_vm2, %v265_v48, %v267_v51  ;;  %v299_v59 = vrot.slane %v2200_v39, 4  ;;  %v298_v60 = vsel %vm291_vm4, %v295_v36, %v297_v52 }
  0x10   :  { %v192_v61 = vsel %vm172_vm0, %v182_v11, 0.0  ;;  %v205_v62 = vrot.slane %v2205_v40, 1  ;;  %v237_v63 = vrot.slane %v2205_v40, 2  ;;  %v1838_v3 = vpack.i.bf16 %v268_v58, %v266_v57 }
  0x11   :  { %v300_v0 = vsel %vm291_vm4, %v297_v52, %v299_v59  ;;  %v207_v1 = vrot.slane %v192_v61, 1  ;;  %v239_v2 = vrot.slane %v192_v61, 2  ;;  %v269_v4 = vrot.slane %v2205_v40, 3 }
  0x12   :  { %1829 = vrot.lane.b32.xlu0 %v1828_v53, %s2089_s0  ;;  %v1843_v6 = vpack.i.bf16 %v300_v0, %v298_v60  ;;  %v206_v7 = vsel %vm195_vm1, %v203_v44, %v205_v62  ;;  %v271_v9 = vrot.slane %v192_v61, 3  ;;  %v238_v10 = vsel %vm227_vm3, %v235_v47, %v237_v63 }
  0x13   :  { %1834 = vrot.lane.b32.xlu1 %v1833_v56, %s2091_s16  ;;  %v208_v8 = vsel %vm195_vm1, %v205_v62, %v207_v1  ;;  %v240_v11 = vsel %vm227_vm3, %v237_v63, %v239_v2  ;;  %v301_v15 = vrot.slane %v2205_v40, 4  ;;  %v303_v16 = vrot.slane %v192_v61, 4 }
  0x14   :  { %v1848_v17 = vpack.i.bf16 %v208_v8, %v206_v7  ;;  %v382_v18 = vsel %vm172_vm0, %v1991_v5, 0  ;;  %v1853_v19 = vpack.i.bf16 %v240_v11, %v238_v10  ;;  %v270_v21 = vsel %vm259_vm2, %v267_v51, %v269_v4 }
  0x15   :  { %v272_v22 = vsel %vm259_vm2, %v269_v4, %v271_v9  ;;  %1712 = vmatpush3.bf16.msra.mxu0 %v382_v18  ;;  %v302_v23 = vsel %vm291_vm4, %v299_v59, %v301_v15  ;;  %v304_v24 = vsel %vm291_vm4, %v301_v15, %v303_v16  ;;  %vm330_vm7 = vcmask 64512  }
  0x16   :  { %1839 = vrot.lane.b32.xlu0 %v1838_v3, %s2090_s15  ;;  %1745 = vmatprep.subr.bf16.mxu0 %v2088_v20  ;;  %v1858_v25 = vpack.i.bf16 %v272_v22, %v270_v21  ;;  %v1863_v26 = vpack.i.bf16 %v304_v24, %v302_v23  ;;  %vm2972_vm8 = vcmask 97280   ;;  %vm344_vm9 = vcmask 130048  }
  0x17   :  { %1844 = vrot.lane.b32.xlu1 %v1843_v6, %s2092_s17  ;;  %vm371_vm10 = vcmask 162816  }
  0x1a   :  { %1849 = vrot.lane.b32.xlu0 %v1848_v17, %s2089_s0 }
  0x1b   :  { %1854 = vrot.lane.b32.xlu1 %v1853_v19, %s2091_s16 }
  0x1e   :  { %1859 = vrot.lane.b32.xlu0 %v1858_v25, %s2090_s15 }
  0x1f   :  { %1864 = vrot.lane.b32.xlu1 %v1863_v26, %s2092_s17 }
  0x7c   :  { %v1810_v27 = vpop.permute.xlu0 %1809 }
  0x7d   :  { %v1820_v28 = vpop.permute.xlu1 %1819  ;;  %v1812_v29 = vunpack.i.h.bf16 %v1810_v27  ;;  %v1811_v30 = vunpack.i.l.bf16 %v1810_v27  ;;  %v1637_v27 = vld [vmem:[%s2964_s1] ss:$0 sm:$0xff] }
  0x7e   :  { %v1822_v32 = vunpack.i.h.bf16 %v1820_v28  ;;  %v1821_v33 = vunpack.i.l.bf16 %v1820_v28 }
  0x7f   :  { %v325_v37 = vsel %vm323_vm6, %v2163_v12, %v1812_v29  ;;  %v324_v41 = vsel %vm323_vm6, %v2169_v14, %v1811_v30 }
  0x80   :  { %v1815_v31 = vpop.permute.xlu0 %1814 }
  0x81   :  { %v1817_v34 = vunpack.i.h.bf16 %v1815_v31  ;;  %v1816_v35 = vunpack.i.l.bf16 %v1815_v31  ;;  %v1825_v36 = vpop.permute.xlu1 %1824 }
  0x82   :  { %v1827_v42 = vunpack.i.h.bf16 %v1825_v36  ;;  %v1826_v43 = vunpack.i.l.bf16 %v1825_v36 }
  0x83   :  { %v331_v44 = vsel %vm330_vm7, %v324_v41, %v1816_v35  ;;  %v332_v45 = vsel %vm330_vm7, %v325_v37, %v1817_v34 }
  0x84   :  { %v338_v46 = vsel %vm2972_vm8, %v331_v44, %v1821_v33  ;;  %v339_v47 = vsel %vm2972_vm8, %v332_v45, %v1822_v32  ;;  %v1830_v48 = vpop.permute.xlu0 %1829 }
  0x85   :  { %v345_v49 = vsel %vm344_vm9, %v338_v46, %v1826_v43  ;;  %v346_v50 = vsel %vm344_vm9, %v339_v47, %v1827_v42  ;;  %v1832_v12 = vunpack.i.h.bf16 %v1830_v48  ;;  %v1831_v51 = vunpack.i.l.bf16 %v1830_v48  ;;  %v1835_v52 = vpop.permute.xlu1 %1834 }
  0x86   :  { %v351_v14 = vpack.c.bf16 %v346_v50, %v345_v49  ;;  %v1837_v53 = vunpack.i.h.bf16 %v1835_v52  ;;  %v1836_v54 = vunpack.i.l.bf16 %v1835_v52 }
  0x87   :  { %v327_v55 = vsel %vm323_vm6, %v2197_v38, %v1832_v12  ;;  %v326_v56 = vsel %vm323_vm6, %v2166_v13, %v1831_v51 }
  0x88   :  { %v333_v57 = vsel %vm330_vm7, %v326_v56, %v1836_v54  ;;  %v334_v58 = vsel %vm330_vm7, %v327_v55, %v1837_v53  ;;  %v1840_v59 = vpop.permute.xlu0 %1839  ;;  %1714 = vmatmul.mubr.msk.bf16.vlgmr.msra.gmra.mrb[0].mxu0 %vm371_vm10, %v351_v14 }
  0x89   :  { %v1842_v60 = vunpack.i.h.bf16 %v1840_v59  ;;  %v1841_v61 = vunpack.i.l.bf16 %v1840_v59  ;;  %v1845_v62 = vpop.permute.xlu1 %1844  ;;  %1717 = vmatprep.mubr.msk.bf16.mxu0 %vm2970_vm5, %v2088_v20 }
  0x8a   :  { %v1847_v63 = vunpack.i.h.bf16 %v1845_v62  ;;  %v1846_v0 = vunpack.i.l.bf16 %v1845_v62 }
  0x8b   :  { %v340_v38 = vsel %vm2972_vm8, %v333_v57, %v1841_v61  ;;  %v341_v1 = vsel %vm2972_vm8, %v334_v58, %v1842_v60 }
  0x8c   :  { %v347_v13 = vsel %vm344_vm9, %v340_v38, %v1846_v0  ;;  %v348_v2 = vsel %vm344_vm9, %v341_v1, %v1847_v63  ;;  %v1850_v3 = vpop.permute.xlu0 %1849  ;;  %v1992_v38 = vld [vmem:[%s2965_s4] sm:$0xff]   ;;  %v27_v1 = vlaneseq }
  0x8d   :  { %v352_v4 = vpack.c.bf16 %v348_v2, %v347_v13  ;;  %v1852_v5 = vunpack.i.h.bf16 %v1850_v3  ;;  %v1851_v6 = vunpack.i.l.bf16 %v1850_v3  ;;  %v1855_v7 = vpop.permute.xlu1 %1854  ;;  %1726 = vmatpush3.bf16.msra.mxu1 %v1992_v38 }
  0x8e   :  { %v1857_v8 = vunpack.i.h.bf16 %v1855_v7  ;;  %v1856_v9 = vunpack.i.l.bf16 %v1855_v7  ;;  %1727 = vmatprep.subr.bf16.mxu1 %v2088_v20  ;;  %v28_v13 = vshrl.u32 %v27_v1, 7 }
  0x8f   :  { %v329_v10 = vsel %vm323_vm6, %v2205_v40, %v1852_v5  ;;  %v328_v11 = vsel %vm323_vm6, %v2200_v39, %v1851_v6 }
  0x90   :  { %v335_v15 = vsel %vm330_vm7, %v328_v11, %v1856_v9  ;;  %v336_v16 = vsel %vm330_vm7, %v329_v10, %v1857_v8  ;;  %1718 = vmatmul.mubr.msk.bf16.gmra.mrb[4].mxu0 %vm371_vm10, %v352_v4  ;;  %v1860_v17 = vpop.permute.xlu0 %1859  ;;  %v29_v2 = vadd.s32 8, %v28_v13  ;;  %v30_v7 = vadd.s32 16, %v28_v13 }
  0x91   :  { %v1862_v18 = vunpack.i.h.bf16 %v1860_v17  ;;  %v1861_v19 = vunpack.i.l.bf16 %v1860_v17  ;;  %v1865_v21 = vpop.permute.xlu1 %1864  ;;  %1721 = vmatprep.mubr.msk.bf16.mxu0 %vm2970_vm5, %v2088_v20  ;;  %v2348_v3 = vmul.u32.u64.low 2863311531, %v28_v13  ;;  %v2349_v4 = vmul.u32.u64.high 2863311531, %v28_v13, %v2348_v3 }
  0x92   :  { %v1867_v22 = vunpack.i.h.bf16 %v1865_v21  ;;  %v1866_v23 = vunpack.i.l.bf16 %v1865_v21  ;;  %v2351_v5 = vmul.u32.u64.low 2863311531, %v29_v2  ;;  %v2352_v6 = vmul.u32.u64.high 2863311531, %v29_v2, %v2351_v5 }
  0x93   :  { %v342_v40 = vsel %vm2972_vm8, %v335_v15, %v1861_v19  ;;  %v343_v24 = vsel %vm2972_vm8, %v336_v16, %v1862_v18  ;;  %v40_v8 = vshrl.u32 %v2349_v4, 4  ;;  %v2356_v10 = vadd.s32 24, %v28_v13 }
  0x94   :  { %v349_v39 = vsel %vm344_vm9, %v342_v40, %v1866_v23  ;;  %v350_v25 = vsel %vm344_vm9, %v343_v24, %v1867_v22  ;;  %v51_v9 = vshrl.u32 %v2352_v6, 4  ;;  %v2361_v18 = vadd.s32 32, %v28_v13 }
  0x95   :  { %v353_v26 = vpack.c.bf16 %v350_v25, %v349_v39  ;;  %v41_v15 = vmul.u32 24, %v40_v8  ;;  %v2358_v16 = vmul.u32.u64.low 2863311531, %v30_v7  ;;  %v2359_v17 = vmul.u32.u64.high 2863311531, %v30_v7, %v2358_v16 }
  0x96   :  { %v52_v22 = vmul.u32 24, %v51_v9  ;;  %v2366_v23 = vmul.u32.u64.low 2863311531, %v2356_v10  ;;  %v2367_v40 = vmul.u32.u64.high 2863311531, %v2356_v10, %v2366_v23 }
  0x97   :  { %v42_v25 = vsub.s32 %v28_v13, %v41_v15 }
  0x98   :  { %1722 = vmatmul.mubr.msk.bf16.gmra.mrb[8].mxu0 %vm371_vm10, %v353_v26 }
  0x99   :  { %1761 = vmatprep.mubr.msk.bf16.mxu0 %vm2970_vm5, %v2088_v20  ;;  %vm100_vm11 = vcmp.ne.s32.totalorder %v42_v25, 0  ;;  %vm106_vm12 = vcmp.lt.s32.totalorder %v42_v25, 0 }
  0x9a   :  { %vm112_vm14 = vmand %vm106_vm12, %vm100_vm11 }
 0x15b   :  { %v418_v28 = vpop.f32.mrb[0].mxu0 }
 0x15c   :  { %v2302_v29 = vadd.f32 %v1637_v27, %v418_v28  ;;  %v1715_v30 = vpop.f32.mrb[1].mxu0 }
 0x15d   :  { %v421_v31 = vpop.f32.mrb[2].mxu0 }
 0x15e   :  { %v2304_v32 = vadd.f32 %v1637_v27, %v421_v31  ;;  %v1716_v33 = vpop.f32.mrb[3].mxu0  ;;  %v443_v34 = vsel %vm2972_vm8, %v2302_v29, 0.0  ;;  %v468_v35 = vmul.f32 %v2302_v29, %v2302_v29 }
 0x15f   :  { %444 = vadd.xlane.f32.xlu0 %v443_v34  ;;  %v53_v33 = vsub.s32 %v29_v2, %v52_v22 }
 0x160   :  { %v446_v36 = vsel %vm2972_vm8, %v2304_v32, 0.0  ;;  %v469_v37 = vmul.f32 %v2304_v32, %v2304_v32  ;;  %v474_v41 = vsel %vm2972_vm8, %v468_v35, 0.0 }
 0x161   :  { %447 = vadd.xlane.f32.xlu1 %v446_v36  ;;  %vm101_vm13 = vcmp.ne.s32.totalorder %v53_v33, 0  ;;  %vm107_vm15 = vcmp.lt.s32.totalorder %v53_v33, 0 }
 0x162   :  { %v477_v45 = vsel %vm2972_vm8, %v469_v37, 0.0  ;;  %v2379_v37 = vadd.s32 40, %v28_v13  ;;  %vm113_vm6 = vmand %vm107_vm15, %vm101_vm13 }
 0x163   :  { %475 = vadd.xlane.f32.xlu0 %v474_v41  ;;  %v426_v42 = vpop.f32.mrb[4].mxu0 }
 0x164   :  { %v2315_v43 = vadd.f32 %v1637_v27, %v426_v42  ;;  %v1719_v44 = vpop.f32.mrb[5].mxu0  ;;  %v62_v42 = vshrl.u32 %v2359_v17, 4 }
 0x165   :  { %478 = vadd.xlane.f32.xlu1 %v477_v45  ;;  %v429_v46 = vpop.f32.mrb[6].mxu0 }
 0x166   :  { %v2318_v47 = vadd.f32 %v1637_v27, %v429_v46  ;;  %v1720_v48 = vpop.f32.mrb[7].mxu0  ;;  %v449_v49 = vsel %vm2972_vm8, %v2315_v43, 0.0  ;;  %v470_v50 = vmul.f32 %v2315_v43, %v2315_v43 }
 0x167   :  { %450 = vadd.xlane.f32.xlu0 %v449_v49  ;;  %v118_v49 = vadd.s32 24, %v42_v25 }
 0x168   :  { %v452_v12 = vsel %vm2972_vm8, %v2318_v47, 0.0  ;;  %v471_v51 = vmul.f32 %v2318_v47, %v2318_v47  ;;  %v480_v52 = vsel %vm2972_vm8, %v470_v50, 0.0  ;;  %v73_v50 = vshrl.u32 %v2367_v40, 4 }
 0x169   :  { %453 = vadd.xlane.f32.xlu1 %v452_v12 }
 0x16a   :  { %v483_v55 = vsel %vm2972_vm8, %v471_v51, 0.0  ;;  %v74_v38 = vmul.u32 24, %v73_v50 }
 0x16b   :  { %481 = vadd.xlane.f32.xlu0 %v480_v52  ;;  %v434_v14 = vpop.f32.mrb[8].mxu0 }
 0x16c   :  { %v2329_v53 = vadd.f32 %v1637_v27, %v434_v14  ;;  %v1723_v54 = vpop.f32.mrb[9].mxu0  ;;  %v2386_v52 = vmul.u32.u64.low 2863311531, %v2379_v37  ;;  %v2387_v14 = vmul.u32.u64.high 2863311531, %v2379_v37, %v2386_v52  ;;  %v75_v16 = vsub.s32 %v2356_v10, %v74_v38 }
 0x16d   :  { %484 = vadd.xlane.f32.xlu1 %v483_v55  ;;  %v437_v56 = vpop.f32.mrb[10].mxu0 }
 0x16e   :  { %v2332_v57 = vadd.f32 %v1637_v27, %v437_v56  ;;  %v1724_v58 = vpop.f32.mrb[11].mxu0  ;;  %v455_v59 = vsel %vm2972_vm8, %v2329_v53, 0.0  ;;  %v472_v60 = vmul.f32 %v2329_v53, %v2329_v53  ;;  %v63_v56 = vmul.u32 24, %v62_v42 }
 0x16f   :  { %456 = vadd.xlane.f32.xlu0 %v455_v59  ;;  %v2372_v26 = vmul.u32.u64.low 2863311531, %v2361_v18  ;;  %v2373_v27 = vmul.u32.u64.high 2863311531, %v2361_v18, %v2372_v26  ;;  %v95_v23 = vshrl.u32 %v2387_v14, 4  ;;  %vm103_vm15 = vcmp.ne.s32.totalorder %v75_v16, 0 }
 0x170   :  { %v458_v61 = vsel %vm2972_vm8, %v2332_v57, 0.0  ;;  %v486_v62 = vsel %vm2972_vm8, %v472_v60, 0.0  ;;  %v473_v63 = vmul.f32 %v2332_v57, %v2332_v57  ;;  %v64_v4 = vsub.s32 %v30_v7, %v63_v56 }
 0x171   :  { %459 = vadd.xlane.f32.xlu1 %v458_v61  ;;  %v84_v58 = vshrl.u32 %v2373_v27, 4 }
 0x172   :  { %v489_v0 = vsel %vm2972_vm8, %v473_v63, 0.0  ;;  %v119_v63 = vadd.s32 24, %v53_v33  ;;  %vm102_vm9 = vcmp.ne.s32.totalorder %v64_v4, 0  ;;  %vm108_vm10 = vcmp.lt.s32.totalorder %v64_v4, 0 }
 0x173   :  { %487 = vadd.xlane.f32.xlu0 %v486_v62  ;;  %v85_v5 = vmul.u32 24, %v84_v58  ;;  %v120_v27 = vadd.s32 24, %v64_v4  ;;  %vm109_vm8 = vcmp.lt.s32.totalorder %v75_v16, 0 }
 0x174   :  { %v125_v15 = vsel %vm113_vm6, %v119_v63, %v53_v33  ;;  %v96_v33 = vmul.u32 24, %v95_v23 }
 0x175   :  { %v86_v7 = vsub.s32 %v2361_v18, %v85_v5  ;;  %vm131_vm12 = vcmp.ge.s32.totalorder %v125_v15, 2  ;;  %vm137_vm13 = vcmp.lt.s32.totalorder %v125_v15, 18 }
 0x176   :  { %v97_v52 = vsub.s32 %v2379_v37, %v96_v33 }
 0x177   :  { %490 = vadd.xlane.f32.xlu0 %v489_v0  ;;  %v124_v0 = vsel %vm112_vm14, %v118_v49, %v42_v25  ;;  %vm2415_vm14 = vmand %vm108_vm10, %vm102_vm9  ;;  %vm104_vm5 = vcmp.ne.s32.totalorder %v86_v7, 0  ;;  %v121_v49 = vadd.s32 24, %v75_v16 }
 0x178   :  { %vm130_vm7 = vcmp.ge.s32.totalorder %v124_v0, 2  ;;  %vm136_vm11 = vcmp.lt.s32.totalorder %v124_v0, 18  ;;  %vm143_vm9 = vmand %vm131_vm12, %vm137_vm13  ;;  %vm105_vm13 = vcmp.ne.s32.totalorder %v97_v52, 0 }
 0x179   :  { %vm2423_vm6 = vmand %vm130_vm7, %vm136_vm11  ;;  %vm110_vm7 = vcmp.lt.s32.totalorder %v86_v7, 0  ;;  %v2449_v58 = vsel %vm143_vm9, 1.0, %v2088_v20 }
 0x17a   :  { %vm115_vm10 = vmand %vm109_vm8, %vm103_vm15  ;;  %v2446_v56 = vsel %vm2423_vm6, 1.0, %v2088_v20 }
 0x17b   :  { %vm116_vm11 = vmand %vm110_vm7, %vm104_vm5 }
 0x1ec   :  { %v445_v11 = vpop.xlane.xlu0 %444 }
 0x1ed   :  { %v2363_v19 = vmul.f32 0.083333336, %v445_v11 }
 0x1ee   :  { %v448_v21 = vpop.xlane.xlu1 %447 }
 0x1ef   :  { %v2369_v24 = vmul.f32 0.083333336, %v448_v21  ;;  %v498_v28 = vmul.f32 %v2363_v19, %v2363_v19  ;;  %v516_v10 = vsub.f32 %v2302_v29, %v2363_v19 }
 0x1f0   :  { %v476_v39 = vpop.xlane.xlu0 %475 }
 0x1f1   :  { %v492_v30 = vmul.f32 0.083333336, %v476_v39  ;;  %v499_v34 = vmul.f32 %v2369_v24, %v2369_v24  ;;  %v517_v29 = vsub.f32 %v2304_v32, %v2369_v24 }
 0x1f2   :  { %v479_v31 = vpop.xlane.xlu1 %478 }
 0x1f3   :  { %v504_v35 = vsub.f32 %v492_v30, %v498_v28  ;;  %v493_v36 = vmul.f32 0.083333336, %v479_v31  ;;  %v2411_v30 = vld [vmem:[%s2964_s1 + $0x1] ss:$0 sm:$0xff] }
 0x1f4   :  { %v451_v41 = vpop.xlane.xlu0 %450 }
 0x1f5   :  { %v510_v44 = vmax.f32 %v504_v35, 0.0  ;;  %v505_v45 = vsub.f32 %v493_v36, %v499_v34  ;;  %v2382_v46 = vmul.f32 0.083333336, %v451_v41  ;;  %v2430_v41 = vld [vmem:[%s2964_s1 + $0x2] ss:$0 sm:$0xff] }
 0x1f6   :  { %v454_v48 = vpop.xlane.xlu1 %453 }
 0x1f7   :  { %v522_v12 = vadd.f32 1e-05, %v510_v44  ;;  %v511_v51 = vmax.f32 %v505_v45, 0.0  ;;  %v2389_v54 = vmul.f32 0.083333336, %v454_v48  ;;  %v500_v60 = vmul.f32 %v2382_v46, %v2382_v46 }
 0x1f8   :  { %v482_v55 = vpop.xlane.xlu0 %481  ;;  %v126_v48 = vsel %vm2415_vm14, %v120_v27, %v64_v4  ;;  %vm111_vm14 = vcmp.lt.s32.totalorder %v97_v52, 0 }
 0x1f9   :  { %2004 = vrsqrt.f32 %v522_v12  ;;  %v523_v59 = vadd.f32 1e-05, %v511_v51  ;;  %v494_v61 = vmul.f32 0.083333336, %v482_v55  ;;  %v501_v1 = vmul.f32 %v2389_v54, %v2389_v54 }
 0x1fa   :  { %v485_v62 = vpop.xlane.xlu1 %484  ;;  %v122_v51 = vadd.s32 24, %v86_v7  ;;  %vm132_vm8 = vcmp.ge.s32.totalorder %v126_v48, 2  ;;  %vm138_vm12 = vcmp.lt.s32.totalorder %v126_v48, 18 }
 0x1fb   :  { %2006 = vrsqrt.f32 %v523_v59  ;;  %v506_v13 = vsub.f32 %v494_v61, %v500_v60  ;;  %v495_v2 = vmul.f32 0.083333336, %v485_v62  ;;  %v518_v61 = vsub.f32 %v2315_v43, %v2382_v46  ;;  %vm144_vm6 = vmand %vm132_vm8, %vm138_vm12 }
 0x1fc   :  { %v457_v3 = vpop.xlane.xlu0 %456  ;;  %v127_v62 = vsel %vm115_vm10, %v121_v49, %v75_v16  ;;  %v128_v38 = vsel %vm116_vm11, %v122_v51, %v86_v7  ;;  %vm117_vm10 = vmand %vm111_vm14, %vm105_vm13  ;;  %v2467_v15 = vsel %vm144_vm6, 1.0, %v2088_v20 }
 0x1fd   :  { %v512_v6 = vmax.f32 %v506_v13, 0.0  ;;  %v507_v8 = vsub.f32 %v495_v2, %v501_v1  ;;  %v2397_v9 = vmul.f32 0.083333336, %v457_v3  ;;  %v519_v13 = vsub.f32 %v2318_v47, %v2389_v54 }
 0x1fe   :  { %v460_v11 = vpop.xlane.xlu1 %459  ;;  %vm133_vm5 = vcmp.ge.s32.totalorder %v127_v62, 2  ;;  %vm139_vm15 = vcmp.lt.s32.totalorder %v127_v62, 18  ;;  %vm134_vm9 = vcmp.ge.s32.totalorder %v128_v38, 2  ;;  %vm140_vm7 = vcmp.lt.s32.totalorder %v128_v38, 18 }
 0x1ff   :  { %v524_v17 = vadd.f32 1e-05, %v512_v6  ;;  %v513_v21 = vmax.f32 %v507_v8, 0.0  ;;  %v502_v22 = vmul.f32 %v2397_v9, %v2397_v9  ;;  %v2404_v25 = vmul.f32 0.083333336, %v460_v11  ;;  %vm145_vm11 = vmand %vm133_vm5, %vm139_vm15 }
 0x200   :  { %v488_v40 = vpop.xlane.xlu0 %487  ;;  %v123_v6 = vadd.s32 24, %v97_v52  ;;  %vm146_vm8 = vmand %vm134_vm9, %vm140_vm7  ;;  %v2476_v7 = vsel %vm145_vm11, 1.0, %v2088_v20  ;;  %vm730_vm5 = vcmask 195584   ;;  %vm2977_vm15 = vcmask 97280  }
 0x201   :  { %2008 = vrsqrt.f32 %v524_v17  ;;  %v525_v39 = vadd.f32 1e-05, %v513_v21  ;;  %v496_v26 = vmul.f32 0.083333336, %v488_v40  ;;  %v503_v42 = vmul.f32 %v2404_v25, %v2404_v25  ;;  %vm2978_vm6 = vmmov %vm2977_vm15 }
 0x202   :  { %v520_v21 = vsub.f32 %v2329_v53, %v2397_v9  ;;  %v2486_v53 = vsel %vm146_vm8, 1.0, %v2088_v20  ;;  %v521_v9 = vsub.f32 %v2332_v57, %v2404_v25  ;;  %vm737_vm9 = vcmask 293888   ;;  %vm2979_vm11 = vmmov %vm2978_vm6 }
 0x203   :  { %v2005_v28 = vpop.eup %2004  ;;  %2010 = vrsqrt.f32 %v525_v39  ;;  %v508_v31 = vsub.f32 %v496_v26, %v502_v22  ;;  %v129_v22 = vsel %vm117_vm10, %v123_v6, %v97_v52  ;;  %v1993_v39 = vld [vmem:[%s2965_s4 + $0x8] sm:$0xff]   ;;  %vm744_vm7 = vcmask 392192   ;;  %vm2980_vm8 = vmmov %vm2978_vm6 }
 0x204   :  { %v534_v19 = vmul.f32 %v2005_v28, %v516_v10  ;;  %v491_v34 = vpop.xlane.xlu0 %490  ;;  %vm135_vm12 = vcmp.ge.s32.totalorder %v129_v22, 2  ;;  %1728 = vmatpush3.bf16.msra.mxu1 %v1993_v39  ;;  %vm141_vm13 = vcmp.lt.s32.totalorder %v129_v22, 18  ;;  %vm790_vm10 = vcmask 490496  }
 0x205   :  { %v2007_v36 = vpop.eup %2006  ;;  %v514_v32 = vmax.f32 %v508_v31, 0.0  ;;  %v497_v24 = vmul.f32 0.083333336, %v491_v34  ;;  %1729 = vmatprep.subr.bf16.mxu1 %v2088_v20  ;;  %vm147_vm14 = vmand %vm135_vm12, %vm141_vm13  ;;  %vm2981_vm12 = vmmov 0  }
 0x206   :  { %v544_v44 = vmul.f32 %v2411_v30, %v534_v19  ;;  %v535_v45 = vmul.f32 %v2007_v36, %v517_v29  ;;  %v1994_v36 = vld [vmem:[%s2965_s4 + $0x10] sm:$0xff]   ;;  %vm2982_vm13 = vmmov %vm2978_vm6 }
 0x207   :  { %v526_v50 = vadd.f32 1e-05, %v514_v32  ;;  %v509_v12 = vsub.f32 %v497_v24, %v503_v42 }
 0x208   :  { %v554_v14 = vadd.f32 %v2430_v41, %v544_v44  ;;  %v545_v55 = vmul.f32 %v2411_v30, %v535_v45  ;;  %1730 = vmatpush3.bf16.msra.mxu1 %v1994_v36 }
 0x209   :  { %2012 = vrsqrt.f32 %v526_v50  ;;  %v515_v59 = vmax.f32 %v509_v12, 0.0  ;;  %1731 = vmatprep.subr.bf16.mxu1 %v2088_v20 }
 0x20a   :  { %v560_v60 = vmax.f32 %v554_v14, 0.0  ;;  %v555_v37 = vadd.f32 %v2430_v41, %v545_v55 }
 0x20b   :  { %v2009_v63 = vpop.eup %2008  ;;  %v527_v0 = vadd.f32 1e-05, %v515_v59 }
 0x20c   :  { %v561_v1 = vmax.f32 %v555_v37, 0.0  ;;  %v536_v2 = vmul.f32 %v2009_v63, %v518_v61  ;;  %v566_v3 = vmul.f32 %v2446_v56, %v560_v60 }
 0x20d   :  { %v2011_v4 = vpop.eup %2010  ;;  %2014 = vrsqrt.f32 %v527_v0 }
 0x20e   :  { %v546_v5 = vmul.f32 %v2411_v30, %v536_v2  ;;  %v537_v43 = vmul.f32 %v2011_v4, %v519_v13  ;;  %v567_v46 = vmul.f32 %v2449_v58, %v561_v1  ;;  %v578_v8 = vrot.slane %v566_v3, 6 }
 0x20f   :  { %v2533_v4 = vsel %vm147_vm14, 1.0, %v2088_v20  ;;  %vm2983_vm14 = vmmov %vm2978_vm6 }
 0x210   :  { %v556_v47 = vadd.f32 %v2430_v41, %v546_v5  ;;  %v547_v54 = vmul.f32 %v2411_v30, %v537_v43  ;;  %v579_v11 = vrot.slane %v567_v46, 6  ;;  %v2473_v40 = vsel %vm172_vm0, 0.0, %v578_v8 }
 0x211   :  { %v631_v19 = vrot.slane %v2473_v40, 2  ;;  %v600_v44 = vrot.slane %v2473_v40, 1  ;;  %v662_v62 = vrot.slane %v2473_v40, 3  ;;  %v693_v6 = vrot.slane %v2473_v40, 4 }
 0x212   :  { %v562_v16 = vmax.f32 %v556_v47, 0.0  ;;  %v557_v17 = vadd.f32 %v2430_v41, %v547_v54  ;;  %v2483_v28 = vsel %vm172_vm0, %v578_v8, %v579_v11 }
 0x213   :  { %v2013_v23 = vpop.eup %2012  ;;  %v632_v34 = vrot.slane %v2483_v28, 2  ;;  %v601_v35 = vrot.slane %v2483_v28, 1  ;;  %v663_v12 = vrot.slane %v2483_v28, 3  ;;  %v694_v1 = vrot.slane %v2483_v28, 4 }
 0x214   :  { %v563_v26 = vmax.f32 %v557_v17, 0.0  ;;  %v538_v10 = vmul.f32 %v2013_v23, %v520_v21  ;;  %v568_v27 = vmul.f32 %v2467_v15, %v562_v16 }
 0x215   :  { %v633_v51 = vsel %vm227_vm3, %v631_v19, %v632_v34  ;;  %v602_v14 = vsel %vm195_vm1, %v600_v44, %v601_v35  ;;  %v664_v2 = vsel %vm259_vm2, %v662_v62, %v663_v12  ;;  %v695_v16 = vsel %vm291_vm4, %v693_v6, %v694_v1 }
 0x216   :  { %v548_v31 = vmul.f32 %v2411_v30, %v538_v10  ;;  %v581_v18 = vrot.slane %v568_v27, 6  ;;  %v569_v33 = vmul.f32 %v2476_v7, %v563_v26 }
 0x217   :  { %v2015_v29 = vpop.eup %2014 }
 0x218   :  { %v558_v57 = vadd.f32 %v2430_v41, %v548_v31  ;;  %v539_v25 = vmul.f32 %v2015_v29, %v521_v9  ;;  %v2501_v42 = vsel %vm172_vm0, %v579_v11, %v581_v18  ;;  %v583_v32 = vrot.slane %v569_v33, 6 }
 0x219   :  { %v634_v24 = vrot.slane %v2501_v42, 2  ;;  %v603_v45 = vrot.slane %v2501_v42, 1  ;;  %v665_v48 = vrot.slane %v2501_v42, 3  ;;  %v696_v0 = vrot.slane %v2501_v42, 4 }
 0x21a   :  { %v564_v49 = vmax.f32 %v558_v57, 0.0  ;;  %v549_v50 = vmul.f32 %v2411_v30, %v539_v25  ;;  %v2516_v61 = vsel %vm172_vm0, %v581_v18, %v583_v32  ;;  %v1995_v30 = vld [vmem:[%s2965_s4 + $0x18] sm:$0x3f]   ;;  %s2095_s4 = smov 36  }
 0x21b   :  { %v635_v52 = vsel %vm227_vm3, %v632_v34, %v634_v24  ;;  %v604_v55 = vsel %vm195_vm1, %v601_v35, %v603_v45  ;;  %v666_v63 = vsel %vm259_vm2, %v663_v12, %v665_v48  ;;  %v605_v3 = vrot.slane %v2516_v61, 1 }
 0x21c   :  { %v1873_v59 = vpack.i.bf16 %v635_v52, %v633_v51  ;;  %v1868_v60 = vpack.i.bf16 %v604_v55, %v602_v14  ;;  %v570_v37 = vmul.f32 %v2486_v53, %v564_v49  ;;  %v559_v13 = vadd.f32 %v2430_v41, %v549_v50 }
 0x21d   :  { %v801_v5 = vsel %vm227_vm3, %v1995_v30, 0  ;;  %v1878_v43 = vpack.i.bf16 %v666_v63, %v664_v2  ;;  %v697_v41 = vsel %vm291_vm4, %v694_v1, %v696_v0  ;;  %v667_v17 = vrot.slane %v2516_v61, 3 }
 0x21e   :  { %1874 = vrot.lane.b32.xlu0 %v1873_v59, %s2094_s10  ;;  %1869 = vrot.lane.b32.xlu1 %v1868_v60, %s2090_s15  ;;  %v585_v38 = vrot.slane %v570_v37, 6  ;;  %v565_v8 = vmax.f32 %v559_v13, 0.0  ;;  %v606_v22 = vsel %vm195_vm1, %v603_v45, %v605_v3  ;;  %v636_v39 = vrot.slane %v2516_v61, 2 }
 0x21f   :  { %1732 = vmatpush3.bf16.msra.mxu1 %v801_v5  ;;  %v1883_v27 = vpack.i.bf16 %v697_v41, %v695_v16  ;;  %v698_v18 = vrot.slane %v2516_v61, 4  ;;  %v668_v29 = vsel %vm259_vm2, %v665_v48, %v667_v17 }
 0x220   :  { %v2537_v46 = vsel %vm172_vm0, %v583_v32, %v585_v38  ;;  %1773 = vmatprep.subr.bf16.mxu1 %v2088_v20  ;;  %v571_v21 = vmul.f32 %v2533_v4, %v565_v8  ;;  %v637_v19 = vsel %vm227_vm3, %v634_v24, %v636_v39 }
 0x221   :  { %v607_v47 = vrot.slane %v2537_v46, 1  ;;  %v669_v54 = vrot.slane %v2537_v46, 3  ;;  %v638_v11 = vrot.slane %v2537_v46, 2  ;;  %v700_v26 = vrot.slane %v2537_v46, 4 }
 0x222   :  { %1879 = vrot.lane.b32.xlu1 %v1878_v43, %s2095_s4  ;;  %v587_v33 = vrot.slane %v571_v21, 6  ;;  %v699_v51 = vsel %vm291_vm4, %v696_v0, %v698_v18 }
 0x223   :  { %v608_v23 = vsel %vm195_vm1, %v605_v3, %v607_v47  ;;  %v670_v9 = vsel %vm259_vm2, %v667_v17, %v669_v54  ;;  %v639_v31 = vsel %vm227_vm3, %v636_v39, %v638_v11  ;;  %v701_v34 = vsel %vm291_vm4, %v698_v18, %v700_v26 }
 0x224   :  { %v1888_v10 = vpack.i.bf16 %v608_v23, %v606_v22  ;;  %v2562_v35 = vsel %vm172_vm0, %v585_v38, %v587_v33  ;;  %v597_v36 = vsel %vm172_vm0, %v587_v33, 0.0  ;;  %v1898_v57 = vpack.i.bf16 %v670_v9, %v668_v29 }
 0x225   :  { %v1893_v25 = vpack.i.bf16 %v639_v31, %v637_v19  ;;  %v609_v32 = vrot.slane %v2562_v35, 1  ;;  %v611_v44 = vrot.slane %v597_v36, 1  ;;  %v640_v45 = vrot.slane %v2562_v35, 2 }
 0x226   :  { %1889 = vrot.lane.b32.xlu0 %v1888_v10, %s2090_s15  ;;  %1884 = vrot.lane.b32.xlu1 %v1883_v27, %s2096_s11  ;;  %v642_v49 = vrot.slane %v597_v36, 2  ;;  %v671_v50 = vrot.slane %v2562_v35, 3  ;;  %v673_v48 = vrot.slane %v597_v36, 3  ;;  %v1903_v52 = vpack.i.bf16 %v701_v34, %v699_v51 }
 0x227   :  { %v610_v24 = vsel %vm195_vm1, %v607_v47, %v609_v32  ;;  %v612_v12 = vsel %vm195_vm1, %v609_v32, %v611_v44  ;;  %v702_v55 = vrot.slane %v2562_v35, 4  ;;  %v704_v59 = vrot.slane %v597_v36, 4 }
 0x228   :  { %v1908_v14 = vpack.i.bf16 %v612_v12, %v610_v24  ;;  %v641_v60 = vsel %vm227_vm3, %v638_v11, %v640_v45  ;;  %v643_v37 = vsel %vm227_vm3, %v640_v45, %v642_v49  ;;  %v672_v30 = vsel %vm259_vm2, %v669_v54, %v671_v50 }
 0x229   :  { %v674_v62 = vsel %vm259_vm2, %v671_v50, %v673_v48  ;;  %v1913_v63 = vpack.i.bf16 %v643_v37, %v641_v60  ;;  %v703_v0 = vsel %vm291_vm4, %v700_v26, %v702_v55  ;;  %v705_v1 = vsel %vm291_vm4, %v702_v55, %v704_v59 }
 0x22a   :  { %1899 = vrot.lane.b32.xlu0 %v1898_v57, %s2095_s4  ;;  %1894 = vrot.lane.b32.xlu1 %v1893_v25, %s2094_s10  ;;  %v1918_v38 = vpack.i.bf16 %v674_v62, %v672_v30  ;;  %v1923_v13 = vpack.i.bf16 %v705_v1, %v703_v0 }
 0x22e   :  { %1904 = vrot.lane.b32.xlu1 %v1903_v52, %s2096_s11  ;;  %1909 = vrot.lane.b32.xlu0 %v1908_v14, %s2090_s15 }
 0x232   :  { %1914 = vrot.lane.b32.xlu1 %v1913_v63, %s2094_s10  ;;  %1919 = vrot.lane.b32.xlu0 %v1918_v38, %s2095_s4  ;;  %s2099_s4 = smov 96  }
 0x236   :  { %1924 = vrot.lane.b32.xlu1 %v1923_v13, %s2096_s11 }
 0x290   :  { %v1870_v2 = vpop.permute.xlu1 %1869  ;;  %v1875_v3 = vpop.permute.xlu0 %1874 }
 0x291   :  { %v1872_v5 = vunpack.i.h.bf16 %v1870_v2  ;;  %v1871_v43 = vunpack.i.l.bf16 %v1870_v2  ;;  %v1877_v8 = vunpack.i.h.bf16 %v1875_v3  ;;  %v1876_v47 = vunpack.i.l.bf16 %v1875_v3 }
 0x293   :  { %v725_v41 = vsel %vm2977_vm15, %v2483_v28, %v1872_v5  ;;  %v724_v54 = vsel %vm2978_vm6, %v2473_v40, %v1871_v43 }
 0x294   :  { %v1880_v6 = vpop.permute.xlu1 %1879  ;;  %v731_v22 = vsel %vm730_vm5, %v724_v54, %v1876_v47  ;;  %v732_v23 = vsel %vm730_vm5, %v725_v41, %v1877_v8  ;;  %v1645_v47 = vld [vmem:[%s2964_s1 + $0x3] ss:$0 sm:$0xff] }
 0x295   :  { %v1882_v11 = vunpack.i.h.bf16 %v1880_v6  ;;  %v1881_v16 = vunpack.i.l.bf16 %v1880_v6 }
 0x297   :  { %v738_v10 = vsel %vm737_vm9, %v731_v22, %v1881_v16  ;;  %v739_v27 = vsel %vm737_vm9, %v732_v23, %v1882_v11 }
 0x298   :  { %v1890_v17 = vpop.permute.xlu0 %1889  ;;  %v1885_v21 = vpop.permute.xlu1 %1884 }
 0x299   :  { %v1887_v39 = vunpack.i.h.bf16 %v1885_v21  ;;  %v1886_v26 = vunpack.i.l.bf16 %v1885_v21  ;;  %v1892_v28 = vunpack.i.h.bf16 %v1890_v17  ;;  %v1891_v9 = vunpack.i.l.bf16 %v1890_v17 }
 0x29b   :  { %v745_v40 = vsel %vm744_vm7, %v738_v10, %v1886_v26  ;;  %v746_v31 = vsel %vm744_vm7, %v739_v27, %v1887_v39  ;;  %v727_v36 = vsel %vm2979_vm11, %v2516_v61, %v1892_v28  ;;  %v726_v57 = vsel %vm2980_vm8, %v2501_v42, %v1891_v9 }
 0x29c   :  { %v751_v18 = vpack.c.bf16 %v746_v31, %v745_v40  ;;  %v1900_v33 = vpop.permute.xlu0 %1899  ;;  %v1895_v29 = vpop.permute.xlu1 %1894 }
 0x29d   :  { %v1897_v19 = vunpack.i.h.bf16 %v1895_v29  ;;  %v1896_v34 = vunpack.i.l.bf16 %v1895_v29  ;;  %v1902_v25 = vunpack.i.h.bf16 %v1900_v33  ;;  %v1901_v32 = vunpack.i.l.bf16 %v1900_v33 }
 0x29e   :  { %1734 = vmatmul.mubr.msk.bf16.vlgmr.msra.gmra.mrb[0].mxu1 %vm790_vm10, %v751_v18 }
 0x29f   :  { %v734_v44 = vsel %vm730_vm5, %v727_v36, %v1897_v19  ;;  %v733_v45 = vsel %vm730_vm5, %v726_v57, %v1896_v34  ;;  %1737 = vmatprep.mubr.msk.bf16.mxu1 %vm2981_vm12, %v2088_v20 }
 0x2a0   :  { %v1910_v49 = vpop.permute.xlu0 %1909  ;;  %v1905_v50 = vpop.permute.xlu1 %1904  ;;  %v740_v51 = vsel %vm737_vm9, %v733_v45, %v1901_v32  ;;  %v741_v42 = vsel %vm737_vm9, %v734_v44, %v1902_v25 }
 0x2a1   :  { %v1907_v48 = vunpack.i.h.bf16 %v1905_v50  ;;  %v1906_v24 = vunpack.i.l.bf16 %v1905_v50  ;;  %v1912_v12 = vunpack.i.h.bf16 %v1910_v49  ;;  %v1911_v61 = vunpack.i.l.bf16 %v1910_v49 }
 0x2a3   :  { %v747_v52 = vsel %vm744_vm7, %v740_v51, %v1906_v24  ;;  %v748_v14 = vsel %vm744_vm7, %v741_v42, %v1907_v48  ;;  %v729_v62 = vsel %vm2982_vm13, %v2562_v35, %v1912_v12  ;;  %v728_v63 = vsel %vm2983_vm14, %v2537_v46, %v1911_v61 }
 0x2a4   :  { %v752_v55 = vpack.c.bf16 %v748_v14, %v747_v52  ;;  %v1920_v59 = vpop.permute.xlu0 %1919  ;;  %v1915_v60 = vpop.permute.xlu1 %1914 }
 0x2a5   :  { %v1917_v37 = vunpack.i.h.bf16 %v1915_v60  ;;  %v1916_v30 = vunpack.i.l.bf16 %v1915_v60  ;;  %v1922_v38 = vunpack.i.h.bf16 %v1920_v59  ;;  %v1921_v0 = vunpack.i.l.bf16 %v1920_v59 }
 0x2a6   :  { %1738 = vmatmul.mubr.msk.bf16.gmra.mrb[4].mxu1 %vm790_vm10, %v752_v55 }
 0x2a7   :  { %v736_v1 = vsel %vm730_vm5, %v729_v62, %v1917_v37  ;;  %v735_v13 = vsel %vm730_vm5, %v728_v63, %v1916_v30  ;;  %1741 = vmatprep.mubr.msk.bf16.mxu1 %vm2981_vm12, %v2088_v20 }
 0x2a8   :  { %v1925_v2 = vpop.permute.xlu1 %1924  ;;  %v742_v43 = vsel %vm737_vm9, %v735_v13, %v1921_v0  ;;  %v743_v35 = vsel %vm737_vm9, %v736_v1, %v1922_v38 }
 0x2a9   :  { %v1927_v3 = vunpack.i.h.bf16 %v1925_v2  ;;  %v1926_v5 = vunpack.i.l.bf16 %v1925_v2 }
 0x2ab   :  { %v749_v46 = vsel %vm744_vm7, %v742_v43, %v1926_v5  ;;  %v750_v6 = vsel %vm744_vm7, %v743_v35, %v1927_v3 }
 0x2ac   :  { %v753_v8 = vpack.c.bf16 %v750_v6, %v749_v46 }
 0x2ae   :  { %1742 = vmatmul.mubr.msk.bf16.gmra.mrb[8].mxu1 %vm790_vm10, %v753_v8 }
 0x2af   :  { %1779 = vmatprep.mubr.msk.bf16.mxu1 %vm2981_vm12, %v2088_v20 }
 0x371   :  { %v837_v41 = vpop.f32.mrb[0].mxu1 }
 0x372   :  { %v838_v54 = vadd.f32 %v1645_v47, %v837_v41  ;;  %v1735_v11 = vpop.f32.mrb[1].mxu1 }
 0x373   :  { %v840_v16 = vpop.f32.mrb[2].mxu1 }
 0x374   :  { %v1653_v17 = vmul.f32 -1.442695, %v838_v54  ;;  %v841_v21 = vadd.f32 %v1645_v47, %v840_v16  ;;  %v1736_v22 = vpop.f32.mrb[3].mxu1 }
 0x376   :  { %2016 = vpow2.f32 %v1653_v17  ;;  %v1654_v23 = vmul.f32 -1.442695, %v841_v21 }
 0x378   :  { %2018 = vpow2.f32 %v1654_v23 }
 0x379   :  { %v845_v39 = vpop.f32.mrb[4].mxu1 }
 0x37a   :  { %v2627_v26 = vadd.f32 %v1645_v47, %v845_v39  ;;  %v1739_v10 = vpop.f32.mrb[5].mxu1 }
 0x37b   :  { %v848_v27 = vpop.f32.mrb[6].mxu1 }
 0x37c   :  { %v1655_v28 = vmul.f32 -1.442695, %v2627_v26  ;;  %v2630_v9 = vadd.f32 %v1645_v47, %v848_v27  ;;  %v1740_v40 = vpop.f32.mrb[7].mxu1 }
 0x37e   :  { %2020 = vpow2.f32 %v1655_v28  ;;  %v1656_v31 = vmul.f32 -1.442695, %v2630_v9 }
 0x380   :  { %v2017_v18 = vpop.eup %2016  ;;  %2022 = vpow2.f32 %v1656_v31  ;;  %v1996_v31 = vld [vmem:[%s2966_s5] sm:$0xff]  }
 0x381   :  { %v878_v33 = vadd.f32 1.0, %v2017_v18  ;;  %v853_v29 = vpop.f32.mrb[8].mxu1  ;;  %1746 = vmatpush3.bf16.msra.mxu0 %v1996_v31  ;;  %v1997_v18 = vld [vmem:[%s2966_s5 + $0x8] sm:$0xff]  }
 0x382   :  { %v2019_v19 = vpop.eup %2018  ;;  %v2633_v34 = vadd.f32 %v1645_v47, %v853_v29  ;;  %v1743_v36 = vpop.f32.mrb[9].mxu1  ;;  %1747 = vmatprep.subr.bf16.mxu0 %v2088_v20  ;;  %v1999_v29 = vld [vmem:[%s2966_s5 + $0x18] sm:$0xff]  }
 0x383   :  { %2024 = vrcp.f32 %v878_v33  ;;  %v879_v57 = vadd.f32 1.0, %v2019_v19  ;;  %v856_v25 = vpop.f32.mrb[10].mxu1  ;;  %v1998_v33 = vld [vmem:[%s2966_s5 + $0x10] sm:$0xff]   ;;  %v2000_v19 = vld [vmem:[%s2966_s5 + $0x20] sm:$0xff]  }
 0x384   :  { %v1657_v32 = vmul.f32 -1.442695, %v2633_v34  ;;  %v857_v44 = vadd.f32 %v1645_v47, %v856_v25  ;;  %v1744_v45 = vpop.f32.mrb[11].mxu1 }
 0x385   :  { %2026 = vrcp.f32 %v879_v57  ;;  %1748 = vmatpush3.bf16.msra.mxu0 %v1997_v18  ;;  %v2719_v18 = vld [vmem:[%s2964_s1 + $0x5] ss:$0 sm:$0xff] }
 0x386   :  { %2028 = vpow2.f32 %v1657_v32  ;;  %v1658_v49 = vmul.f32 -1.442695, %v857_v44  ;;  %1749 = vmatprep.subr.bf16.mxu0 %v2088_v20 }
 0x388   :  { %v2021_v50 = vpop.eup %2020  ;;  %2030 = vpow2.f32 %v1658_v49 }
 0x389   :  { %v880_v48 = vadd.f32 1.0, %v2021_v50  ;;  %1750 = vmatpush3.bf16.msra.mxu0 %v1998_v33 }
 0x38a   :  { %v2023_v24 = vpop.eup %2022  ;;  %1751 = vmatprep.subr.bf16.mxu0 %v2088_v20 }
 0x38b   :  { %2032 = vrcp.f32 %v880_v48  ;;  %v881_v12 = vadd.f32 1.0, %v2023_v24 }
 0x38d   :  { %v2025_v61 = vpop.eup %2024  ;;  %2034 = vrcp.f32 %v881_v12  ;;  %1752 = vmatpush3.bf16.msra.mxu0 %v1999_v29 }
 0x38e   :  { %902 = vrot.lane.b32.xlu0 %v2025_v61, %s2097_s14  ;;  %1753 = vmatprep.subr.bf16.mxu0 %v2088_v20 }
 0x38f   :  { %v2027_v51 = vpop.eup %2026 }
 0x390   :  { %v2029_v42 = vpop.eup %2028  ;;  %904 = vrot.lane.b32.xlu1 %v2027_v51, %s2097_s14 }
 0x391   :  { %v882_v52 = vadd.f32 1.0, %v2029_v42  ;;  %1754 = vmatpush3.bf16.msra.mxu0 %v2000_v19 }
 0x392   :  { %v2031_v14 = vpop.eup %2030  ;;  %1755 = vmatprep.subr.bf16.mxu0 %v2088_v20 }
 0x393   :  { %2036 = vrcp.f32 %v882_v52  ;;  %v883_v55 = vadd.f32 1.0, %v2031_v14 }
 0x395   :  { %v2033_v59 = vpop.eup %2032  ;;  %2038 = vrcp.f32 %v883_v55 }
 0x396   :  { %906 = vrot.lane.b32.xlu0 %v2033_v59, %s2097_s14 }
 0x397   :  { %v2035_v60 = vpop.eup %2034 }
 0x398   :  { %908 = vrot.lane.b32.xlu1 %v2035_v60, %s2097_s14 }
 0x39d   :  { %v2037_v37 = vpop.eup %2036 }
 0x39e   :  { %910 = vrot.lane.b32.xlu0 %v2037_v37, %s2097_s14 }
 0x39f   :  { %v2039_v30 = vpop.eup %2038 }
 0x3a0   :  { %912 = vrot.lane.b32.xlu1 %v2039_v30, %s2097_s14 }
 0x400   :  { %v903_v62 = vpop.permute.xlu0 %902 }
 0x401   :  { %v2642_v63 = vmul.f32 %v903_v62, %v838_v54 }
 0x402   :  { %v905_v38 = vpop.permute.xlu1 %904 }
 0x403   :  { %v2644_v0 = vmul.f32 %v905_v38, %v841_v21  ;;  %v928_v1 = vsel %vm730_vm5, %v2642_v63, 0.0  ;;  %v953_v13 = vmul.f32 %v2642_v63, %v2642_v63 }
 0x404   :  { %929 = vadd.xlane.f32.xlu0 %v928_v1 }
 0x405   :  { %v931_v2 = vsel %vm730_vm5, %v2644_v0, 0.0  ;;  %v954_v3 = vmul.f32 %v2644_v0, %v2644_v0  ;;  %v959_v5 = vsel %vm730_vm5, %v953_v13, 0.0 }
 0x406   :  { %932 = vadd.xlane.f32.xlu1 %v931_v2 }
 0x407   :  { %v962_v46 = vsel %vm730_vm5, %v954_v3, 0.0 }
 0x408   :  { %v907_v43 = vpop.permute.xlu0 %906  ;;  %960 = vadd.xlane.f32.xlu0 %v959_v5 }
 0x409   :  { %v2656_v35 = vmul.f32 %v907_v43, %v2627_v26 }
 0x40a   :  { %v909_v6 = vpop.permute.xlu1 %908  ;;  %963 = vadd.xlane.f32.xlu1 %v962_v46 }
 0x40b   :  { %v2660_v8 = vmul.f32 %v909_v6, %v2630_v9  ;;  %v934_v47 = vsel %vm730_vm5, %v2656_v35, 0.0  ;;  %v955_v41 = vmul.f32 %v2656_v35, %v2656_v35 }
 0x40c   :  { %935 = vadd.xlane.f32.xlu0 %v934_v47 }
 0x40d   :  { %v937_v54 = vsel %vm730_vm5, %v2660_v8, 0.0  ;;  %v956_v11 = vmul.f32 %v2660_v8, %v2660_v8  ;;  %v965_v16 = vsel %vm730_vm5, %v955_v41, 0.0 }
 0x40e   :  { %938 = vadd.xlane.f32.xlu1 %v937_v54 }
 0x40f   :  { %v968_v22 = vsel %vm730_vm5, %v956_v11, 0.0 }
 0x410   :  { %966 = vadd.xlane.f32.xlu0 %v965_v16  ;;  %v911_v17 = vpop.permute.xlu0 %910 }
 0x411   :  { %v2672_v21 = vmul.f32 %v911_v17, %v2633_v34 }
 0x412   :  { %969 = vadd.xlane.f32.xlu1 %v968_v22  ;;  %v913_v23 = vpop.permute.xlu1 %912 }
 0x413   :  { %v2675_v39 = vmul.f32 %v913_v23, %v857_v44  ;;  %v940_v26 = vsel %vm730_vm5, %v2672_v21, 0.0  ;;  %v957_v10 = vmul.f32 %v2672_v21, %v2672_v21 }
 0x414   :  { %941 = vadd.xlane.f32.xlu0 %v940_v26 }
 0x415   :  { %v943_v27 = vsel %vm730_vm5, %v2675_v39, 0.0  ;;  %v971_v28 = vsel %vm730_vm5, %v957_v10, 0.0  ;;  %v958_v9 = vmul.f32 %v2675_v39, %v2675_v39  ;;  %v2713_v10 = vld [vmem:[%s2964_s1 + $0x4] ss:$0 sm:$0xff] }
 0x416   :  { %944 = vadd.xlane.f32.xlu1 %v943_v27 }
 0x417   :  { %v974_v40 = vsel %vm730_vm5, %v958_v9, 0.0 }
 0x418   :  { %972 = vadd.xlane.f32.xlu0 %v971_v28 }
 0x41c   :  { %975 = vadd.xlane.f32.xlu0 %v974_v40 }
 0x491   :  { %v930_v34 = vpop.xlane.xlu0 %929 }
 0x492   :  { %v947_v36 = vmul.f32 0.041666668, %v930_v34 }
 0x493   :  { %v933_v57 = vpop.xlane.xlu1 %932 }
 0x494   :  { %v948_v25 = vmul.f32 0.041666668, %v933_v57  ;;  %v983_v44 = vmul.f32 %v947_v36, %v947_v36  ;;  %v1001_v23 = vsub.f32 %v2642_v63, %v947_v36 }
 0x495   :  { %v961_v32 = vpop.xlane.xlu0 %960 }
 0x496   :  { %v977_v45 = vmul.f32 0.041666668, %v961_v32  ;;  %v984_v50 = vmul.f32 %v948_v25, %v948_v25  ;;  %v1002_v28 = vsub.f32 %v2644_v0, %v948_v25 }
 0x497   :  { %v964_v49 = vpop.xlane.xlu1 %963 }
 0x498   :  { %v989_v48 = vsub.f32 %v977_v45, %v983_v44  ;;  %v978_v24 = vmul.f32 0.041666668, %v964_v49 }
 0x499   :  { %v936_v12 = vpop.xlane.xlu0 %935 }
 0x49a   :  { %v995_v61 = vmax.f32 %v989_v48, 0.0  ;;  %v990_v51 = vsub.f32 %v978_v24, %v984_v50  ;;  %v949_v42 = vmul.f32 0.041666668, %v936_v12 }
 0x49b   :  { %v939_v52 = vpop.xlane.xlu1 %938 }
 0x49c   :  { %v1007_v14 = vadd.f32 1e-05, %v995_v61  ;;  %v996_v55 = vmax.f32 %v990_v51, 0.0  ;;  %v950_v59 = vmul.f32 0.041666668, %v939_v52  ;;  %v985_v30 = vmul.f32 %v949_v42, %v949_v42 }
 0x49d   :  { %v967_v60 = vpop.xlane.xlu0 %966  ;;  %v1003_v45 = vsub.f32 %v2656_v35, %v949_v42  ;;  %v2001_v42 = vld [vmem:[%s2966_s5 + $0x28] sm:$0xff]  }
 0x49e   :  { %2040 = vrsqrt.f32 %v1007_v14  ;;  %v1008_v37 = vadd.f32 1e-05, %v996_v55  ;;  %v979_v62 = vmul.f32 0.041666668, %v967_v60  ;;  %v986_v1 = vmul.f32 %v950_v59, %v950_v59  ;;  %1756 = vmatpush3.bf16.msra.mxu0 %v2001_v42 }
 0x49f   :  { %v970_v38 = vpop.xlane.xlu1 %969  ;;  %v1004_v24 = vsub.f32 %v2660_v8, %v950_v59  ;;  %1757 = vmatprep.subr.bf16.mxu0 %v2088_v20 }
 0x4a0   :  { %2042 = vrsqrt.f32 %v1008_v37  ;;  %v991_v13 = vsub.f32 %v979_v62, %v985_v30  ;;  %v980_v2 = vmul.f32 0.041666668, %v970_v38 }
 0x4a1   :  { %v942_v3 = vpop.xlane.xlu0 %941 }
 0x4a2   :  { %v997_v5 = vmax.f32 %v991_v13, 0.0  ;;  %v992_v43 = vsub.f32 %v980_v2, %v986_v1  ;;  %v951_v46 = vmul.f32 0.041666668, %v942_v3 }
 0x4a3   :  { %v945_v6 = vpop.xlane.xlu1 %944 }
 0x4a4   :  { %v1009_v47 = vadd.f32 1e-05, %v997_v5  ;;  %v998_v41 = vmax.f32 %v992_v43, 0.0  ;;  %v987_v54 = vmul.f32 %v951_v46, %v951_v46  ;;  %v2707_v17 = vmul.f32 0.041666668, %v945_v6 }
 0x4a5   :  { %v973_v11 = vpop.xlane.xlu0 %972  ;;  %v1005_v59 = vsub.f32 %v2672_v21, %v951_v46  ;;  %v2002_v46 = vld [vmem:[%s2966_s5 + $0x30] sm:$0xff]  }
 0x4a6   :  { %2044 = vrsqrt.f32 %v1009_v47  ;;  %v1010_v16 = vadd.f32 1e-05, %v998_v41  ;;  %v981_v22 = vmul.f32 0.041666668, %v973_v11  ;;  %v988_v63 = vmul.f32 %v2707_v17, %v2707_v17  ;;  %1758 = vmatpush3.bf16.msra.mxu0 %v2002_v46 }
 0x4a7   :  { %v1006_v5 = vsub.f32 %v2675_v39, %v2707_v17  ;;  %1759 = vmatprep.subr.bf16.mxu0 %v2088_v20 }
 0x4a8   :  { %v2041_v26 = vpop.eup %2040  ;;  %2046 = vrsqrt.f32 %v1010_v16  ;;  %v993_v27 = vsub.f32 %v981_v22, %v987_v54 }
 0x4a9   :  { %v1019_v9 = vmul.f32 %v2041_v26, %v1001_v23  ;;  %v976_v40 = vpop.xlane.xlu0 %975 }
 0x4aa   :  { %v2043_v31 = vpop.eup %2042  ;;  %v999_v33 = vmax.f32 %v993_v27, 0.0  ;;  %v982_v29 = vmul.f32 0.041666668, %v976_v40 }
 0x4ab   :  { %v1029_v19 = vmul.f32 %v2713_v10, %v1019_v9  ;;  %v1020_v34 = vmul.f32 %v2043_v31, %v1002_v28 }
 0x4ac   :  { %v1011_v36 = vadd.f32 1e-05, %v999_v33  ;;  %v994_v57 = vsub.f32 %v982_v29, %v988_v63 }
 0x4ad   :  { %v1039_v0 = vadd.f32 %v2719_v18, %v1029_v19  ;;  %v1030_v25 = vmul.f32 %v2713_v10, %v1020_v34  ;;  %v2003_v34 = vld [vmem:[%s2966_s5 + $0x38] ss:$0 sps:$4 sm:$0xff]   ;;  %s2098_s5 = smov 72  }
 0x4ae   :  { %2048 = vrsqrt.f32 %v1011_v36  ;;  %v1000_v32 = vmax.f32 %v994_v57, 0.0 }
 0x4af   :  { %v1040_v44 = vadd.f32 %v2719_v18, %v1030_v25  ;;  %v1045_v48 = vmul.f32 %v2446_v56, %v1039_v0 }
 0x4b0   :  { %v2045_v49 = vpop.eup %2044  ;;  %v1012_v50 = vadd.f32 1e-05, %v1000_v32 }
 0x4b1   :  { %v1021_v12 = vmul.f32 %v2045_v49, %v1003_v45  ;;  %v1046_v61 = vmul.f32 %v2449_v58, %v1040_v44  ;;  %v1057_v60 = vrot.slane %v1045_v48, 6  ;;  %v1308_v49 = vsel %vm291_vm4, %v2003_v34, 0 }
 0x4b2   :  { %v2047_v51 = vpop.eup %2046  ;;  %2050 = vrsqrt.f32 %v1012_v50  ;;  %1760 = vmatpush3.bf16.msra.mxu0 %v1308_v49 }
 0x4b3   :  { %v1031_v52 = vmul.f32 %v2713_v10, %v1021_v12  ;;  %v1022_v14 = vmul.f32 %v2047_v51, %v1004_v24  ;;  %v1058_v55 = vrot.slane %v1046_v61, 6  ;;  %v2744_v1 = vsel %vm172_vm0, 0.0, %v1057_v60 }
 0x4b4   :  { %v1110_v41 = vrot.slane %v2744_v1, 2  ;;  %v1079_v54 = vrot.slane %v2744_v1, 1  ;;  %v1141_v19 = vrot.slane %v2744_v1, 3  ;;  %v1172_v12 = vrot.slane %v2744_v1, 4 }
 0x4b5   :  { %v1041_v37 = vadd.f32 %v2719_v18, %v1031_v52  ;;  %v1032_v35 = vmul.f32 %v2713_v10, %v1022_v14  ;;  %v2741_v62 = vsel %vm172_vm0, %v1057_v60, %v1058_v55 }
 0x4b6   :  { %v1111_v21 = vrot.slane %v2741_v62, 2  ;;  %v1080_v43 = vrot.slane %v2741_v62, 1  ;;  %v1142_v27 = vrot.slane %v2741_v62, 3  ;;  %v1173_v44 = vrot.slane %v2741_v62, 4 }
 0x4b7   :  { %v1042_v8 = vadd.f32 %v2719_v18, %v1032_v35  ;;  %v1047_v30 = vmul.f32 %v2467_v15, %v1041_v37 }
 0x4b8   :  { %v2049_v38 = vpop.eup %2048  ;;  %v1112_v28 = vsel %vm227_vm3, %v1110_v41, %v1111_v21  ;;  %v1081_v40 = vsel %vm195_vm1, %v1079_v54, %v1080_v43  ;;  %v1143_v32 = vsel %vm259_vm2, %v1141_v19, %v1142_v27 }
 0x4b9   :  { %v1023_v13 = vmul.f32 %v2049_v38, %v1005_v59  ;;  %v1060_v2 = vrot.slane %v1047_v30, 6  ;;  %v1048_v3 = vmul.f32 %v2476_v7, %v1042_v8 }
 0x4bb   :  { %v1033_v6 = vmul.f32 %v2713_v10, %v1023_v13  ;;  %v2757_v47 = vsel %vm172_vm0, %v1058_v55, %v1060_v2  ;;  %v1062_v22 = vrot.slane %v1048_v3, 6  ;;  %v1174_v55 = vsel %vm291_vm4, %v1172_v12, %v1173_v44 }
 0x4bc   :  { %v2051_v11 = vpop.eup %2050  ;;  %v1113_v39 = vrot.slane %v2757_v47, 2  ;;  %v1082_v16 = vrot.slane %v2757_v47, 1  ;;  %v1144_v17 = vrot.slane %v2757_v47, 3  ;;  %v1175_v57 = vrot.slane %v2757_v47, 4 }
 0x4bd   :  { %v1043_v23 = vadd.f32 %v2719_v18, %v1033_v6  ;;  %v1024_v26 = vmul.f32 %v2051_v11, %v1006_v5  ;;  %v2780_v25 = vsel %vm172_vm0, %v1060_v2, %v1062_v22 }
 0x4be   :  { %v1114_v9 = vsel %vm227_vm3, %v1111_v21, %v1113_v39  ;;  %v1083_v31 = vsel %vm195_vm1, %v1080_v43, %v1082_v16  ;;  %v1145_v36 = vsel %vm259_vm2, %v1142_v27, %v1144_v17  ;;  %v1084_v48 = vrot.slane %v2780_v25, 1 }
 0x4bf   :  { %v1034_v63 = vmul.f32 %v2713_v10, %v1024_v26  ;;  %v1933_v33 = vpack.i.bf16 %v1114_v9, %v1112_v28  ;;  %v1928_v29 = vpack.i.bf16 %v1083_v31, %v1081_v40  ;;  %v1049_v0 = vmul.f32 %v2486_v53, %v1043_v23 }
 0x4c0   :  { %v1938_v50 = vpack.i.bf16 %v1145_v36, %v1143_v32  ;;  %v1176_v61 = vsel %vm291_vm4, %v1173_v44, %v1175_v57  ;;  %v1115_v60 = vrot.slane %v2780_v25, 2  ;;  %v1085_v42 = vsel %vm195_vm1, %v1082_v16, %v1084_v48 }
 0x4c1   :  { %1934 = vrot.lane.b32.xlu0 %v1933_v33, %s2096_s11  ;;  %1929 = vrot.lane.b32.xlu1 %v1928_v29, %s2094_s10  ;;  %v1044_v10 = vadd.f32 %v2719_v18, %v1034_v63  ;;  %v1064_v45 = vrot.slane %v1049_v0, 6  ;;  %v1943_v35 = vpack.i.bf16 %v1176_v61, %v1174_v55  ;;  %v1146_v59 = vrot.slane %v2780_v25, 3 }
 0x4c2   :  { %v1116_v21 = vsel %vm227_vm3, %v1113_v39, %v1115_v60  ;;  %v1177_v43 = vrot.slane %v2780_v25, 4 }
 0x4c3   :  { %v1050_v24 = vmul.f32 %v2533_v4, %v1044_v10  ;;  %v2793_v51 = vsel %vm172_vm0, %v1062_v22, %v1064_v45  ;;  %v1147_v54 = vsel %vm259_vm2, %v1144_v17, %v1146_v59 }
 0x4c4   :  { %v1086_v18 = vrot.slane %v2793_v51, 1  ;;  %v1117_v52 = vrot.slane %v2793_v51, 2  ;;  %v1148_v14 = vrot.slane %v2793_v51, 3  ;;  %v1179_v13 = vrot.slane %v2793_v51, 4 }
 0x4c5   :  { %1939 = vrot.lane.b32.xlu1 %v1938_v50, %s2098_s5  ;;  %v1066_v37 = vrot.slane %v1050_v24, 6  ;;  %v1178_v9 = vsel %vm291_vm4, %v1175_v57, %v1177_v43 }
 0x4c6   :  { %v1087_v8 = vsel %vm195_vm1, %v1084_v48, %v1086_v18  ;;  %v1118_v38 = vsel %vm227_vm3, %v1115_v60, %v1117_v52  ;;  %v1149_v2 = vsel %vm259_vm2, %v1146_v59, %v1148_v14  ;;  %v1180_v16 = vsel %vm291_vm4, %v1177_v43, %v1179_v13 }
 0x4c7   :  { %v1948_v30 = vpack.i.bf16 %v1087_v8, %v1085_v42  ;;  %v2809_v3 = vsel %vm172_vm0, %v1064_v45, %v1066_v37  ;;  %v1076_v5 = vsel %vm172_vm0, %v1066_v37, 0.0  ;;  %v1953_v41 = vpack.i.bf16 %v1118_v38, %v1116_v21 }
 0x4c8   :  { %v1088_v46 = vrot.slane %v2809_v3, 1  ;;  %v1090_v6 = vrot.slane %v1076_v5, 1  ;;  %v1958_v11 = vpack.i.bf16 %v1149_v2, %v1147_v54  ;;  %v1119_v22 = vrot.slane %v2809_v3, 2 }
 0x4c9   :  { %1944 = vrot.lane.b32.xlu1 %v1943_v35, %s2099_s4  ;;  %1949 = vrot.lane.b32.xlu0 %v1948_v30, %s2094_s10  ;;  %v1121_v23 = vrot.slane %v1076_v5, 2  ;;  %v1150_v27 = vrot.slane %v2809_v3, 3  ;;  %v1152_v28 = vrot.slane %v1076_v5, 3  ;;  %v1963_v17 = vpack.i.bf16 %v1180_v16, %v1178_v9 }
 0x4ca   :  { %v1089_v26 = vsel %vm195_vm1, %v1086_v18, %v1088_v46  ;;  %v1091_v39 = vsel %vm195_vm1, %v1088_v46, %v1090_v6  ;;  %v1181_v40 = vrot.slane %v2809_v3, 4  ;;  %v1120_v63 = vsel %vm227_vm3, %v1117_v52, %v1119_v22 }
 0x4cb   :  { %v1968_v31 = vpack.i.bf16 %v1091_v39, %v1089_v26  ;;  %v1122_v33 = vsel %vm227_vm3, %v1119_v22, %v1121_v23  ;;  %v1183_v29 = vrot.slane %v1076_v5, 4  ;;  %v1151_v19 = vsel %vm259_vm2, %v1148_v14, %v1150_v27 }
 0x4cc   :  { %v1153_v34 = vsel %vm259_vm2, %v1150_v27, %v1152_v28  ;;  %v1973_v36 = vpack.i.bf16 %v1122_v33, %v1120_v63  ;;  %v1182_v57 = vsel %vm291_vm4, %v1179_v13, %v1181_v40  ;;  %vm1215_vm0 = vcmask 588800  }
 0x4cd   :  { %1954 = vrot.lane.b32.xlu1 %v1953_v41, %s2096_s11  ;;  %1959 = vrot.lane.b32.xlu0 %v1958_v11, %s2098_s5  ;;  %v1978_v0 = vpack.i.bf16 %v1153_v34, %v1151_v19  ;;  %v1184_v10 = vsel %vm291_vm4, %v1181_v40, %v1183_v29  ;;  %vm1222_vm1 = vcmask 785408   ;;  %vm1297_vm2 = vcmask 982016  }
 0x4ce   :  { %v1983_v32 = vpack.i.bf16 %v1184_v10, %v1182_v57  ;;  %vm1625_vm3 = vcmask 387072  }
 0x4d1   :  { %1964 = vrot.lane.b32.xlu1 %v1963_v17, %s2099_s4  ;;  %1969 = vrot.lane.b32.xlu0 %v1968_v31, %s2094_s10 }
 0x4d5   :  { %1974 = vrot.lane.b32.xlu1 %v1973_v36, %s2096_s11  ;;  %1979 = vrot.lane.b32.xlu0 %v1978_v0, %s2098_s5 }
 0x4d9   :  { %1984 = vrot.lane.b32.xlu1 %v1983_v32, %s2099_s4 }
 0x533   :  { %v1930_v44 = vpop.permute.xlu1 %1929  ;;  %v1935_v45 = vpop.permute.xlu0 %1934 }
 0x534   :  { %v1932_v49 = vunpack.i.h.bf16 %v1930_v44  ;;  %v1931_v50 = vunpack.i.l.bf16 %v1930_v44  ;;  %v1937_v24 = vunpack.i.h.bf16 %v1935_v45  ;;  %v1936_v12 = vunpack.i.l.bf16 %v1935_v45 }
 0x536   :  { %v1204_v61 = vsel %vm730_vm5, %v2741_v62, %v1932_v49  ;;  %v1203_v18 = vsel %vm730_vm5, %v2744_v1, %v1931_v50 }
 0x537   :  { %v1940_v48 = vpop.permute.xlu1 %1939  ;;  %v1209_v60 = vsel %vm744_vm7, %v1203_v18, %v1936_v12  ;;  %v1210_v37 = vsel %vm744_vm7, %v1204_v61, %v1937_v24  ;;  %v1661_v12 = vld [vmem:[%s2964_s1 + $0x6] ss:$0 sm:$0xff] }
 0x538   :  { %v1942_v52 = vunpack.i.h.bf16 %v1940_v48  ;;  %v1941_v14 = vunpack.i.l.bf16 %v1940_v48 }
 0x53a   :  { %v1216_v59 = vsel %vm1215_vm0, %v1209_v60, %v1941_v14  ;;  %v1217_v30 = vsel %vm1215_vm0, %v1210_v37, %v1942_v52 }
 0x53b   :  { %v1945_v55 = vpop.permute.xlu1 %1944  ;;  %v1950_v35 = vpop.permute.xlu0 %1949 }
 0x53c   :  { %v1947_v42 = vunpack.i.h.bf16 %v1945_v55  ;;  %v1946_v8 = vunpack.i.l.bf16 %v1945_v55  ;;  %v1952_v62 = vunpack.i.h.bf16 %v1950_v35  ;;  %v1951_v38 = vunpack.i.l.bf16 %v1950_v35 }
 0x53e   :  { %v1223_v1 = vsel %vm1222_vm1, %v1216_v59, %v1946_v8  ;;  %v1224_v13 = vsel %vm1222_vm1, %v1217_v30, %v1947_v42  ;;  %v1206_v6 = vsel %vm730_vm5, %v2780_v25, %v1952_v62  ;;  %v1205_v41 = vsel %vm730_vm5, %v2757_v47, %v1951_v38 }
 0x53f   :  { %v1229_v2 = vpack.c.bf16 %v1224_v13, %v1223_v1  ;;  %v1955_v5 = vpop.permute.xlu1 %1954  ;;  %v1960_v21 = vpop.permute.xlu0 %1959 }
 0x540   :  { %v1957_v43 = vunpack.i.h.bf16 %v1955_v5  ;;  %v1956_v46 = vunpack.i.l.bf16 %v1955_v5  ;;  %v1962_v54 = vunpack.i.h.bf16 %v1960_v21  ;;  %v1961_v11 = vunpack.i.l.bf16 %v1960_v21 }
 0x541   :  { %1762 = vmatmul.mubr.msk.bf16.vlgmr.msra.gmra.mrb[12].mxu0 %vm1297_vm2, %v1229_v2 }
 0x542   :  { %v1212_v16 = vsel %vm744_vm7, %v1206_v6, %v1957_v43  ;;  %v1211_v22 = vsel %vm744_vm7, %v1205_v41, %v1956_v46  ;;  %1765 = vmatprep.mubr.msk.bf16.mxu0 %vm2981_vm12, %v2088_v20 }
 0x543   :  { %v1965_v23 = vpop.permute.xlu1 %1964  ;;  %v1970_v26 = vpop.permute.xlu0 %1969  ;;  %v1218_v9 = vsel %vm1215_vm0, %v1211_v22, %v1961_v11  ;;  %v1219_v47 = vsel %vm1215_vm0, %v1212_v16, %v1962_v54 }
 0x544   :  { %v1967_v39 = vunpack.i.h.bf16 %v1965_v23  ;;  %v1966_v27 = vunpack.i.l.bf16 %v1965_v23  ;;  %v1972_v28 = vunpack.i.h.bf16 %v1970_v26  ;;  %v1971_v25 = vunpack.i.l.bf16 %v1970_v26 }
 0x546   :  { %v1225_v17 = vsel %vm1222_vm1, %v1218_v9, %v1966_v27  ;;  %v1226_v40 = vsel %vm1222_vm1, %v1219_v47, %v1967_v39  ;;  %v1208_v34 = vsel %vm730_vm5, %v2809_v3, %v1972_v28  ;;  %v1207_v36 = vsel %vm730_vm5, %v2793_v51, %v1971_v25 }
 0x547   :  { %v1230_v31 = vpack.c.bf16 %v1226_v40, %v1225_v17  ;;  %v1975_v63 = vpop.permute.xlu1 %1974  ;;  %v1980_v33 = vpop.permute.xlu0 %1979 }
 0x548   :  { %v1977_v29 = vunpack.i.h.bf16 %v1975_v63  ;;  %v1976_v19 = vunpack.i.l.bf16 %v1975_v63  ;;  %v1982_v0 = vunpack.i.h.bf16 %v1980_v33  ;;  %v1981_v57 = vunpack.i.l.bf16 %v1980_v33 }
 0x549   :  { %1766 = vmatmul.mubr.msk.bf16.gmra.mrb[16].mxu0 %vm1297_vm2, %v1230_v31 }
 0x54a   :  { %v1214_v10 = vsel %vm744_vm7, %v1208_v34, %v1977_v29  ;;  %v1213_v32 = vsel %vm744_vm7, %v1207_v36, %v1976_v19  ;;  %1769 = vmatprep.mubr.msk.bf16.mxu0 %vm2981_vm12, %v2088_v20 }
 0x54b   :  { %v1985_v44 = vpop.permute.xlu1 %1984  ;;  %v1220_v50 = vsel %vm1215_vm0, %v1213_v32, %v1981_v57  ;;  %v1221_v3 = vsel %vm1215_vm0, %v1214_v10, %v1982_v0 }
 0x54c   :  { %v1987_v45 = vunpack.i.h.bf16 %v1985_v44  ;;  %v1986_v49 = vunpack.i.l.bf16 %v1985_v44 }
 0x54e   :  { %v1227_v51 = vsel %vm1222_vm1, %v1220_v50, %v1986_v49  ;;  %v1228_v48 = vsel %vm1222_vm1, %v1221_v3, %v1987_v45 }
 0x54f   :  { %v1231_v24 = vpack.c.bf16 %v1228_v48, %v1227_v51 }
 0x551   :  { %1770 = vmatmul.mubr.msk.bf16.gmra.mrb[20].mxu0 %vm1297_vm2, %v1231_v24 }
 0x614   :  { %v1344_v61 = vpop.f32.mrb[12].mxu0 }
 0x615   :  { %v1345_v18 = vadd.f32 %v1661_v12, %v1344_v61  ;;  %v1763_v52 = vpop.f32.mrb[13].mxu0 }
 0x616   :  { %v1347_v14 = vpop.f32.mrb[14].mxu0 }
 0x617   :  { %v1673_v55 = vmul.f32 -1.442695, %v1345_v18  ;;  %v1348_v60 = vadd.f32 %v1661_v12, %v1347_v14  ;;  %v1764_v37 = vpop.f32.mrb[15].mxu0 }
 0x619   :  { %2052 = vpow2.f32 %v1673_v55  ;;  %v1674_v35 = vmul.f32 -1.442695, %v1348_v60 }
 0x61b   :  { %2054 = vpow2.f32 %v1674_v35 }
 0x61c   :  { %v1352_v42 = vpop.f32.mrb[16].mxu0 }
 0x61d   :  { %v1353_v8 = vadd.f32 %v1661_v12, %v1352_v42  ;;  %v1767_v59 = vpop.f32.mrb[17].mxu0 }
 0x61e   :  { %v1355_v30 = vpop.f32.mrb[18].mxu0 }
 0x61f   :  { %v1675_v62 = vmul.f32 -1.442695, %v1353_v8  ;;  %v1356_v38 = vadd.f32 %v1661_v12, %v1355_v30  ;;  %v1768_v1 = vpop.f32.mrb[19].mxu0 }
 0x621   :  { %2056 = vpow2.f32 %v1675_v62  ;;  %v1676_v13 = vmul.f32 -1.442695, %v1356_v38 }
 0x623   :  { %v2053_v2 = vpop.eup %2052  ;;  %2058 = vpow2.f32 %v1676_v13  ;;  %v2100_v13 = vmov 0  }
 0x624   :  { %v1385_v5 = vadd.f32 1.0, %v2053_v2  ;;  %v1360_v21 = vpop.f32.mrb[20].mxu0  ;;  %1988 = vset.pattern.permute.xlu1 %v2100_v13  ;;  %v1567_v2 = vld [vmem:[%s2967_s2] sm:$0x7]  ;;  %1989 = vset.pattern.permute.xlu0 %v2100_v13 }
 0x625   :  { %v2055_v43 = vpop.eup %2054  ;;  %v2877_v46 = vadd.f32 %v1661_v12, %v1360_v21  ;;  %v1771_v6 = vpop.f32.mrb[21].mxu0 }
 0x626   :  { %2060 = vrcp.f32 %v1385_v5  ;;  %v1386_v41 = vadd.f32 1.0, %v2055_v43  ;;  %v1363_v54 = vpop.f32.mrb[22].mxu0 }
 0x627   :  { %v1677_v11 = vmul.f32 -1.442695, %v2877_v46  ;;  %v1364_v16 = vadd.f32 %v1661_v12, %v1363_v54  ;;  %v1772_v22 = vpop.f32.mrb[23].mxu0 }
 0x628   :  { %2062 = vrcp.f32 %v1386_v41 }
 0x629   :  { %2064 = vpow2.f32 %v1677_v11  ;;  %v1678_v23 = vmul.f32 -1.442695, %v1364_v16 }
 0x62b   :  { %v2057_v26 = vpop.eup %2056  ;;  %2066 = vpow2.f32 %v1678_v23 }
 0x62c   :  { %v1387_v39 = vadd.f32 1.0, %v2057_v26 }
 0x62d   :  { %v2059_v27 = vpop.eup %2058 }
 0x62e   :  { %2068 = vrcp.f32 %v1387_v39  ;;  %v1388_v28 = vadd.f32 1.0, %v2059_v27 }
 0x630   :  { %v2061_v25 = vpop.eup %2060  ;;  %2070 = vrcp.f32 %v1388_v28 }
 0x631   :  { %1409 = vrot.lane.b32.xlu0 %v2061_v25, %s2097_s14 }
 0x632   :  { %v2063_v9 = vpop.eup %2062 }
 0x633   :  { %v2065_v47 = vpop.eup %2064  ;;  %1411 = vrot.lane.b32.xlu1 %v2063_v9, %s2097_s14 }
 0x634   :  { %v1389_v17 = vadd.f32 1.0, %v2065_v47 }
 0x635   :  { %v2067_v40 = vpop.eup %2066 }
 0x636   :  { %2072 = vrcp.f32 %v1389_v17  ;;  %v1390_v31 = vadd.f32 1.0, %v2067_v40 }
 0x638   :  { %v2069_v63 = vpop.eup %2068  ;;  %2074 = vrcp.f32 %v1390_v31 }
 0x639   :  { %1413 = vrot.lane.b32.xlu0 %v2069_v63, %s2097_s14 }
 0x63a   :  { %v2071_v33 = vpop.eup %2070 }
 0x63b   :  { %1415 = vrot.lane.b32.xlu1 %v2071_v33, %s2097_s14 }
 0x640   :  { %v2073_v29 = vpop.eup %2072 }
 0x641   :  { %1417 = vrot.lane.b32.xlu0 %v2073_v29, %s2097_s14 }
 0x642   :  { %v2075_v19 = vpop.eup %2074 }
 0x643   :  { %1419 = vrot.lane.b32.xlu1 %v2075_v19, %s2097_s14 }
 0x6a3   :  { %v1410_v34 = vpop.permute.xlu0 %1409 }
 0x6a4   :  { %v2886_v36 = vmul.f32 %v1410_v34, %v1345_v18 }
 0x6a5   :  { %v1412_v0 = vpop.permute.xlu1 %1411 }
 0x6a6   :  { %v2888_v57 = vmul.f32 %v1412_v0, %v1348_v60  ;;  %v1435_v10 = vsel %vm730_vm5, %v2886_v36, 0.0  ;;  %v1459_v32 = vmul.f32 %v2886_v36, %v2886_v36 }
 0x6a7   :  { %1436 = vadd.xlane.f32.xlu0 %v1435_v10 }
 0x6a8   :  { %v1438_v44 = vsel %vm730_vm5, %v2888_v57, 0.0  ;;  %v1465_v45 = vsel %vm730_vm5, %v1459_v32, 0.0  ;;  %v1460_v49 = vmul.f32 %v2888_v57, %v2888_v57 }
 0x6a9   :  { %1439 = vadd.xlane.f32.xlu1 %v1438_v44 }
 0x6aa   :  { %v1468_v24 = vsel %vm730_vm5, %v1460_v49, 0.0 }
 0x6ab   :  { %v1414_v50 = vpop.permute.xlu0 %1413  ;;  %1466 = vadd.xlane.f32.xlu0 %v1465_v45 }
 0x6ac   :  { %v2899_v3 = vmul.f32 %v1414_v50, %v1353_v8 }
 0x6ad   :  { %v1416_v51 = vpop.permute.xlu1 %1415 }
 0x6ae   :  { %v2901_v48 = vmul.f32 %v1416_v51, %v1356_v38  ;;  %v1441_v12 = vsel %vm730_vm5, %v2899_v3, 0.0  ;;  %v1461_v61 = vmul.f32 %v2899_v3, %v2899_v3 }
 0x6af   :  { %1469 = vadd.xlane.f32.xlu0 %v1468_v24  ;;  %1442 = vadd.xlane.f32.xlu1 %v1441_v12 }
 0x6b0   :  { %v1444_v18 = vsel %vm730_vm5, %v2901_v48, 0.0  ;;  %v1471_v52 = vsel %vm730_vm5, %v1461_v61, 0.0  ;;  %v1462_v14 = vmul.f32 %v2901_v48, %v2901_v48 }
 0x6b2   :  { %v1474_v42 = vsel %vm730_vm5, %v1462_v14, 0.0 }
 0x6b3   :  { %1445 = vadd.xlane.f32.xlu0 %v1444_v18  ;;  %v1418_v55 = vpop.permute.xlu0 %1417  ;;  %1472 = vadd.xlane.f32.xlu1 %v1471_v52 }
 0x6b4   :  { %v2914_v60 = vmul.f32 %v1418_v55, %v2877_v46 }
 0x6b5   :  { %v1420_v37 = vpop.permute.xlu1 %1419 }
 0x6b6   :  { %v2916_v35 = vmul.f32 %v1420_v37, %v1364_v16  ;;  %v1447_v8 = vsel %vm730_vm5, %v2914_v60, 0.0  ;;  %v1463_v59 = vmul.f32 %v2914_v60, %v2914_v60 }
 0x6b7   :  { %1475 = vadd.xlane.f32.xlu0 %v1474_v42  ;;  %1448 = vadd.xlane.f32.xlu1 %v1447_v8  ;;  %v1679_v42 = vld [vmem:[%s2964_s1 + $0x7] ss:$0 sm:$0xff] }
 0x6b8   :  { %v1477_v30 = vsel %vm730_vm5, %v1463_v59, 0.0  ;;  %v1450_v62 = vsel %vm730_vm5, %v2916_v35, 0.0  ;;  %v1464_v38 = vmul.f32 %v2916_v35, %v2916_v35 }
 0x6ba   :  { %v1480_v1 = vsel %vm730_vm5, %v1464_v38, 0.0 }
 0x6bb   :  { %1478 = vadd.xlane.f32.xlu1 %v1477_v30  ;;  %1451 = vadd.xlane.f32.xlu0 %v1450_v62 }
 0x6bf   :  { %1481 = vadd.xlane.f32.xlu0 %v1480_v1  ;;  %v1680_v1 = vld [vmem:[%s2964_s1 + $0x8] ss:$0 sm:$0xff] }
 0x6cc   :  { %1570 = vperm.xlu1 %1988, %v1567_v2  }
 0x734   :  { %v1437_v5 = vpop.xlane.xlu0 %1436 }
 0x735   :  { %v1453_v21 = vmul.f32 0.041666668, %v1437_v5 }
 0x736   :  { %v1440_v43 = vpop.xlane.xlu1 %1439 }
 0x737   :  { %v1489_v6 = vmul.f32 %v1453_v21, %v1453_v21  ;;  %v1454_v41 = vmul.f32 0.041666668, %v1440_v43  ;;  %v1507_v52 = vsub.f32 %v2886_v36, %v1453_v21 }
 0x738   :  { %v1467_v46 = vpop.xlane.xlu0 %1466 }
 0x739   :  { %v1483_v54 = vmul.f32 0.041666668, %v1467_v46  ;;  %v1490_v23 = vmul.f32 %v1454_v41, %v1454_v41  ;;  %v1508_v13 = vsub.f32 %v2888_v57, %v1454_v41 }
 0x73b   :  { %v1495_v11 = vsub.f32 %v1483_v54, %v1489_v6 }
 0x73c   :  { %v1470_v16 = vpop.xlane.xlu0 %1469  ;;  %v1443_v22 = vpop.xlane.xlu1 %1442 }
 0x73d   :  { %v1501_v26 = vmax.f32 %v1495_v11, 0.0  ;;  %v1484_v39 = vmul.f32 0.041666668, %v1470_v16  ;;  %v1455_v27 = vmul.f32 0.041666668, %v1443_v22 }
 0x73f   :  { %v1513_v28 = vadd.f32 1e-05, %v1501_v26  ;;  %v1496_v25 = vsub.f32 %v1484_v39, %v1490_v23  ;;  %v1491_v9 = vmul.f32 %v1455_v27, %v1455_v27  ;;  %v1509_v54 = vsub.f32 %v2899_v3, %v1455_v27 }
 0x740   :  { %v1446_v47 = vpop.xlane.xlu0 %1445  ;;  %v1473_v17 = vpop.xlane.xlu1 %1472 }
 0x741   :  { %2076 = vrsqrt.f32 %v1513_v28  ;;  %v1502_v40 = vmax.f32 %v1496_v25, 0.0  ;;  %v1456_v31 = vmul.f32 0.041666668, %v1446_v47  ;;  %v1485_v63 = vmul.f32 0.041666668, %v1473_v17 }
 0x743   :  { %v1514_v33 = vadd.f32 1e-05, %v1502_v40  ;;  %v1497_v29 = vsub.f32 %v1485_v63, %v1491_v9  ;;  %v1492_v19 = vmul.f32 %v1456_v31, %v1456_v31  ;;  %v1510_v57 = vsub.f32 %v2901_v48, %v1456_v31 }
 0x744   :  { %v1476_v34 = vpop.xlane.xlu0 %1475  ;;  %v1449_v0 = vpop.xlane.xlu1 %1448 }
 0x745   :  { %2078 = vrsqrt.f32 %v1514_v33  ;;  %v1503_v10 = vmax.f32 %v1497_v29, 0.0  ;;  %v1486_v32 = vmul.f32 0.041666668, %v1476_v34  ;;  %v1457_v44 = vmul.f32 0.041666668, %v1449_v0 }
 0x747   :  { %v1515_v45 = vadd.f32 1e-05, %v1503_v10  ;;  %v1498_v49 = vsub.f32 %v1486_v32, %v1492_v19  ;;  %v1493_v50 = vmul.f32 %v1457_v44, %v1457_v44  ;;  %v1511_v3 = vsub.f32 %v2914_v60, %v1457_v44 }
 0x748   :  { %v1452_v51 = vpop.xlane.xlu0 %1451  ;;  %v1479_v24 = vpop.xlane.xlu1 %1478 }
 0x749   :  { %2080 = vrsqrt.f32 %v1515_v45  ;;  %v1504_v12 = vmax.f32 %v1498_v49, 0.0  ;;  %v1458_v61 = vmul.f32 0.041666668, %v1452_v51  ;;  %v1487_v18 = vmul.f32 0.041666668, %v1479_v24 }
 0x74b   :  { %v2077_v14 = vpop.eup %2076  ;;  %v1516_v55 = vadd.f32 1e-05, %v1504_v12  ;;  %v1499_v37 = vsub.f32 %v1487_v18, %v1493_v50  ;;  %v1494_v30 = vmul.f32 %v1458_v61, %v1458_v61  ;;  %v1566_v18 = vld [vmem:[%s2968_s6] sm:$0x3] }
 0x74c   :  { %v1482_v8 = vpop.xlane.xlu0 %1481  ;;  %v1525_v59 = vmul.f32 %v2077_v14, %v1507_v52  ;;  %v1571_v52 = vpop.permute.xlu1 %1570 }
 0x74d   :  { %2082 = vrsqrt.f32 %v1516_v55  ;;  %v1505_v62 = vmax.f32 %v1499_v37, 0.0  ;;  %v1488_v38 = vmul.f32 0.041666668, %v1482_v8 }
 0x74e   :  { %v1535_v36 = vmul.f32 %v1679_v42, %v1525_v59 }
 0x74f   :  { %v2079_v2 = vpop.eup %2078  ;;  %v1517_v5 = vadd.f32 1e-05, %v1505_v62  ;;  %v1500_v21 = vsub.f32 %v1488_v38, %v1494_v30 }
 0x750   :  { %v1526_v43 = vmul.f32 %v2079_v2, %v1508_v13  ;;  %v1545_v46 = vadd.f32 %v1680_v1, %v1535_v36 }
 0x751   :  { %2084 = vrsqrt.f32 %v1517_v5  ;;  %v1506_v6 = vmax.f32 %v1500_v21, 0.0 }
 0x752   :  { %v1536_v11 = vmul.f32 %v1679_v42, %v1526_v43  ;;  %v1551_v26 = vmul.f32 %v2446_v56, %v1545_v46 }
 0x753   :  { %v2081_v16 = vpop.eup %2080  ;;  %v1518_v22 = vadd.f32 1e-05, %v1506_v6 }
 0x754   :  { %v1546_v23 = vadd.f32 %v1680_v1, %v1536_v11  ;;  %v1527_v39 = vmul.f32 %v2081_v16, %v1509_v54  ;;  %v1557_v9 = vmax.f32 %v1551_v26, 0.0 }
 0x755   :  { %2086 = vrsqrt.f32 %v1518_v22 }
 0x756   :  { %v1552_v41 = vmul.f32 %v2449_v58, %v1546_v23  ;;  %v1537_v28 = vmul.f32 %v1679_v42, %v1527_v39  ;;  %v1512_v58 = vsub.f32 %v2916_v35, %v1458_v61 }
 0x757   :  { %v2083_v25 = vpop.eup %2082 }
 0x758   :  { %v1558_v47 = vmax.f32 %v1552_v41, 0.0  ;;  %v1528_v17 = vmul.f32 %v2083_v25, %v1510_v57  ;;  %v1547_v40 = vadd.f32 %v1680_v1, %v1537_v28 }
 0x75a   :  { %v1563_v27 = vpack.c.bf16 %v1558_v47, %v1557_v9  ;;  %v1538_v63 = vmul.f32 %v1679_v42, %v1528_v17  ;;  %v1553_v19 = vmul.f32 %v2467_v15, %v1547_v40 }
 0x75b   :  { %v2085_v33 = vpop.eup %2084 }
 0x75c   :  { %v1577_v29 = vsel %vm730_vm5, %v1563_v27, 0  ;;  %v1548_v56 = vadd.f32 %v1680_v1, %v1538_v63  ;;  %v1529_v34 = vmul.f32 %v2085_v33, %v1511_v3  ;;  %v1559_v10 = vmax.f32 %v1553_v19, 0.0 }
 0x75d   :  { %1774 = vmatpush3.bf16.xpose.msra.mxu1 %v1577_v29 }
 0x75e   :  { %1775 = vmatprep.subr.bf16.mxu1 %v2088_v20  ;;  %v1554_v48 = vmul.f32 %v2476_v7, %v1548_v56  ;;  %v1539_v31 = vmul.f32 %v1679_v42, %v1529_v34 }
 0x75f   :  { %v2087_v0 = vpop.eup %2086 }
 0x760   :  { %v1560_v60 = vmax.f32 %v1554_v48, 0.0  ;;  %v1530_v32 = vmul.f32 %v2087_v0, %v1512_v58  ;;  %v1549_v44 = vadd.f32 %v1680_v1, %v1539_v31 }
 0x762   :  { %v1564_v45 = vpack.c.bf16 %v1560_v60, %v1559_v10  ;;  %v1540_v49 = vmul.f32 %v1679_v42, %v1530_v32  ;;  %v1555_v15 = vmul.f32 %v2486_v53, %v1549_v44 }
 0x764   :  { %v1580_v50 = vsel %vm730_vm5, %v1564_v45, 0  ;;  %v1550_v51 = vadd.f32 %v1680_v1, %v1540_v49  ;;  %v1561_v24 = vmax.f32 %v1555_v15, 0.0 }
 0x765   :  { %1776 = vmatpush3.bf16.xpose.msra.mxu1 %v1580_v50 }
 0x766   :  { %1777 = vmatprep.subr.bf16.mxu1 %v2088_v20  ;;  %v1556_v35 = vmul.f32 %v2533_v4, %v1550_v51 }
 0x768   :  { %v1562_v7 = vmax.f32 %v1556_v35, 0.0 }
 0x76a   :  { %v1565_v12 = vpack.c.bf16 %v1562_v7, %v1561_v24 }
 0x76c   :  { %v1583_v61 = vsel %vm730_vm5, %v1565_v12, 0 }
 0x76d   :  { %1778 = vmatpush3.bf16.xpose.msra.mxu1 %v1583_v61 }
 0x774   :  { %1780 = vmatmul.mubr.msk.bf16.vlgmr.msra.gmra.mrb[12].mxu1 %vm730_vm5, %v1566_v18 }
 0x847   :  { %v1619_v14 = vpop.f32.mrb[12].mxu1 }
 0x848   :  { %v1781_v53 = vpop.f32.mrb[13].mxu1  ;;  %v1620_v55 = vadd.f32 %v1619_v14, %v1571_v52 }
 0x849   :  { %v1622_v20 = vpop.f32.mrb[14].mxu1 }
 0x84a   :  { %1626 = vst.msk [vmem:[%s2969_s7] sm:$0x7] %vm1625_vm3, %v1620_v55  ;;  %v1782_v4 = vpop.f32.mrb[15].mxu1 }

</bundles_post_ra>
